<compile_context>
chip_gen: v5e
topology: v5e:2x2
jax: 0.10.0
libtpu: 0.0.40
codegen_flags: <defaults>
</compile_context>

<pallas_src>
import jax
import jax.numpy as jnp
from jax.experimental import pallas as pl
from jax.experimental.pallas import tpu as pltpu

LEAKY_SLOPE = 0.01   # nn.LeakyReLU() default negative_slope
BN_EPS = 1e-5        # nn.BatchNorm3d default eps


def _vmem_limit_bytes():
    # ~3/4 of physical VMEM: ~96 MiB on 128 MiB chips (v5e/v6e), ~48 MiB on v7x.
    try:
        cap = int(pltpu.get_tpu_info().vmem_capacity_bytes)
    except Exception:
        cap = 64 * 2**20
    return int(min(cap * 3 // 4, 100 * 2**20))


def _compiler_params(semantics):
    return pltpu.CompilerParams(dimension_semantics=semantics,
                                vmem_limit_bytes=_vmem_limit_bytes())


# --------------- fused MaxPool3d(2) + zero-pad + layout kernel ---------------

def maxpool3d_2_pad(x, out_dtype=jnp.bfloat16):
    """x: (N, C, 2D, 2H, 2W) NCDHW (already floor-cropped to even sizes).

    Returns (N, D, C, (H+2)*(W+2)): depth-major, row/col zero-padded planes in
    bf16, laid out so the conv kernel can read whole contiguous planes and run
    lane-dense matmuls.  One grid step (and one store) per sample.
    """
    N, C, D2, H2, W2 = x.shape
    D, H, W = D2 // 2, H2 // 2, W2 // 2
    Hp, Wp = H + 2, W + 2
    HpWp = Hp * Wp

    def kernel(x_ref, o_ref):
        v = x_ref[...]                                             # (C, 2D, 2H, 2W)
        m = jnp.max(v.reshape(C, D, 2, 2 * H, 2 * W), axis=2)      # depth pairs
        m = jnp.max(m.reshape(C, D, 2 * H, W, 2), axis=4)          # width pairs
        m = jnp.max(m.reshape(C, D, H, 2, W), axis=3)              # height pairs -> (C,D,H,W)
        m = jnp.transpose(m, (1, 0, 2, 3))                         # (D, C, H, W)
        zc = jnp.zeros((D, C, H, 1), m.dtype)
        rows = jnp.concatenate([zc, m, zc], axis=3).reshape(D, C, H * Wp)
        zr = jnp.zeros((D, C, Wp), m.dtype)
        plane = jnp.concatenate([zr, rows, zr], axis=2)            # (D, C, Hp*Wp)
        o_ref[...] = plane.astype(o_ref.dtype)                     # single full store

    return pl.pallas_call(
        kernel,
        out_shape=jax.ShapeDtypeStruct((N, D, C, HpWp), out_dtype),
        grid=(N,),
        in_specs=[pl.BlockSpec((None, C, D2, H2, W2),
                               lambda n: (n, 0, 0, 0, 0))],
        out_specs=pl.BlockSpec((None, D, C, HpWp), lambda n: (n, 0, 0, 0)),
        compiler_params=_compiler_params(("parallel",)),
        cost_estimate=pl.CostEstimate(
            flops=int(7 * N * C * D * H * W),
            transcendentals=0,
            bytes_accessed=int(x.size * x.dtype.itemsize + 2 * N * D * C * HpWp)),
    )(x)


# ---------------- fused Conv3d(3,p=1) + BatchNorm(eval) + LeakyReLU ----------

def conv3d_bn_lrelu(xp, w, b, gamma, beta, mean, var, *, spatial, out_dtype):
    """xp: (N, D, Cin, (H+2)*(W+2)) row/col zero-padded planes (bf16).

    Returns (N, D, Cout, (H+2)*(W+2)) padded planes of
    LeakyReLU(BN(Conv3d(x, 3x3x3, pad=1) + b)); the same format feeds the next
    conv directly, and the wrapper crops the pad ring for the final output.
    """
    H, W = spatial
    Hp, Wp = H + 2, W + 2
    N, D, Cin, HpWp = xp.shape
    assert HpWp == Hp * Wp
    Cout = w.shape[0]
    Lf = (H - 1) * Wp + W                  # flat (stride-Wp) output extent / plane
    K = 3 * Cin                            # merged contraction: (kd, ci)

    # Fold conv bias + eval-mode BatchNorm into a weight scale and a per-channel
    # shift; pack weights as 9 (Cout, 3*Cin) bf16 tiles (tap = (kh, kw)).
    inv = gamma * jax.lax.rsqrt(var + BN_EPS)                            # (Cout,)
    ws = w * inv[:, None, None, None, None]                              # (Cout,Cin,3,3,3)
    wf = jnp.transpose(ws, (3, 4, 0, 2, 1)).reshape(9, Cout, K).astype(jnp.bfloat16)
    shift = ((b - mean) * inv + beta).reshape(Cout, 1).astype(jnp.float32)
    # 0/1 mask killing the row-wrap junk lanes (junk is always finite: zero pad).
    mask = (jnp.arange(Lf, dtype=jnp.int32) % Wp < W).astype(jnp.float32)[None, :]

    def kernel(x_ref, w_ref, shift_ref, mask_ref, o_ref):
        d = pl.program_id(1)

        def dplane(kd):                     # (Cin, HpWp); zero outside depth [0, D)
            src = jnp.clip(d + (kd - 1), 0, D - 1)
            valid = (d + (kd - 1) >= 0) & (d + (kd - 1) <= D - 1)
            p = x_ref[src]
            return jnp.where(valid, p, jnp.zeros_like(p))

        # (3*Cin, Hp*Wp) slab: contraction rows ordered (kd, ci) to match wf.
        slab = jnp.concatenate([dplane(0), dplane(1), dplane(2)], axis=0)

        acc = jnp.zeros((Cout, Lf), jnp.float32)
        for t in range(9):                  # 9 merged-K MXU matmuls (f32 accumulate)
            kh, kw = divmod(t, 3)
            off = kh * Wp + kw
            acc = acc + jnp.dot(w_ref[t], slab[:, off:off + Lf],
                                preferred_element_type=jnp.float32)

        y = acc + shift_ref[...]                                   # bias + BN shift
        y = jnp.where(y >= 0, y, LEAKY_SLOPE * y)                  # LeakyReLU
        y = y * mask_ref[...]                                      # zero wrap lanes
        # Assemble the whole zero-padded plane and store it once (lane-dense).
        plane = jnp.concatenate(
            [jnp.zeros((Cout, Wp + 1), jnp.float32), y,
             jnp.zeros((Cout, 2 * Wp - W - 1), jnp.float32)], axis=1)   # (Cout, HpWp)
        o_ref[...] = plane.astype(o_ref.dtype)

    return pl.pallas_call(
        kernel,
        out_shape=jax.ShapeDtypeStruct((N, D, Cout, HpWp), out_dtype),
        grid=(N, D),
        in_specs=[
            # Whole padded sample resident across the plane axis (index ignores d).
            # TODO(synk): Buffered(1) / manual halo DMA for very large volumes.
            pl.BlockSpec((None, D, Cin, HpWp), lambda n, d: (n, 0, 0, 0)),
            pl.BlockSpec((9, Cout, K), lambda n, d: (0, 0, 0)),
            pl.BlockSpec((Cout, 1), lambda n, d: (0, 0)),
            pl.BlockSpec((1, Lf), lambda n, d: (0, 0)),
        ],
        out_specs=pl.BlockSpec((None, None, Cout, HpWp), lambda n, d: (n, d, 0, 0)),
        compiler_params=_compiler_params(("parallel", "parallel")),
        cost_estimate=pl.CostEstimate(
            flops=int(2 * N * D * Lf * 9 * K * Cout),
            transcendentals=0,
            bytes_accessed=int(2 * (xp.size + wf.size)
                               + N * D * Cout * HpWp * jnp.dtype(out_dtype).itemsize)),
    )(xp, wf, shift, mask)


# ------------------------------ DownBlock ------------------------------------

def init_downblock_params(key, in_channels, out_channels):
    def conv_init(k, cin, cout):
        kw_, kb_ = jax.random.split(k)
        bound = 1.0 / float((cin * 27) ** 0.5)
        w = jax.random.uniform(kw_, (cout, cin, 3, 3, 3), jnp.float32, -bound, bound)
        b = jax.random.uniform(kb_, (cout,), jnp.float32, -bound, bound)
        return w, b

    def bn_init(k, c):
        k1, k2, k3, k4 = jax.random.split(k, 4)
        gamma = jax.random.uniform(k1, (c,), jnp.float32, 0.5, 1.5)
        beta = 0.1 * jax.random.normal(k2, (c,), jnp.float32)
        mean = 0.1 * jax.random.normal(k3, (c,), jnp.float32)
        var = jax.random.uniform(k4, (c,), jnp.float32, 0.5, 1.5)
        return gamma, beta, mean, var

    k1, k2, k3, k4 = jax.random.split(key, 4)
    w1, b1 = conv_init(k1, in_channels, out_channels)
    w2, b2 = conv_init(k2, out_channels, out_channels)
    g1, be1, m1, v1 = bn_init(k3, out_channels)
    g2, be2, m2, v2 = bn_init(k4, out_channels)
    return {"conv1": (w1, b1, g1, be1, m1, v1),
            "conv2": (w2, b2, g2, be2, m2, v2)}


def downblock_forward(x_ncdhw, params):
    """DownBlock forward (eval mode): NCDHW f32 -> NCDHW f32."""
    N, Cin, D0, H0, W0 = x_ncdhw.shape
    D, H, W = D0 // 2, H0 // 2, W0 // 2
    Hp, Wp = H + 2, W + 2
    x = x_ncdhw[:, :, :2 * D, :2 * H, :2 * W]          # MaxPool3d floor behaviour
    xp = maxpool3d_2_pad(x)                            # (N, D, Cin, Hp*Wp) bf16
    a1 = conv3d_bn_lrelu(xp, *params["conv1"], spatial=(H, W),
                         out_dtype=jnp.bfloat16)
    # TODO(synk): nn.Dropout is identity in eval mode (no stochastic dropout).
    a2 = conv3d_bn_lrelu(a1, *params["conv2"], spatial=(H, W),
                         out_dtype=jnp.float32)        # (N, D, Cout, Hp*Wp)
    out = a2.reshape(N, D, -1, Hp, Wp)[:, :, :, 1:1 + H, 1:1 + W]   # crop pad ring
    return jnp.transpose(out, (0, 2, 1, 3, 4))         # (N, Cout, D, H, W)


# ------------------------------- reference -----------------------------------

def _ref_conv_bn_lrelu(x, w, b, gamma, beta, mean, var):
    y = jax.lax.conv_general_dilated(
        x, w, window_strides=(1, 1, 1), padding=[(1, 1)] * 3,
        dimension_numbers=("NCDHW", "OIDHW", "NCDHW"))
    y = y + b[None, :, None, None, None]
    inv = gamma * jax.lax.rsqrt(var + BN_EPS)
    y = (y - mean[None, :, None, None, None]) * inv[None, :, None, None, None] \
        + beta[None, :, None, None, None]
    return jnp.where(y >= 0, y, LEAKY_SLOPE * y)


def _ref_forward(x, params):
    N, C, D0, H0, W0 = x.shape
    D, H, W = D0 // 2, H0 // 2, W0 // 2
    x = x[:, :, :2 * D, :2 * H, :2 * W]
    x = jax.lax.reduce_window(x, -jnp.inf, jax.lax.max,
                              (1, 1, 2, 2, 2), (1, 1, 2, 2, 2), "VALID")
    x = _ref_conv_bn_lrelu(x, *params["conv1"])
    x = _ref_conv_bn_lrelu(x, *params["conv2"])
    return x


# ---------------------------------- main -------------------------------------

if __name__ == "__main__":
    key = jax.random.PRNGKey(0)
    kx, kp = jax.random.split(key)

    N, Cin, D0, H0, W0 = 2, 4, 8, 8, 8
    Cout = 8
    x = jax.random.normal(kx, (N, Cin, D0, H0, W0), jnp.float32)   # NCDHW, like PyTorch
    params = init_downblock_params(kp, Cin, Cout)

    out = jax.block_until_ready(jax.jit(downblock_forward)(x, params))
    assert out.shape == (N, Cout, D0 // 2, H0 // 2, W0 // 2), out.shape

    ref = jax.block_until_ready(jax.jit(_ref_forward)(x, params))
    err = float(jnp.max(jnp.abs(out - ref)))
    # bf16 MXU operands / bf16 intermediate (f32 accumulation) -> relaxed
    # tolerance against the all-f32 XLA reference.
    assert jnp.allclose(out, ref, atol=1e-1, rtol=5e-2), err

    print("KERNEL_OK")
</pallas_src>

<mosaic_0001>
module attributes {stable_mosaic.version = 11 : i64} {
  func.func @kernel(%arg0: i32, %arg1: memref<1x4x8x8x8xf32, #tpu.memory_space<vmem>>, %arg2: memref<1x4x4x36xbf16, #tpu.memory_space<vmem>>) attributes {dimension_semantics = [#tpu.dimension_semantics<parallel>], iteration_bounds = array<i64: 2>, scalar_prefetch = 0 : i64, scratch_operands = 0 : i64, tpu.core_type = #tpu.core_type<tc>, window_params = [{transform_indices = @transform_0, window_bounds = array<i64: 1, 4, 8, 8, 8>}, {transform_indices = @transform_1, window_bounds = array<i64: 1, 4, 4, 36>}]} {
    %c0 = arith.constant 0 : index
    %c0_0 = arith.constant 0 : index
    %c0_1 = arith.constant 0 : index
    %c0_2 = arith.constant 0 : index
    %c0_3 = arith.constant 0 : index
    %0 = vector.load %arg1[%c0, %c0_0, %c0_1, %c0_2, %c0_3] : memref<1x4x8x8x8xf32, #tpu.memory_space<vmem>>, vector<1x4x8x8x8xf32>
    %1 = vector.shape_cast %0 : vector<1x4x8x8x8xf32> to vector<4x8x8x8xf32>
    %2 = vector.shape_cast %1 : vector<4x8x8x8xf32> to vector<4x4x2x8x8xf32>
    %cst = arith.constant dense<0xFF800000> : vector<4x4x8x8xf32>
    %3 = vector.multi_reduction <maximumf>, %2, %cst [2] : vector<4x4x2x8x8xf32> to vector<4x4x8x8xf32>
    %4 = vector.shape_cast %3 : vector<4x4x8x8xf32> to vector<4x4x8x4x2xf32>
    %cst_4 = arith.constant dense<0xFF800000> : vector<4x4x8x4xf32>
    %5 = vector.multi_reduction <maximumf>, %4, %cst_4 [4] : vector<4x4x8x4x2xf32> to vector<4x4x8x4xf32>
    %6 = vector.shape_cast %5 : vector<4x4x8x4xf32> to vector<4x4x4x2x4xf32>
    %cst_5 = arith.constant dense<0xFF800000> : vector<4x4x4x4xf32>
    %7 = vector.multi_reduction <maximumf>, %6, %cst_5 [3] : vector<4x4x4x2x4xf32> to vector<4x4x4x4xf32>
    %8 = tpu.transpose %7, [1, 0, 2, 3] : vector<4x4x4x4xf32> -> vector<4x4x4x4xf32>
    %cst_6 = arith.constant 0.000000e+00 : f32
    %9 = vector.broadcast %cst_6 : f32 to vector<4x4x4x1xf32>
    %10 = tpu.concatenate %9, %8, %9 in 3 : vector<4x4x4x1xf32>, vector<4x4x4x4xf32>, vector<4x4x4x1xf32> -> vector<4x4x4x6xf32>
    %11 = vector.shape_cast %10 : vector<4x4x4x6xf32> to vector<4x4x24xf32>
    %cst_7 = arith.constant 0.000000e+00 : f32
    %12 = vector.broadcast %cst_7 : f32 to vector<4x4x6xf32>
    %13 = tpu.concatenate %12, %11, %12 in 2 : vector<4x4x6xf32>, vector<4x4x24xf32>, vector<4x4x6xf32> -> vector<4x4x36xf32>
    %14 = arith.truncf %13 : vector<4x4x36xf32> to vector<4x4x36xbf16>
    %c0_8 = arith.constant 0 : index
    %c0_9 = arith.constant 0 : index
    %c0_10 = arith.constant 0 : index
    %c0_11 = arith.constant 0 : index
    %15 = vector.load %arg2[%c0_8, %c0_9, %c0_10, %c0_11] : memref<1x4x4x36xbf16, #tpu.memory_space<vmem>>, vector<1x4x4x36xbf16>
    %16 = vector.shape_cast %15 : vector<1x4x4x36xbf16> to vector<4x4x36xbf16>
    %17 = vector.shape_cast %14 : vector<4x4x36xbf16> to vector<1x4x4x36xbf16>
    tpu.vector_store %arg2[%c0_8, %c0_9, %c0_10, %c0_11], %17 {strides = array<i32>} : memref<1x4x4x36xbf16, #tpu.memory_space<vmem>>, vector<1x4x4x36xbf16>,
    return
  }
  func.func @transform_0(%arg0: i32) -> (i32, i32, i32, i32, i32) {
    %c0_i32 = arith.constant 0 : i32
    %c0_i32_0 = arith.constant 0 : i32
    %c0_i32_1 = arith.constant 0 : i32
    %c0_i32_2 = arith.constant 0 : i32
    %c0_i32_3 = arith.constant 0 : i32
    return %arg0, %c0_i32, %c0_i32_0, %c0_i32_1, %c0_i32_2 : i32, i32, i32, i32, i32
  }
  func.func @transform_1(%arg0: i32) -> (i32, i32, i32, i32) {
    %c0_i32 = arith.constant 0 : i32
    %c0_i32_0 = arith.constant 0 : i32
    %c0_i32_1 = arith.constant 0 : i32
    %c0_i32_2 = arith.constant 0 : i32
    return %arg0, %c0_i32, %c0_i32_0, %c0_i32_1 : i32, i32, i32, i32
  }
}

module attributes {stable_mosaic.version = 11 : i64} {
  func.func @kernel(%arg0: i32, %arg1: i32, %arg2: memref<1x4x4x36xbf16, #tpu.memory_space<vmem>>, %arg3: memref<9x8x12xbf16, #tpu.memory_space<vmem>>, %arg4: memref<8x1xf32, #tpu.memory_space<vmem>>, %arg5: memref<1x22xf32, #tpu.memory_space<vmem>>, %arg6: memref<1x1x8x36xbf16, #tpu.memory_space<vmem>>) attributes {dimension_semantics = [#tpu.dimension_semantics<parallel>, #tpu.dimension_semantics<parallel>], iteration_bounds = array<i64: 2, 4>, scalar_prefetch = 0 : i64, scratch_operands = 0 : i64, tpu.core_type = #tpu.core_type<tc>, window_params = [{transform_indices = @transform_0, window_bounds = array<i64: 1, 4, 4, 36>}, {pipeline_mode = #tpu.pipeline_mode<synchronous>, transform_indices = @transform_1, window_bounds = array<i64: 9, 8, 12>}, {pipeline_mode = #tpu.pipeline_mode<synchronous>, transform_indices = @transform_2, window_bounds = array<i64: 8, 1>}, {pipeline_mode = #tpu.pipeline_mode<synchronous>, transform_indices = @transform_3, window_bounds = array<i64: 1, 22>}, {transform_indices = @transform_4, window_bounds = array<i64: 1, 1, 8, 36>}]} {
    %c-1_i32 = arith.constant -1 : i32
    %0 = arith.addi %arg1, %c-1_i32 : i32
    %c0_i32 = arith.constant 0 : i32
    %c3_i32 = arith.constant 3 : i32
    %1 = arith.maxsi %c0_i32, %0 : i32
    %2 = arith.minsi %c3_i32, %1 : i32
    %c-1_i32_0 = arith.constant -1 : i32
    %3 = arith.addi %arg1, %c-1_i32_0 : i32
    %c0_i32_1 = arith.constant 0 : i32
    %4 = arith.cmpi sge, %3, %c0_i32_1 : i32
    %c-1_i32_2 = arith.constant -1 : i32
    %5 = arith.addi %arg1, %c-1_i32_2 : i32
    %c3_i32_3 = arith.constant 3 : i32
    %6 = arith.cmpi sle, %5, %c3_i32_3 : i32
    %7 = arith.andi %4, %6 : i1
    %c0 = arith.constant 0 : index
    %8 = arith.index_cast %2 : i32 to index
    %c0_4 = arith.constant 0 : index
    %c0_5 = arith.constant 0 : index
    %9 = vector.load %arg2[%c0, %8, %c0_4, %c0_5] : memref<1x4x4x36xbf16, #tpu.memory_space<vmem>>, vector<1x1x4x36xbf16>
    %10 = vector.shape_cast %9 : vector<1x1x4x36xbf16> to vector<4x36xbf16>
    %cst = arith.constant 0.000000e+00 : bf16
    %11 = vector.broadcast %cst : bf16 to vector<4x36xbf16>
    %12 = arith.select %7, %10, %11 : vector<4x36xbf16>
    %c0_i32_6 = arith.constant 0 : i32
    %13 = arith.addi %arg1, %c0_i32_6 : i32
    %c0_i32_7 = arith.constant 0 : i32
    %c3_i32_8 = arith.constant 3 : i32
    %14 = arith.maxsi %c0_i32_7, %13 : i32
    %15 = arith.minsi %c3_i32_8, %14 : i32
    %c0_i32_9 = arith.constant 0 : i32
    %16 = arith.addi %arg1, %c0_i32_9 : i32
    %c0_i32_10 = arith.constant 0 : i32
    %17 = arith.cmpi sge, %16, %c0_i32_10 : i32
    %c0_i32_11 = arith.constant 0 : i32
    %18 = arith.addi %arg1, %c0_i32_11 : i32
    %c3_i32_12 = arith.constant 3 : i32
    %19 = arith.cmpi sle, %18, %c3_i32_12 : i32
    %20 = arith.andi %17, %19 : i1
    %c0_13 = arith.constant 0 : index
    %21 = arith.index_cast %15 : i32 to index
    %c0_14 = arith.constant 0 : index
    %c0_15 = arith.constant 0 : index
    %22 = vector.load %arg2[%c0_13, %21, %c0_14, %c0_15] : memref<1x4x4x36xbf16, #tpu.memory_space<vmem>>, vector<1x1x4x36xbf16>
    %23 = vector.shape_cast %22 : vector<1x1x4x36xbf16> to vector<4x36xbf16>
    %cst_16 = arith.constant 0.000000e+00 : bf16
    %24 = vector.broadcast %cst_16 : bf16 to vector<4x36xbf16>
    %25 = arith.select %20, %23, %24 : vector<4x36xbf16>
    %c1_i32 = arith.constant 1 : i32
    %26 = arith.addi %arg1, %c1_i32 : i32
    %c0_i32_17 = arith.constant 0 : i32
    %c3_i32_18 = arith.constant 3 : i32
    %27 = arith.maxsi %c0_i32_17, %26 : i32
    %28 = arith.minsi %c3_i32_18, %27 : i32
    %c1_i32_19 = arith.constant 1 : i32
    %29 = arith.addi %arg1, %c1_i32_19 : i32
    %c0_i32_20 = arith.constant 0 : i32
    %30 = arith.cmpi sge, %29, %c0_i32_20 : i32
    %c1_i32_21 = arith.constant 1 : i32
    %31 = arith.addi %arg1, %c1_i32_21 : i32
    %c3_i32_22 = arith.constant 3 : i32
    %32 = arith.cmpi sle, %31, %c3_i32_22 : i32
    %33 = arith.andi %30, %32 : i1
    %c0_23 = arith.constant 0 : index
    %34 = arith.index_cast %28 : i32 to index
    %c0_24 = arith.constant 0 : index
    %c0_25 = arith.constant 0 : index
    %35 = vector.load %arg2[%c0_23, %34, %c0_24, %c0_25] : memref<1x4x4x36xbf16, #tpu.memory_space<vmem>>, vector<1x1x4x36xbf16>
    %36 = vector.shape_cast %35 : vector<1x1x4x36xbf16> to vector<4x36xbf16>
    %cst_26 = arith.constant 0.000000e+00 : bf16
    %37 = vector.broadcast %cst_26 : bf16 to vector<4x36xbf16>
    %38 = arith.select %33, %36, %37 : vector<4x36xbf16>
    %39 = tpu.concatenate %12, %25, %38 in 0 : vector<4x36xbf16>, vector<4x36xbf16>, vector<4x36xbf16> -> vector<12x36xbf16>
    %cst_27 = arith.constant 0.000000e+00 : f32
    %40 = vector.broadcast %cst_27 : f32 to vector<8x22xf32>
    %c0_28 = arith.constant 0 : index
    %c0_29 = arith.constant 0 : index
    %c0_30 = arith.constant 0 : index
    %41 = vector.load %arg3[%c0_28, %c0_29, %c0_30] : memref<9x8x12xbf16, #tpu.memory_space<vmem>>, vector<1x8x12xbf16>
    %42 = vector.shape_cast %41 : vector<1x8x12xbf16> to vector<8x12xbf16>
    %43 = vector.extract_strided_slice %39 {offsets = [0, 0], sizes = [12, 22], strides = [1, 1]} : vector<12x36xbf16> to vector<12x22xbf16>
    %cst_31 = arith.constant dense<0.000000e+00> : vector<8x22xf32>
    %44 = tpu.matmul %42, %43, %cst_31 {dimension_numbers = #tpu.dot_dimension_numbers<[1], [0], [0], [1], [0, 0, 1, 1], [], []>} : vector<8x12xbf16>, vector<12x22xbf16>, vector<8x22xf32> -> vector<8x22xf32>
    %45 = arith.addf %40, %44 : vector<8x22xf32>
    %c1 = arith.constant 1 : index
    %c0_32 = arith.constant 0 : index
    %c0_33 = arith.constant 0 : index
    %46 = vector.load %arg3[%c1, %c0_32, %c0_33] : memref<9x8x12xbf16, #tpu.memory_space<vmem>>, vector<1x8x12xbf16>
    %47 = vector.shape_cast %46 : vector<1x8x12xbf16> to vector<8x12xbf16>
    %48 = vector.extract_strided_slice %39 {offsets = [0, 1], sizes = [12, 22], strides = [1, 1]} : vector<12x36xbf16> to vector<12x22xbf16>
    %cst_34 = arith.constant dense<0.000000e+00> : vector<8x22xf32>
    %49 = tpu.matmul %47, %48, %cst_34 {dimension_numbers = #tpu.dot_dimension_numbers<[1], [0], [0], [1], [0, 0, 1, 1], [], []>} : vector<8x12xbf16>, vector<12x22xbf16>, vector<8x22xf32> -> vector<8x22xf32>
    %50 = arith.addf %45, %49 : vector<8x22xf32>
    %c2 = arith.constant 2 : index
    %c0_35 = arith.constant 0 : index
    %c0_36 = arith.constant 0 : index
    %51 = vector.load %arg3[%c2, %c0_35, %c0_36] : memref<9x8x12xbf16, #tpu.memory_space<vmem>>, vector<1x8x12xbf16>
    %52 = vector.shape_cast %51 : vector<1x8x12xbf16> to vector<8x12xbf16>
    %53 = vector.extract_strided_slice %39 {offsets = [0, 2], sizes = [12, 22], strides = [1, 1]} : vector<12x36xbf16> to vector<12x22xbf16>
    %cst_37 = arith.constant dense<0.000000e+00> : vector<8x22xf32>
    %54 = tpu.matmul %52, %53, %cst_37 {dimension_numbers = #tpu.dot_dimension_numbers<[1], [0], [0], [1], [0, 0, 1, 1], [], []>} : vector<8x12xbf16>, vector<12x22xbf16>, vector<8x22xf32> -> vector<8x22xf32>
    %55 = arith.addf %50, %54 : vector<8x22xf32>
    %c3 = arith.constant 3 : index
    %c0_38 = arith.constant 0 : index
    %c0_39 = arith.constant 0 : index
    %56 = vector.load %arg3[%c3, %c0_38, %c0_39] : memref<9x8x12xbf16, #tpu.memory_space<vmem>>, vector<1x8x12xbf16>
    %57 = vector.shape_cast %56 : vector<1x8x12xbf16> to vector<8x12xbf16>
    %58 = vector.extract_strided_slice %39 {offsets = [0, 6], sizes = [12, 22], strides = [1, 1]} : vector<12x36xbf16> to vector<12x22xbf16>
    %cst_40 = arith.constant dense<0.000000e+00> : vector<8x22xf32>
    %59 = tpu.matmul %57, %58, %cst_40 {dimension_numbers = #tpu.dot_dimension_numbers<[1], [0], [0], [1], [0, 0, 1, 1], [], []>} : vector<8x12xbf16>, vector<12x22xbf16>, vector<8x22xf32> -> vector<8x22xf32>
    %60 = arith.addf %55, %59 : vector<8x22xf32>
    %c4 = arith.constant 4 : index
    %c0_41 = arith.constant 0 : index
    %c0_42 = arith.constant 0 : index
    %61 = vector.load %arg3[%c4, %c0_41, %c0_42] : memref<9x8x12xbf16, #tpu.memory_space<vmem>>, vector<1x8x12xbf16>
    %62 = vector.shape_cast %61 : vector<1x8x12xbf16> to vector<8x12xbf16>
    %63 = vector.extract_strided_slice %39 {offsets = [0, 7], sizes = [12, 22], strides = [1, 1]} : vector<12x36xbf16> to vector<12x22xbf16>
    %cst_43 = arith.constant dense<0.000000e+00> : vector<8x22xf32>
    %64 = tpu.matmul %62, %63, %cst_43 {dimension_numbers = #tpu.dot_dimension_numbers<[1], [0], [0], [1], [0, 0, 1, 1], [], []>} : vector<8x12xbf16>, vector<12x22xbf16>, vector<8x22xf32> -> vector<8x22xf32>
    %65 = arith.addf %60, %64 : vector<8x22xf32>
    %c5 = arith.constant 5 : index
    %c0_44 = arith.constant 0 : index
    %c0_45 = arith.constant 0 : index
    %66 = vector.load %arg3[%c5, %c0_44, %c0_45] : memref<9x8x12xbf16, #tpu.memory_space<vmem>>, vector<1x8x12xbf16>
    %67 = vector.shape_cast %66 : vector<1x8x12xbf16> to vector<8x12xbf16>
    %68 = vector.extract_strided_slice %39 {offsets = [0, 8], sizes = [12, 22], strides = [1, 1]} : vector<12x36xbf16> to vector<12x22xbf16>
    %cst_46 = arith.constant dense<0.000000e+00> : vector<8x22xf32>
    %69 = tpu.matmul %67, %68, %cst_46 {dimension_numbers = #tpu.dot_dimension_numbers<[1], [0], [0], [1], [0, 0, 1, 1], [], []>} : vector<8x12xbf16>, vector<12x22xbf16>, vector<8x22xf32> -> vector<8x22xf32>
    %70 = arith.addf %65, %69 : vector<8x22xf32>
    %c6 = arith.constant 6 : index
    %c0_47 = arith.constant 0 : index
    %c0_48 = arith.constant 0 : index
    %71 = vector.load %arg3[%c6, %c0_47, %c0_48] : memref<9x8x12xbf16, #tpu.memory_space<vmem>>, vector<1x8x12xbf16>
    %72 = vector.shape_cast %71 : vector<1x8x12xbf16> to vector<8x12xbf16>
    %73 = vector.extract_strided_slice %39 {offsets = [0, 12], sizes = [12, 22], strides = [1, 1]} : vector<12x36xbf16> to vector<12x22xbf16>
    %cst_49 = arith.constant dense<0.000000e+00> : vector<8x22xf32>
    %74 = tpu.matmul %72, %73, %cst_49 {dimension_numbers = #tpu.dot_dimension_numbers<[1], [0], [0], [1], [0, 0, 1, 1], [], []>} : vector<8x12xbf16>, vector<12x22xbf16>, vector<8x22xf32> -> vector<8x22xf32>
    %75 = arith.addf %70, %74 : vector<8x22xf32>
    %c7 = arith.constant 7 : index
    %c0_50 = arith.constant 0 : index
    %c0_51 = arith.constant 0 : index
    %76 = vector.load %arg3[%c7, %c0_50, %c0_51] : memref<9x8x12xbf16, #tpu.memory_space<vmem>>, vector<1x8x12xbf16>
    %77 = vector.shape_cast %76 : vector<1x8x12xbf16> to vector<8x12xbf16>
    %78 = vector.extract_strided_slice %39 {offsets = [0, 13], sizes = [12, 22], strides = [1, 1]} : vector<12x36xbf16> to vector<12x22xbf16>
    %cst_52 = arith.constant dense<0.000000e+00> : vector<8x22xf32>
    %79 = tpu.matmul %77, %78, %cst_52 {dimension_numbers = #tpu.dot_dimension_numbers<[1], [0], [0], [1], [0, 0, 1, 1], [], []>} : vector<8x12xbf16>, vector<12x22xbf16>, vector<8x22xf32> -> vector<8x22xf32>
    %80 = arith.addf %75, %79 : vector<8x22xf32>
    %c8 = arith.constant 8 : index
    %c0_53 = arith.constant 0 : index
    %c0_54 = arith.constant 0 : index
    %81 = vector.load %arg3[%c8, %c0_53, %c0_54] : memref<9x8x12xbf16, #tpu.memory_space<vmem>>, vector<1x8x12xbf16>
    %82 = vector.shape_cast %81 : vector<1x8x12xbf16> to vector<8x12xbf16>
    %83 = vector.extract_strided_slice %39 {offsets = [0, 14], sizes = [12, 22], strides = [1, 1]} : vector<12x36xbf16> to vector<12x22xbf16>
    %cst_55 = arith.constant dense<0.000000e+00> : vector<8x22xf32>
    %84 = tpu.matmul %82, %83, %cst_55 {dimension_numbers = #tpu.dot_dimension_numbers<[1], [0], [0], [1], [0, 0, 1, 1], [], []>} : vector<8x12xbf16>, vector<12x22xbf16>, vector<8x22xf32> -> vector<8x22xf32>
    %85 = arith.addf %80, %84 : vector<8x22xf32>
    %c0_56 = arith.constant 0 : index
    %c0_57 = arith.constant 0 : index
    %86 = vector.load %arg4[%c0_56, %c0_57] : memref<8x1xf32, #tpu.memory_space<vmem>>, vector<8x1xf32>
    %87 = vector.broadcast %86 : vector<8x1xf32> to vector<8x22xf32>
    %88 = arith.addf %85, %87 : vector<8x22xf32>
    %cst_58 = arith.constant 0.000000e+00 : f32
    %89 = vector.broadcast %cst_58 : f32 to vector<8x22xf32>
    %90 = arith.cmpf oge, %88, %89 : vector<8x22xf32>
    %cst_59 = arith.constant 0.00999999977 : f32
    %91 = vector.broadcast %cst_59 : f32 to vector<8x22xf32>
    %92 = arith.mulf %91, %88 : vector<8x22xf32>
    %93 = arith.select %90, %88, %92 : vector<8x22xi1>, vector<8x22xf32>
    %c0_60 = arith.constant 0 : index
    %c0_61 = arith.constant 0 : index
    %94 = vector.load %arg5[%c0_60, %c0_61] : memref<1x22xf32, #tpu.memory_space<vmem>>, vector<1x22xf32>
    %95 = vector.broadcast %94 : vector<1x22xf32> to vector<8x22xf32>
    %96 = arith.mulf %93, %95 : vector<8x22xf32>
    %cst_62 = arith.constant 0.000000e+00 : f32
    %97 = vector.broadcast %cst_62 : f32 to vector<8x7xf32>
    %cst_63 = arith.constant 0.000000e+00 : f32
    %98 = vector.broadcast %cst_63 : f32 to vector<8x7xf32>
    %99 = tpu.concatenate %97, %96, %98 in 1 : vector<8x7xf32>, vector<8x22xf32>, vector<8x7xf32> -> vector<8x36xf32>
    %100 = arith.truncf %99 : vector<8x36xf32> to vector<8x36xbf16>
    %c0_64 = arith.constant 0 : index
    %c0_65 = arith.constant 0 : index
    %c0_66 = arith.constant 0 : index
    %c0_67 = arith.constant 0 : index
    %101 = vector.load %arg6[%c0_64, %c0_65, %c0_66, %c0_67] : memref<1x1x8x36xbf16, #tpu.memory_space<vmem>>, vector<1x1x8x36xbf16>
    %102 = vector.shape_cast %101 : vector<1x1x8x36xbf16> to vector<8x36xbf16>
    %103 = vector.shape_cast %100 : vector<8x36xbf16> to vector<1x1x8x36xbf16>
    tpu.vector_store %arg6[%c0_64, %c0_65, %c0_66, %c0_67], %103 {strides = array<i32>} : memref<1x1x8x36xbf16, #tpu.memory_space<vmem>>, vector<1x1x8x36xbf16>,
    return
  }
  func.func @transform_0(%arg0: i32, %arg1: i32) -> (i32, i32, i32, i32) {
    %c0_i32 = arith.constant 0 : i32
    %c0_i32_0 = arith.constant 0 : i32
    %c0_i32_1 = arith.constant 0 : i32
    %c0_i32_2 = arith.constant 0 : i32
    return %arg0, %c0_i32, %c0_i32_0, %c0_i32_1 : i32, i32, i32, i32
  }
  func.func @transform_1(%arg0: i32, %arg1: i32) -> (i32, i32, i32) {
    %c0_i32 = arith.constant 0 : i32
    %c0_i32_0 = arith.constant 0 : i32
    %c0_i32_1 = arith.constant 0 : i32
    %c0_i32_2 = arith.constant 0 : i32
    return %c0_i32, %c0_i32_0, %c0_i32_1 : i32, i32, i32
  }
  func.func @transform_2(%arg0: i32, %arg1: i32) -> (i32, i32) {
    %c0_i32 = arith.constant 0 : i32
    %c0_i32_0 = arith.constant 0 : i32
    %c0_i32_1 = arith.constant 0 : i32
    return %c0_i32, %c0_i32_0 : i32, i32
  }
  func.func @transform_3(%arg0: i32, %arg1: i32) -> (i32, i32) {
    %c0_i32 = arith.constant 0 : i32
    %c0_i32_0 = arith.constant 0 : i32
    %c0_i32_1 = arith.constant 0 : i32
    return %c0_i32, %c0_i32_0 : i32, i32
  }
  func.func @transform_4(%arg0: i32, %arg1: i32) -> (i32, i32, i32, i32) {
    %c0_i32 = arith.constant 0 : i32
    %c0_i32_0 = arith.constant 0 : i32
    %c0_i32_1 = arith.constant 0 : i32
    return %arg0, %arg1, %c0_i32, %c0_i32_0 : i32, i32, i32, i32
  }
}

module attributes {stable_mosaic.version = 11 : i64} {
  func.func @kernel(%arg0: i32, %arg1: i32, %arg2: memref<1x4x8x36xbf16, #tpu.memory_space<vmem>>, %arg3: memref<9x8x24xbf16, #tpu.memory_space<vmem>>, %arg4: memref<8x1xf32, #tpu.memory_space<vmem>>, %arg5: memref<1x22xf32, #tpu.memory_space<vmem>>, %arg6: memref<1x1x8x36xf32, #tpu.memory_space<vmem>>) attributes {dimension_semantics = [#tpu.dimension_semantics<parallel>, #tpu.dimension_semantics<parallel>], iteration_bounds = array<i64: 2, 4>, scalar_prefetch = 0 : i64, scratch_operands = 0 : i64, tpu.core_type = #tpu.core_type<tc>, window_params = [{transform_indices = @transform_0, window_bounds = array<i64: 1, 4, 8, 36>}, {pipeline_mode = #tpu.pipeline_mode<synchronous>, transform_indices = @transform_1, window_bounds = array<i64: 9, 8, 24>}, {pipeline_mode = #tpu.pipeline_mode<synchronous>, transform_indices = @transform_2, window_bounds = array<i64: 8, 1>}, {pipeline_mode = #tpu.pipeline_mode<synchronous>, transform_indices = @transform_3, window_bounds = array<i64: 1, 22>}, {transform_indices = @transform_4, window_bounds = array<i64: 1, 1, 8, 36>}]} {
    %c-1_i32 = arith.constant -1 : i32
    %0 = arith.addi %arg1, %c-1_i32 : i32
    %c0_i32 = arith.constant 0 : i32
    %c3_i32 = arith.constant 3 : i32
    %1 = arith.maxsi %c0_i32, %0 : i32
    %2 = arith.minsi %c3_i32, %1 : i32
    %c-1_i32_0 = arith.constant -1 : i32
    %3 = arith.addi %arg1, %c-1_i32_0 : i32
    %c0_i32_1 = arith.constant 0 : i32
    %4 = arith.cmpi sge, %3, %c0_i32_1 : i32
    %c-1_i32_2 = arith.constant -1 : i32
    %5 = arith.addi %arg1, %c-1_i32_2 : i32
    %c3_i32_3 = arith.constant 3 : i32
    %6 = arith.cmpi sle, %5, %c3_i32_3 : i32
    %7 = arith.andi %4, %6 : i1
    %c0 = arith.constant 0 : index
    %8 = arith.index_cast %2 : i32 to index
    %c0_4 = arith.constant 0 : index
    %c0_5 = arith.constant 0 : index
    %9 = vector.load %arg2[%c0, %8, %c0_4, %c0_5] : memref<1x4x8x36xbf16, #tpu.memory_space<vmem>>, vector<1x1x8x36xbf16>
    %10 = vector.shape_cast %9 : vector<1x1x8x36xbf16> to vector<8x36xbf16>
    %cst = arith.constant 0.000000e+00 : bf16
    %11 = vector.broadcast %cst : bf16 to vector<8x36xbf16>
    %12 = arith.select %7, %10, %11 : vector<8x36xbf16>
    %c0_i32_6 = arith.constant 0 : i32
    %13 = arith.addi %arg1, %c0_i32_6 : i32
    %c0_i32_7 = arith.constant 0 : i32
    %c3_i32_8 = arith.constant 3 : i32
    %14 = arith.maxsi %c0_i32_7, %13 : i32
    %15 = arith.minsi %c3_i32_8, %14 : i32
    %c0_i32_9 = arith.constant 0 : i32
    %16 = arith.addi %arg1, %c0_i32_9 : i32
    %c0_i32_10 = arith.constant 0 : i32
    %17 = arith.cmpi sge, %16, %c0_i32_10 : i32
    %c0_i32_11 = arith.constant 0 : i32
    %18 = arith.addi %arg1, %c0_i32_11 : i32
    %c3_i32_12 = arith.constant 3 : i32
    %19 = arith.cmpi sle, %18, %c3_i32_12 : i32
    %20 = arith.andi %17, %19 : i1
    %c0_13 = arith.constant 0 : index
    %21 = arith.index_cast %15 : i32 to index
    %c0_14 = arith.constant 0 : index
    %c0_15 = arith.constant 0 : index
    %22 = vector.load %arg2[%c0_13, %21, %c0_14, %c0_15] : memref<1x4x8x36xbf16, #tpu.memory_space<vmem>>, vector<1x1x8x36xbf16>
    %23 = vector.shape_cast %22 : vector<1x1x8x36xbf16> to vector<8x36xbf16>
    %cst_16 = arith.constant 0.000000e+00 : bf16
    %24 = vector.broadcast %cst_16 : bf16 to vector<8x36xbf16>
    %25 = arith.select %20, %23, %24 : vector<8x36xbf16>
    %c1_i32 = arith.constant 1 : i32
    %26 = arith.addi %arg1, %c1_i32 : i32
    %c0_i32_17 = arith.constant 0 : i32
    %c3_i32_18 = arith.constant 3 : i32
    %27 = arith.maxsi %c0_i32_17, %26 : i32
    %28 = arith.minsi %c3_i32_18, %27 : i32
    %c1_i32_19 = arith.constant 1 : i32
    %29 = arith.addi %arg1, %c1_i32_19 : i32
    %c0_i32_20 = arith.constant 0 : i32
    %30 = arith.cmpi sge, %29, %c0_i32_20 : i32
    %c1_i32_21 = arith.constant 1 : i32
    %31 = arith.addi %arg1, %c1_i32_21 : i32
    %c3_i32_22 = arith.constant 3 : i32
    %32 = arith.cmpi sle, %31, %c3_i32_22 : i32
    %33 = arith.andi %30, %32 : i1
    %c0_23 = arith.constant 0 : index
    %34 = arith.index_cast %28 : i32 to index
    %c0_24 = arith.constant 0 : index
    %c0_25 = arith.constant 0 : index
    %35 = vector.load %arg2[%c0_23, %34, %c0_24, %c0_25] : memref<1x4x8x36xbf16, #tpu.memory_space<vmem>>, vector<1x1x8x36xbf16>
    %36 = vector.shape_cast %35 : vector<1x1x8x36xbf16> to vector<8x36xbf16>
    %cst_26 = arith.constant 0.000000e+00 : bf16
    %37 = vector.broadcast %cst_26 : bf16 to vector<8x36xbf16>
    %38 = arith.select %33, %36, %37 : vector<8x36xbf16>
    %39 = tpu.concatenate %12, %25, %38 in 0 : vector<8x36xbf16>, vector<8x36xbf16>, vector<8x36xbf16> -> vector<24x36xbf16>
    %cst_27 = arith.constant 0.000000e+00 : f32
    %40 = vector.broadcast %cst_27 : f32 to vector<8x22xf32>
    %c0_28 = arith.constant 0 : index
    %c0_29 = arith.constant 0 : index
    %c0_30 = arith.constant 0 : index
    %41 = vector.load %arg3[%c0_28, %c0_29, %c0_30] : memref<9x8x24xbf16, #tpu.memory_space<vmem>>, vector<1x8x24xbf16>
    %42 = vector.shape_cast %41 : vector<1x8x24xbf16> to vector<8x24xbf16>
    %43 = vector.extract_strided_slice %39 {offsets = [0, 0], sizes = [24, 22], strides = [1, 1]} : vector<24x36xbf16> to vector<24x22xbf16>
    %cst_31 = arith.constant dense<0.000000e+00> : vector<8x22xf32>
    %44 = tpu.matmul %42, %43, %cst_31 {dimension_numbers = #tpu.dot_dimension_numbers<[1], [0], [0], [1], [0, 0, 1, 1], [], []>} : vector<8x24xbf16>, vector<24x22xbf16>, vector<8x22xf32> -> vector<8x22xf32>
    %45 = arith.addf %40, %44 : vector<8x22xf32>
    %c1 = arith.constant 1 : index
    %c0_32 = arith.constant 0 : index
    %c0_33 = arith.constant 0 : index
    %46 = vector.load %arg3[%c1, %c0_32, %c0_33] : memref<9x8x24xbf16, #tpu.memory_space<vmem>>, vector<1x8x24xbf16>
    %47 = vector.shape_cast %46 : vector<1x8x24xbf16> to vector<8x24xbf16>
    %48 = vector.extract_strided_slice %39 {offsets = [0, 1], sizes = [24, 22], strides = [1, 1]} : vector<24x36xbf16> to vector<24x22xbf16>
    %cst_34 = arith.constant dense<0.000000e+00> : vector<8x22xf32>
    %49 = tpu.matmul %47, %48, %cst_34 {dimension_numbers = #tpu.dot_dimension_numbers<[1], [0], [0], [1], [0, 0, 1, 1], [], []>} : vector<8x24xbf16>, vector<24x22xbf16>, vector<8x22xf32> -> vector<8x22xf32>
    %50 = arith.addf %45, %49 : vector<8x22xf32>
    %c2 = arith.constant 2 : index
    %c0_35 = arith.constant 0 : index
    %c0_36 = arith.constant 0 : index
    %51 = vector.load %arg3[%c2, %c0_35, %c0_36] : memref<9x8x24xbf16, #tpu.memory_space<vmem>>, vector<1x8x24xbf16>
    %52 = vector.shape_cast %51 : vector<1x8x24xbf16> to vector<8x24xbf16>
    %53 = vector.extract_strided_slice %39 {offsets = [0, 2], sizes = [24, 22], strides = [1, 1]} : vector<24x36xbf16> to vector<24x22xbf16>
    %cst_37 = arith.constant dense<0.000000e+00> : vector<8x22xf32>
    %54 = tpu.matmul %52, %53, %cst_37 {dimension_numbers = #tpu.dot_dimension_numbers<[1], [0], [0], [1], [0, 0, 1, 1], [], []>} : vector<8x24xbf16>, vector<24x22xbf16>, vector<8x22xf32> -> vector<8x22xf32>
    %55 = arith.addf %50, %54 : vector<8x22xf32>
    %c3 = arith.constant 3 : index
    %c0_38 = arith.constant 0 : index
    %c0_39 = arith.constant 0 : index
    %56 = vector.load %arg3[%c3, %c0_38, %c0_39] : memref<9x8x24xbf16, #tpu.memory_space<vmem>>, vector<1x8x24xbf16>
    %57 = vector.shape_cast %56 : vector<1x8x24xbf16> to vector<8x24xbf16>
    %58 = vector.extract_strided_slice %39 {offsets = [0, 6], sizes = [24, 22], strides = [1, 1]} : vector<24x36xbf16> to vector<24x22xbf16>
    %cst_40 = arith.constant dense<0.000000e+00> : vector<8x22xf32>
    %59 = tpu.matmul %57, %58, %cst_40 {dimension_numbers = #tpu.dot_dimension_numbers<[1], [0], [0], [1], [0, 0, 1, 1], [], []>} : vector<8x24xbf16>, vector<24x22xbf16>, vector<8x22xf32> -> vector<8x22xf32>
    %60 = arith.addf %55, %59 : vector<8x22xf32>
    %c4 = arith.constant 4 : index
    %c0_41 = arith.constant 0 : index
    %c0_42 = arith.constant 0 : index
    %61 = vector.load %arg3[%c4, %c0_41, %c0_42] : memref<9x8x24xbf16, #tpu.memory_space<vmem>>, vector<1x8x24xbf16>
    %62 = vector.shape_cast %61 : vector<1x8x24xbf16> to vector<8x24xbf16>
    %63 = vector.extract_strided_slice %39 {offsets = [0, 7], sizes = [24, 22], strides = [1, 1]} : vector<24x36xbf16> to vector<24x22xbf16>
    %cst_43 = arith.constant dense<0.000000e+00> : vector<8x22xf32>
    %64 = tpu.matmul %62, %63, %cst_43 {dimension_numbers = #tpu.dot_dimension_numbers<[1], [0], [0], [1], [0, 0, 1, 1], [], []>} : vector<8x24xbf16>, vector<24x22xbf16>, vector<8x22xf32> -> vector<8x22xf32>
    %65 = arith.addf %60, %64 : vector<8x22xf32>
    %c5 = arith.constant 5 : index
    %c0_44 = arith.constant 0 : index
    %c0_45 = arith.constant 0 : index
    %66 = vector.load %arg3[%c5, %c0_44, %c0_45] : memref<9x8x24xbf16, #tpu.memory_space<vmem>>, vector<1x8x24xbf16>
    %67 = vector.shape_cast %66 : vector<1x8x24xbf16> to vector<8x24xbf16>
    %68 = vector.extract_strided_slice %39 {offsets = [0, 8], sizes = [24, 22], strides = [1, 1]} : vector<24x36xbf16> to vector<24x22xbf16>
    %cst_46 = arith.constant dense<0.000000e+00> : vector<8x22xf32>
    %69 = tpu.matmul %67, %68, %cst_46 {dimension_numbers = #tpu.dot_dimension_numbers<[1], [0], [0], [1], [0, 0, 1, 1], [], []>} : vector<8x24xbf16>, vector<24x22xbf16>, vector<8x22xf32> -> vector<8x22xf32>
    %70 = arith.addf %65, %69 : vector<8x22xf32>
    %c6 = arith.constant 6 : index
    %c0_47 = arith.constant 0 : index
    %c0_48 = arith.constant 0 : index
    %71 = vector.load %arg3[%c6, %c0_47, %c0_48] : memref<9x8x24xbf16, #tpu.memory_space<vmem>>, vector<1x8x24xbf16>
    %72 = vector.shape_cast %71 : vector<1x8x24xbf16> to vector<8x24xbf16>
    %73 = vector.extract_strided_slice %39 {offsets = [0, 12], sizes = [24, 22], strides = [1, 1]} : vector<24x36xbf16> to vector<24x22xbf16>
    %cst_49 = arith.constant dense<0.000000e+00> : vector<8x22xf32>
    %74 = tpu.matmul %72, %73, %cst_49 {dimension_numbers = #tpu.dot_dimension_numbers<[1], [0], [0], [1], [0, 0, 1, 1], [], []>} : vector<8x24xbf16>, vector<24x22xbf16>, vector<8x22xf32> -> vector<8x22xf32>
    %75 = arith.addf %70, %74 : vector<8x22xf32>
    %c7 = arith.constant 7 : index
    %c0_50 = arith.constant 0 : index
    %c0_51 = arith.constant 0 : index
    %76 = vector.load %arg3[%c7, %c0_50, %c0_51] : memref<9x8x24xbf16, #tpu.memory_space<vmem>>, vector<1x8x24xbf16>
    %77 = vector.shape_cast %76 : vector<1x8x24xbf16> to vector<8x24xbf16>
    %78 = vector.extract_strided_slice %39 {offsets = [0, 13], sizes = [24, 22], strides = [1, 1]} : vector<24x36xbf16> to vector<24x22xbf16>
    %cst_52 = arith.constant dense<0.000000e+00> : vector<8x22xf32>
    %79 = tpu.matmul %77, %78, %cst_52 {dimension_numbers = #tpu.dot_dimension_numbers<[1], [0], [0], [1], [0, 0, 1, 1], [], []>} : vector<8x24xbf16>, vector<24x22xbf16>, vector<8x22xf32> -> vector<8x22xf32>
    %80 = arith.addf %75, %79 : vector<8x22xf32>
    %c8 = arith.constant 8 : index
    %c0_53 = arith.constant 0 : index
    %c0_54 = arith.constant 0 : index
    %81 = vector.load %arg3[%c8, %c0_53, %c0_54] : memref<9x8x24xbf16, #tpu.memory_space<vmem>>, vector<1x8x24xbf16>
    %82 = vector.shape_cast %81 : vector<1x8x24xbf16> to vector<8x24xbf16>
    %83 = vector.extract_strided_slice %39 {offsets = [0, 14], sizes = [24, 22], strides = [1, 1]} : vector<24x36xbf16> to vector<24x22xbf16>
    %cst_55 = arith.constant dense<0.000000e+00> : vector<8x22xf32>
    %84 = tpu.matmul %82, %83, %cst_55 {dimension_numbers = #tpu.dot_dimension_numbers<[1], [0], [0], [1], [0, 0, 1, 1], [], []>} : vector<8x24xbf16>, vector<24x22xbf16>, vector<8x22xf32> -> vector<8x22xf32>
    %85 = arith.addf %80, %84 : vector<8x22xf32>
    %c0_56 = arith.constant 0 : index
    %c0_57 = arith.constant 0 : index
    %86 = vector.load %arg4[%c0_56, %c0_57] : memref<8x1xf32, #tpu.memory_space<vmem>>, vector<8x1xf32>
    %87 = vector.broadcast %86 : vector<8x1xf32> to vector<8x22xf32>
    %88 = arith.addf %85, %87 : vector<8x22xf32>
    %cst_58 = arith.constant 0.000000e+00 : f32
    %89 = vector.broadcast %cst_58 : f32 to vector<8x22xf32>
    %90 = arith.cmpf oge, %88, %89 : vector<8x22xf32>
    %cst_59 = arith.constant 0.00999999977 : f32
    %91 = vector.broadcast %cst_59 : f32 to vector<8x22xf32>
    %92 = arith.mulf %91, %88 : vector<8x22xf32>
    %93 = arith.select %90, %88, %92 : vector<8x22xi1>, vector<8x22xf32>
    %c0_60 = arith.constant 0 : index
    %c0_61 = arith.constant 0 : index
    %94 = vector.load %arg5[%c0_60, %c0_61] : memref<1x22xf32, #tpu.memory_space<vmem>>, vector<1x22xf32>
    %95 = vector.broadcast %94 : vector<1x22xf32> to vector<8x22xf32>
    %96 = arith.mulf %93, %95 : vector<8x22xf32>
    %cst_62 = arith.constant 0.000000e+00 : f32
    %97 = vector.broadcast %cst_62 : f32 to vector<8x7xf32>
    %cst_63 = arith.constant 0.000000e+00 : f32
    %98 = vector.broadcast %cst_63 : f32 to vector<8x7xf32>
    %99 = tpu.concatenate %97, %96, %98 in 1 : vector<8x7xf32>, vector<8x22xf32>, vector<8x7xf32> -> vector<8x36xf32>
    %c0_64 = arith.constant 0 : index
    %c0_65 = arith.constant 0 : index
    %c0_66 = arith.constant 0 : index
    %c0_67 = arith.constant 0 : index
    %100 = vector.load %arg6[%c0_64, %c0_65, %c0_66, %c0_67] : memref<1x1x8x36xf32, #tpu.memory_space<vmem>>, vector<1x1x8x36xf32>
    %101 = vector.shape_cast %100 : vector<1x1x8x36xf32> to vector<8x36xf32>
    %102 = vector.shape_cast %99 : vector<8x36xf32> to vector<1x1x8x36xf32>
    tpu.vector_store %arg6[%c0_64, %c0_65, %c0_66, %c0_67], %102 {strides = array<i32>} : memref<1x1x8x36xf32, #tpu.memory_space<vmem>>, vector<1x1x8x36xf32>,
    return
  }
  func.func @transform_0(%arg0: i32, %arg1: i32) -> (i32, i32, i32, i32) {
    %c0_i32 = arith.constant 0 : i32
    %c0_i32_0 = arith.constant 0 : i32
    %c0_i32_1 = arith.constant 0 : i32
    %c0_i32_2 = arith.constant 0 : i32
    return %arg0, %c0_i32, %c0_i32_0, %c0_i32_1 : i32, i32, i32, i32
  }
  func.func @transform_1(%arg0: i32, %arg1: i32) -> (i32, i32, i32) {
    %c0_i32 = arith.constant 0 : i32
    %c0_i32_0 = arith.constant 0 : i32
    %c0_i32_1 = arith.constant 0 : i32
    %c0_i32_2 = arith.constant 0 : i32
    return %c0_i32, %c0_i32_0, %c0_i32_1 : i32, i32, i32
  }
  func.func @transform_2(%arg0: i32, %arg1: i32) -> (i32, i32) {
    %c0_i32 = arith.constant 0 : i32
    %c0_i32_0 = arith.constant 0 : i32
    %c0_i32_1 = arith.constant 0 : i32
    return %c0_i32, %c0_i32_0 : i32, i32
  }
  func.func @transform_3(%arg0: i32, %arg1: i32) -> (i32, i32) {
    %c0_i32 = arith.constant 0 : i32
    %c0_i32_0 = arith.constant 0 : i32
    %c0_i32_1 = arith.constant 0 : i32
    return %c0_i32, %c0_i32_0 : i32, i32
  }
  func.func @transform_4(%arg0: i32, %arg1: i32) -> (i32, i32, i32, i32) {
    %c0_i32 = arith.constant 0 : i32
    %c0_i32_0 = arith.constant 0 : i32
    %c0_i32_1 = arith.constant 0 : i32
    return %arg0, %arg1, %c0_i32, %c0_i32_0 : i32, i32, i32, i32
  }
}

</mosaic_0001>

<bundles_post_ra>
// kernel: downblock_forward.5
= control target key start
LH: loop header
LB: loop body
LE: loop exit
PB: predicated region body
PF: predicated region fallthrough
CT: control target
= control target key end

     0   :  { %s807_s15 = smov 0   ;;  %s809_s16 = smov 0   ;;  %s935_s0 = inlined_call_operand.vmem [shape: bf16[2,4,8,36], index: 0, kind: input, shape index: {}]   ;;  %s936_s1 = inlined_call_operand.vmem [shape: bf16[9,8,24], index: 1, kind: input, shape index: {}]   ;;  %s937_s2 = inlined_call_operand.vmem [shape: f32[8,1], index: 2, kind: input, shape index: {}]   ;;  %s938_s3 = inlined_call_operand.vmem [shape: f32[1,22], index: 3, kind: input, shape index: {}]   ;;  %s939_s4 = inlined_call_operand.vmem [shape: f32[2,4,8,36], index: 4, kind: output, shape index: {}]  }
   0x1   :  { %s811_s17 = smov 0   ;;  %s813_s18 = smov 0  }
   0x2   :  { %s815_s19 = smov 0  }
   0x3 LB: > { %s23_s20 = sadd.s32 1, %s762_s17  ;;  %s26_s21 = sadd.s32 1, %s766_s18  ;;  %s770_s19 = sphi %s815_s19, %s14_s19   ;;  %s766_s18 = sphi %s813_s18, %s943_s18   ;;  %s762_s17 = sphi %s811_s17, %s942_s17   ;;  %s758_s16 = sphi %s809_s16, %s941_s16   ;;  %s754_s15 = sphi %s807_s15, %s940_s15  }
   0x4   : > { %p24_p0 = scmp.ge.s32.totalorder %s23_s20, 4  ;;  %p627_p1 = scmp.ge.s32.totalorder %s770_s19, 1 }
   0x5   : > { %p176_p2 = scmp.lt.s32.totalorder %s770_s19, 9 }
   0x6   : > { %s945_s20 = smov (%p24_p0, %s23_s20), 0  ;;  %s947_s21 = smov (!%p24_p0, %s26_s21), %s766_s18 }
   0x7   : > { %p177_p3 = pnand %p627_p1, %p176_p2  ;;  %p28_p4 = scmp.ge.s32.totalorder %s947_s21, 2 }
   0x8   : > { %p205_p5 = scmp.lt.s32.totalorder (!%p177_p3), %s758_s16, 1  ;;  %p212_p6 = scmp.lt.s32.totalorder (!%p177_p3), %s754_s15, 3 }
   0x9   : > { %s949_s21 = smov (%p28_p4, %s947_s21), 0  ;;  %180 = sbr.rel (%p177_p3) target bundleno = 419 (0x1a3), region = 36 }
   0xa   : > { %p235_p7 = scmp.gt.s32.totalorder (!%p177_p3), %s754_s15, 0  ;;  %s250_s22 = sadd.s32 (!%p177_p3), 1, %s754_s15 }
   0xb   : > { %p251_p8 = scmp.gt.s32.totalorder (!%p177_p3), %s250_s22, 0  ;;  %p646_p9 = scmp.lt.s32.totalorder (!%p177_p3), %s250_s22, 3 }
   0xc   : > { %p255_p10 = scmp.ge.s32.totalorder (!%p177_p3), %s250_s22, 0  ;;  %p256_p11 = scmp.le.s32.totalorder (!%p177_p3), %s250_s22, 3 }
   0xd   : > { %s219_s8 = sadd.s32 (!%p177_p3), 4294967295, %s754_s15  ;;  %p239_p13 = scmp.ge.s32.totalorder (!%p177_p3), %s754_s15, 0 }
   0xe   : > { %s951_s16 = smov (!%p205_p5, %s758_s16), 1  ;;  %p257_p12 = pnand %p256_p11, %p255_p10  ;;  %vm269_vm3 = vcmask 1043456   ;;  %vm284_vm4 = vcmask 195584   ;;  %v274_v13 = vld [vmem:[%s936_s1] sm:$0xf]  ;;  %v780_v31 = vmov 0  }
   0xf   : > { %s236_s23 = scalar_select %p235_p7, %s754_s15, 0  ;;  %v656_v20 = vld [vmem:[%s936_s1 + $0x8] sm:$0xf]  ;;  %v658_v25 = vld [vmem:[%s936_s1 + $0xc] sm:$0xf]  ;;  %v512_v30 = vld [vmem:[%s937_s2] sm:$0xff]  ;;  %729 = vset.pattern.permute.xlu1 %v780_v31  ;;  %730 = vset.pattern.permute.xlu0 %v780_v31 }
  0x10   : > { %s672_s24 = sshll.u32 %s951_s16, 4  ;;  %p220_p0 = scmp.gt.s32.totalorder %s219_s8, 0  ;;  %v653_v28 = vld [vmem:[%s936_s1 + $0x4] sm:$0xf]  ;;  %v664_v32 = vld [vmem:[%s936_s1 + $0x18] sm:$0xf] }
  0x11   : > { %s953_s23 = smov (!%p212_p6, %s236_s23), 3  ;;  %s851_s28 = scalar_lea.vmem %s935_s0, %s672_s24  ;;  %v660_v41 = vld [vmem:[%s936_s1 + $0x10] sm:$0xf]  ;;  %v662_v43 = vld [vmem:[%s936_s1 + $0x14] sm:$0xf]  ;;  %vm531_vm6 = vcmask 56320  }
  0x12   : > { %s252_s25 = scalar_select %p251_p8, %s250_s22, 0  ;;  %v666_v45 = vld [vmem:[%s936_s1 + $0x1c] sm:$0xf]  ;;  %v668_v47 = vld [vmem:[%s936_s1 + $0x20] sm:$0xf]  ;;  %vm533_vm7 = vcmask 236544  }
  0x13   : > { %s644_s29 = sshll.u32 %s953_s23, 2  ;;  %p632_p1 = scmp.lt.s32.totalorder %s219_s8, 3  ;;  %vm535_vm8 = vcmask 293888  }
  0x14   : > { %s955_s25 = smov (!%p646_p9, %s252_s25), 3  ;;  %s244_s6 = scalar_lea.vmem %s851_s28, %s644_s29 }
  0x15   : > { %s651_s30 = sshll.u32 %s955_s25, 2  ;;  %p224_p2 = scmp.ge.s32.totalorder %s219_s8, 0  ;;  %v245_v4 = vld [vmem:[%s244_s6] sm:$0xf] }
  0x16   : > { %s260_s5 = scalar_lea.vmem %s851_s28, %s651_s30  ;;  %p225_p3 = scmp.le.s32.totalorder %s219_s8, 3 }
  0x17   : > { %s652_s7 = scalar_select %p257_p12, 0, 1  ;;  %v261_v0 = vld [vmem:[%s260_s5] sm:$0xf] }
  0x18   : > { %s957_s8 = smov (!%p220_p0, %s219_s8), 0  ;;  %s772_s9 = smov 126  }
  0x19   : > { %v263_v1 = vstv %s652_s7  ;;  %s773_s10 = smov 127   ;;  %p226_p4 = pnand %p225_p3, %p224_p2 }
  0x1a   : > { %vm264_vm0 = vcmp.eq.s32.totalorder %v263_v1, 1  ;;  %p240_p5 = scmp.le.s32.totalorder %s754_s15, 3  ;;  %s959_s8 = smov (!%p632_p1, %s957_s8), 3 }
  0x1b   : > { %v265_v2 = vsel %vm264_vm0, %v261_v0, 0  ;;  %s638_s11 = scalar_select %p226_p4, 0, 1 }
  0x1c   : > { %327 = vrot.lane.b32.xlu1 %v265_v2, %s772_s9  ;;  %281 = vrot.lane.b32.xlu0 %v265_v2, %s773_s10  ;;  %s637_s12 = sshll.u32 %s959_s8, 2  ;;  %p241_p7 = pnand %p240_p5, %p239_p13  ;;  %v308_v12 = vsel %vm269_vm3, %v265_v2, 0 }
  0x1d   : > { %s229_s13 = scalar_lea.vmem %s851_s28, %s637_s12  ;;  %v232_v3 = vstv %s638_s11  ;;  %s774_s22 = smov 122   ;;  %316 = vmatpush.bf16.msra.mxu1 %v308_v12 }
  0x1e   : > { %s645_s14 = scalar_select %p241_p7, 0, 1  ;;  %v230_v6 = vld [vmem:[%s229_s13] sm:$0xf]  ;;  %vm233_vm1 = vcmp.eq.s32.totalorder %v232_v3, 1 }
  0x1f   : > { %v234_v9 = vsel %vm233_vm1, %v230_v6, 0  ;;  %s775_s23 = smov 121   ;;  %s776_s24 = smov 120  }
  0x20   : > { %v247_v5 = vstv %s645_s14  ;;  %s777_s25 = smov 115   ;;  %s778_s26 = smov 116  }
  0x21   : > { %vm248_vm2 = vcmp.eq.s32.totalorder %v247_v5, 1  ;;  %s779_s27 = smov 114   ;;  %s781_s5 = smov 7  }
  0x22   : > { %v249_v7 = vsel %vm248_vm2, %v245_v4, 0  ;;  %s961_s15 = smov (!%p212_p6, %s754_s15), 3  ;;  %s630_s6 = sshll.u32 %s951_s16, 2 }
  0x23   : > { %v267_v8 = vunpack.c.l.b16 %v249_v7  ;;  %s215_s7 = sadd.s32 %s630_s6, %s961_s15 }
  0x24   : > { %354 = vrot.lane.b32.xlu1 %v265_v2, %s774_s22  ;;  %s631_s8 = sshll.u32 %s215_s7, 3 }
  0x25   : > { %v268_v10 = vpack.c.b16 %v267_v8, %v267_v8  ;;  %s217_s11 = scalar_lea.vmem %s939_s4, %s631_s8 }
  0x27   : > { %v272_v11 = vsel %vm269_vm3, %v234_v9, %v268_v10  ;;  %v731_v10 = vld [vmem:[%s938_s3] ss:$0 sm:$0xff] }
  0x28   : > { %279 = vrot.lane.b32.xlu0 %v272_v11, %s773_s10  ;;  %325 = vrot.lane.b32.xlu2 %v272_v11, %s772_s9 }
  0x29   : > { %317 = vmatpush.bf16.msra.mxu1 %v272_v11 }
  0x2c   : > { %379 = vrot.lane.b32.xlu1 %v272_v11, %s775_s23  ;;  %655 = vmatmul.msk.bf16.vlgmr.msra.gmra.mxu1 %vm284_vm4, %v274_v13 }
  0x30   : > { %381 = vrot.lane.b32.xlu0 %v265_v2, %s775_s23  ;;  %352 = vrot.lane.b32.xlu2 %v272_v11, %s774_s22 }
  0x34   : > { %408 = vrot.lane.b32.xlu1 %v265_v2, %s776_s24 }
  0x38   : > { %462 = vrot.lane.b32.xlu0 %v265_v2, %s777_s25  ;;  %435 = vrot.lane.b32.xlu2 %v265_v2, %s778_s26 }
  0x3c   : > { %406 = vrot.lane.b32.xlu1 %v272_v11, %s776_s24 }
  0x40   : > { %460 = vrot.lane.b32.xlu0 %v272_v11, %s777_s25  ;;  %433 = vrot.lane.b32.xlu2 %v272_v11, %s778_s26 }
  0x44   : > { %515 = vperm.xlu1 %729, %v512_v30  }
  0x48   : > { %487 = vrot.lane.b32.xlu0 %v272_v11, %s779_s27  ;;  %489 = vrot.lane.b32.xlu2 %v265_v2, %s779_s27 }
  0x82   : > { %v326_v14 = vpop.permute.xlu2 %325 }
  0x8a   : > { %v353_v15 = vpop.permute.xlu2 %352 }
  0x8e   : > { %v328_v16 = vpop.permute.xlu1 %327  ;;  %v282_v17 = vpop.permute.xlu0 %281 }
  0x8f   : > { %v289_v18 = vsel %vm269_vm3, %v282_v17, 0  ;;  %v334_v19 = vsel %vm269_vm3, %v328_v16, 0 }
  0x90   : > { %297 = vmatpush.bf16.msra.mxu0 %v289_v18  ;;  %342 = vmatpush.bf16.msra.mxu2 %v334_v19 }
  0x92   : > { %v436_v21 = vpop.permute.xlu2 %435 }
  0x93   : > { %v442_v23 = vsel %vm269_vm3, %v436_v21, 0 }
  0x94   : > { %343 = vmatpush.bf16.msra.mxu2 %v326_v14 }
  0x96   : > { %v355_v22 = vpop.permute.xlu1 %354 }
  0x97   : > { %v361_v24 = vsel %vm269_vm3, %v355_v22, 0  ;;  %657 = vmatmul.msk.bf16.vlgmr.msra.gmra.mxu2 %vm284_vm4, %v656_v20 }
  0x98   : > { %369 = vmatpush.bf16.msra.mxu3 %v361_v24  ;;  %450 = vmatpush.bf16.msrb.mxu2 %v442_v23 }
  0x9a   : > { %v280_v26 = vpop.permute.xlu0 %279  ;;  %v434_v27 = vpop.permute.xlu2 %433 }
  0x9b   : > { %298 = vmatpush.bf16.msra.mxu0 %v280_v26 }
  0x9c   : > { %370 = vmatpush.bf16.msra.mxu3 %v353_v15  ;;  %451 = vmatpush.bf16.msrb.mxu2 %v434_v27 }
  0x9e   : > { %v380_v29 = vpop.permute.xlu1 %379  ;;  %654 = vmatmul.msk.bf16.vlgmr.msra.gmra.mxu0 %vm284_vm4, %v653_v28 }
  0x9f   : > { %659 = vmatmul.msk.bf16.vlgmr.msra.gmra.mxu3 %vm284_vm4, %v658_v25 }
  0xa2   : > { %v382_v33 = vpop.permute.xlu0 %381  ;;  %v490_v36 = vpop.permute.xlu2 %489 }
  0xa3   : > { %v388_v34 = vsel %vm269_vm3, %v382_v33, 0  ;;  %v496_v38 = vsel %vm269_vm3, %v490_v36, 0 }
  0xa4   : > { %396 = vmatpush.bf16.msrb.mxu0 %v388_v34 }
  0xa6   : > { %v409_v35 = vpop.permute.xlu1 %408 }
  0xa7   : > { %v415_v37 = vsel %vm269_vm3, %v409_v35, 0  ;;  %665 = vmatmul.msk.bf16.vlgmr.msrb.gmra.mxu2 %vm284_vm4, %v664_v32 }
  0xa8   : > { %423 = vmatpush.bf16.msrb.mxu1 %v415_v37  ;;  %397 = vmatpush.bf16.msrb.mxu0 %v380_v29 }
  0xa9   : > { %v319_v48 = vpop.f32.mrf.mxu1 }
  0xaa   : > { %v463_v39 = vpop.permute.xlu0 %462 }
  0xab   : > { %v469_v40 = vsel %vm269_vm3, %v463_v39, 0 }
  0xac   : > { %504 = vmatpush.bf16.msra.mxu0 %v496_v38  ;;  %477 = vmatpush.bf16.msrb.mxu3 %v469_v40 }
  0xae   : > { %v407_v42 = vpop.permute.xlu1 %406  ;;  %661 = vmatmul.msk.bf16.vlgmr.msrb.gmra.mxu0 %vm284_vm4, %v660_v41 }
  0xaf   : > { %424 = vmatpush.bf16.msrb.mxu1 %v407_v42 }
  0xb1   : > { %v321_v49 = vpop.f32.mrf.mxu1 }
  0xb2   : > { %663 = vmatmul.msk.bf16.vlgmr.msrb.gmra.mxu1 %vm284_vm4, %v662_v43  ;;  %v461_v44 = vpop.permute.xlu0 %460 }
  0xb3   : > { %478 = vmatpush.bf16.msrb.mxu3 %v461_v44 }
  0xb6   : > { %667 = vmatmul.msk.bf16.vlgmr.msrb.gmra.mxu3 %vm284_vm4, %v666_v45  ;;  %v516_v7 = vpop.permute.xlu1 %515 }
  0xba   : > { %v488_v46 = vpop.permute.xlu0 %487 }
  0xbb   : > { %505 = vmatpush.bf16.msra.mxu0 %v488_v46 }
  0xbe   : > { %669 = vmatmul.msk.bf16.vlgmr.msra.gmra.mxu0 %vm284_vm4, %v668_v47 }
 0x11a   : > { %v345_v50 = vpop.f32.mrf.mxu2 }
 0x11b   : > { %v300_v51 = vpop.f32.mrf.mxu0 }
 0x11c   : > { %v320_v57 = vadd.f32 %v319_v48, %v300_v51 }
 0x11e   : > { %v349_v60 = vadd.f32 %v345_v50, %v320_v57 }
 0x122   : > { %v372_v52 = vpop.f32.mrf.mxu3  ;;  %v347_v53 = vpop.f32.mrf.mxu2 }
 0x123   : > { %v302_v54 = vpop.f32.mrf.mxu0  ;;  %v376_v62 = vadd.f32 %v372_v52, %v349_v60 }
 0x12a   : > { %v374_v55 = vpop.f32.mrf.mxu3  ;;  %v453_v56 = vpop.f32.mrf.mxu2 }
 0x12b   : > { %v399_v58 = vpop.f32.mrf.mxu0 }
 0x12c   : > { %v403_v63 = vadd.f32 %v399_v58, %v376_v62 }
 0x12f   : > { %v426_v59 = vpop.f32.mrf.mxu1 }
 0x130   : > { %v430_v1 = vadd.f32 %v426_v59, %v403_v63 }
 0x132   : > { %v455_v61 = vpop.f32.mrf.mxu2  ;;  %v457_v3 = vadd.f32 %v453_v56, %v430_v1 }
 0x133   : > { %v401_v0 = vpop.f32.mrf.mxu0 }
 0x137   : > { %v428_v2 = vpop.f32.mrf.mxu1 }
 0x139   : > { %v480_v4 = vpop.f32.mrf.mxu3 }
 0x13a   : > { %v484_v5 = vadd.f32 %v480_v4, %v457_v3 }
 0x13b   : > { %v507_v6 = vpop.f32.mrf.mxu0 }
 0x13c   : > { %v511_v8 = vadd.f32 %v507_v6, %v484_v5 }
 0x13e   : > { %v518_v9 = vadd.f32 %v516_v7, %v511_v8 }
 0x140   : > { %vm519_vm5 = vcmp.ge.f32.partialorder %v518_v9, 0.0  ;;  %v520_v11 = vmul.f32 0.01, %v518_v9 }
 0x141   : > { %v482_v12 = vpop.f32.mrf.mxu3 }
 0x142   : > { %v521_v13 = vsel %vm519_vm5, %v518_v9, %v520_v11 }
 0x143   : > { %v509_v14 = vpop.f32.mrf.mxu0  ;;  %v526_v15 = vmul.f32 %v731_v10, %v521_v13 }
 0x145   : > { %528 = vrot.lane.b32.xlu2 %v526_v15, %s781_s5 }
 0x19f   : > { %v529_v16 = vpop.permute.xlu2 %528 }
 0x1a0   : > { %v532_v17 = vsel %vm531_vm6, 0.0, %v529_v16 }
 0x1a1   : > { %v534_v18 = vsel %vm533_vm7, %v532_v17, 0.0 }
 0x1a2   : > { %536 = vst.msk [vmem:[%s217_s11] sm:$0xff] %vm535_vm8, %v534_v18 }
 0x1a3 PF: > { %s14_s19 = sadd.s32 1, %s770_s19   ;;  %s940_s15 = smov %s762_s17 }
 0x1a4   : > { %p11_p8 = scmp.ge.s32.totalorder %s14_s19, 10   ;;  %s941_s16 = smov %s766_s18 }
 0x1a5   : > { %s942_s17 = smov %s945_s20  ;;  %s943_s18 = smov %s949_s21 }
 0x1a6   :  { %13 = sbr.rel (!%p11_p8) target bundleno = 3 (0x3), region = 77 }

// kernel: downblock_forward.4
= control target key start
LH: loop header
LB: loop body
LE: loop exit
PB: predicated region body
PF: predicated region fallthrough
CT: control target
= control target key end

     0   :  { %s822_s15 = smov 0   ;;  %s824_s16 = smov 0   ;;  %s965_s0 = inlined_call_operand.vmem [shape: bf16[2,4,4,36], index: 0, kind: input, shape index: {}]   ;;  %s966_s1 = inlined_call_operand.vmem [shape: bf16[9,8,12], index: 1, kind: input, shape index: {}]   ;;  %s967_s2 = inlined_call_operand.vmem [shape: f32[8,1], index: 2, kind: input, shape index: {}]   ;;  %s968_s3 = inlined_call_operand.vmem [shape: f32[1,22], index: 3, kind: input, shape index: {}]   ;;  %s969_s4 = inlined_call_operand.vmem [shape: bf16[2,4,8,36], index: 4, kind: output, shape index: {}]  }
   0x1   :  { %s826_s17 = smov 0   ;;  %s828_s18 = smov 0  }
   0x2   :  { %s830_s19 = smov 0  }
   0x3 LB: > { %s23_s20 = sadd.s32 1, %s777_s17  ;;  %s26_s21 = sadd.s32 1, %s781_s18  ;;  %s785_s19 = sphi %s830_s19, %s14_s19   ;;  %s781_s18 = sphi %s828_s18, %s974_s18   ;;  %s777_s17 = sphi %s826_s17, %s973_s17   ;;  %s773_s16 = sphi %s824_s16, %s972_s16   ;;  %s769_s15 = sphi %s822_s15, %s971_s15  }
   0x4   : > { %p24_p0 = scmp.ge.s32.totalorder %s23_s20, 4  ;;  %p636_p1 = scmp.ge.s32.totalorder %s785_s19, 1 }
   0x5   : > { %p176_p2 = scmp.lt.s32.totalorder %s785_s19, 9 }
   0x6   : > { %s976_s20 = smov (%p24_p0, %s23_s20), 0  ;;  %s978_s21 = smov (!%p24_p0, %s26_s21), %s781_s18 }
   0x7   : > { %p177_p3 = pnand %p636_p1, %p176_p2  ;;  %p28_p4 = scmp.ge.s32.totalorder %s978_s21, 2 }
   0x8   : > { %p205_p5 = scmp.lt.s32.totalorder (!%p177_p3), %s773_s16, 1  ;;  %s855_s22 = sadd.s32 (!%p177_p3), 4294967295, %s769_s15 }
   0x9   : > { %s980_s21 = smov (%p28_p4, %s978_s21), 0  ;;  %180 = sbr.rel (%p177_p3) target bundleno = 457 (0x1c9), region = 36 }
   0xa   : > { %p221_p6 = scmp.gt.s32.totalorder (!%p177_p3), %s855_s22, 0  ;;  %p225_p7 = scmp.ge.s32.totalorder (!%p177_p3), %s855_s22, 0 }
   0xb   : > { %p212_p8 = scmp.lt.s32.totalorder (!%p177_p3), %s769_s15, 3  ;;  %p226_p9 = scmp.le.s32.totalorder (!%p177_p3), %s855_s22, 3 }
   0xc   : > { %p245_p11 = scmp.gt.s32.totalorder (!%p177_p3), %s769_s15, 0  ;;  %p249_p12 = scmp.ge.s32.totalorder (!%p177_p3), %s769_s15, 0 }
   0xd   : > { %p866_p10 = pnand (!%p177_p3), %p226_p9, %p225_p7  ;;  %p641_p13 = scmp.lt.s32.totalorder (!%p177_p3), %s855_s22, 3 }
   0xe   : > { %v787_v0 = vmov 0   ;;  %s982_s16 = smov (!%p205_p5, %s773_s16), 1  ;;  %p250_p0 = scmp.le.s32.totalorder %s769_s15, 3  ;;  %vm302_vm12 = vcmask 1041408   ;;  %vm305_vm13 = vcmask 1043456   ;;  %vm317_vm14 = vcmask 1045504  }
   0xf   : > { %744 = vset.pattern.permute.xlu2 %v787_v0  ;;  %745 = vset.pattern.permute.xlu0 %v787_v0  ;;  %s864_s23 = scalar_select %p221_p6, %s855_s22, 0  ;;  %v239_v3 = vunpack.c.l.b16 %v787_v0  ;;  %v240_v4 = vunpack.c.h.b16 %v787_v0  ;;  %vm313_vm15 = vcmask 97280   ;;  %v307_v23 = vld [vmem:[%s966_s1] sm:$0xf]  ;;  %v668_v31 = vld [vmem:[%s966_s1 + $0x4] sm:$0xf] }
  0x10   : > { %s687_s25 = sshll.u32 %s982_s16, 3  ;;  %s269_s30 = sadd.s32 1, %s769_s15  ;;  %v673_v32 = vld [vmem:[%s966_s1 + $0xc] sm:$0xf]  ;;  %v520_v33 = vld [vmem:[%s967_s2] sm:$0xff] }
  0x11   : > { %s647_s26 = scalar_select %p866_p10, 0, 1  ;;  %v671_v39 = vld [vmem:[%s966_s1 + $0x8] sm:$0xf]  ;;  %v675_v44 = vld [vmem:[%s966_s1 + $0x10] sm:$0xf] }
  0x12   : > { %s880_s29 = scalar_lea.vmem %s965_s0, %s687_s25  ;;  %p251_p1 = pnand %p250_p0, %p249_p12  ;;  %v677_v45 = vld [vmem:[%s966_s1 + $0x14] sm:$0xf]  ;;  %v681_v46 = vld [vmem:[%s966_s1 + $0x1c] sm:$0xf]  ;;  %v679_v47 = vld [vmem:[%s966_s1 + $0x18] sm:$0xf] }
  0x13   : > { %s246_s5 = scalar_select %p245_p11, %s769_s15, 0  ;;  %v233_v1 = vstv %s647_s26  ;;  %v683_v48 = vld [vmem:[%s966_s1 + $0x20] sm:$0xf] }
  0x14   : > { %p270_p2 = scmp.gt.s32.totalorder %s269_s30, 0  ;;  %p659_p3 = scmp.lt.s32.totalorder %s269_s30, 3  ;;  %vm234_vm1 = vcmp.eq.s32.totalorder %v233_v1, 1 }
  0x15   : > { %s984_s5 = smov (!%p212_p8, %s246_s5), 3  ;;  %p274_p4 = scmp.ge.s32.totalorder %s269_s30, 0  ;;  %v235_v8 = vsel %vm234_vm1, 1, %v787_v0  ;;  %vm539_vm1 = vcmask 56320  }
  0x16   : > { %s656_s6 = scalar_select %p251_p1, 0, 1  ;;  %v648_v10 = vunpack.i.l.s16 %v235_v8 }
  0x17   : > { %s655_s7 = sshll.u32 %s984_s5, 1  ;;  %p275_p5 = scmp.le.s32.totalorder %s269_s30, 3 }
  0x18   : > { %s254_s8 = scalar_lea.vmem %s880_s29, %s655_s7  ;;  %v257_v2 = vstv %s656_s6  ;;  %s988_s23 = smov (!%p641_p13, %s864_s23), 3  ;;  %vm241_vm6 = vcmp.ne.s32.totalorder %v648_v10, %v239_v3  ;;  %vm242_vm7 = vcmp.ne.s32.totalorder %v648_v10, %v240_v4 }
  0x19   : > { %vm258_vm0 = vcmp.eq.s32.totalorder %v257_v2, 1  ;;  %s271_s9 = scalar_select %p270_p2, %s269_s30, 0  ;;  %v255_v7 = vld [vmem:[%s254_s8] sm:$0x3]  ;;  %vm243_vm11 = vmpackc.low %vm242_vm7, %vm241_vm6 }
  0x1a   : > { %v259_v5 = vsel %vm258_vm0, 1, %v787_v0  ;;  %p276_p6 = pnand %p275_p5, %p274_p4  ;;  %s646_s12 = sshll.u32 %s988_s23, 1 }
  0x1b   : > { %v657_v6 = vunpack.i.l.s16 %v259_v5  ;;  %s986_s9 = smov (!%p659_p3, %s271_s9), 3  ;;  %s230_s14 = scalar_lea.vmem %s880_s29, %s646_s12 }
  0x1c   : > { %s664_s10 = sshll.u32 %s986_s9, 1  ;;  %v231_v16 = vld [vmem:[%s230_s14] sm:$0x3]  ;;  %s788_s22 = smov 122  }
  0x1d   : > { %vm265_vm2 = vcmp.ne.s32.totalorder %v657_v6, %v239_v3  ;;  %vm266_vm3 = vcmp.ne.s32.totalorder %v657_v6, %v240_v4  ;;  %s665_s11 = scalar_select %p276_p6, 0, 1  ;;  %v244_v18 = vsel %vm243_vm11, %v231_v16, 0 }
  0x1e   : > { %vm267_vm4 = vmpackc.low %vm266_vm3, %vm265_vm2  ;;  %s279_s13 = scalar_lea.vmem %s880_s29, %s664_s10  ;;  %s789_s23 = smov 127   ;;  %vm541_vm2 = vcmask 236544   ;;  %vm544_vm3 = vcmask 289792  }
  0x1f   : > { %v268_v9 = vsel %vm267_vm4, %v255_v7, 0  ;;  %v282_v11 = vstv %s665_s11  ;;  %v280_v14 = vld [vmem:[%s279_s13] sm:$0x3]  ;;  %s790_s24 = smov 116   ;;  %s791_s25 = smov 121  }
  0x20   : > { %296 = vst [vmem:[#allocation1 + $0x1] ss:$4 sm:$0xff] %v268_v9  ;;  %vm283_vm5 = vcmp.eq.s32.totalorder %v282_v11, 1  ;;  %s792_s26 = smov 126   ;;  %s793_s27 = smov 115  }
  0x21   : > { %v284_v12 = vsel %vm283_vm5, 1, %v787_v0  ;;  %s794_s28 = smov 120   ;;  %s795_s29 = smov 114  }
  0x22   : > { %v666_v13 = vunpack.i.l.s16 %v284_v12  ;;  %v746_v12 = vld [vmem:[%s968_s3] ss:$0 sm:$0xff]  ;;  %s796_s7 = smov 7   ;;  %s990_s15 = smov (!%p212_p8, %s769_s15), 3 }
  0x23   : > { %s639_s8 = sshll.u32 %s982_s16, 2 }
  0x24   : > { %vm290_vm8 = vcmp.ne.s32.totalorder %v666_v13, %v239_v3  ;;  %vm291_vm9 = vcmp.ne.s32.totalorder %v666_v13, %v240_v4  ;;  %s215_s9 = sadd.s32 %s639_s8, %s990_s15 }
  0x25   : > { %vm292_vm10 = vmpackc.low %vm291_vm9, %vm290_vm8  ;;  %s640_s10 = sshll.u32 %s215_s9, 2 }
  0x26   : > { %v293_v17 = vsel %vm292_vm10, %v280_v14, 0  ;;  %s217_s13 = scalar_lea.vmem %s969_s4, %s640_s10 }
  0x27   : > { %v297_v15 = vld.sshfl [vmem:[#allocation1] sm:$0xff pattern:$0x73625140] }
  0x28   : > { %300 = vst [vmem:[#allocation1 + $0x2] ss:$4 sm:$0xff] %v293_v17  ;;  %v304_v19 = vsel %vm302_vm12, %v244_v18, %v297_v15 }
  0x2f   : > { %v301_v20 = vld.sshfl [vmem:[#allocation1] sm:$0xff pattern:$0x73625140] }
  0x30   : > { %v306_v21 = vsel %vm305_vm13, %v304_v19, %v301_v20 }
  0x31   : > { %378 = vrot.lane.b32.xlu1 %v306_v21, %s788_s22  ;;  %311 = vrot.lane.b32.xlu0 %v306_v21, %s789_s23  ;;  %v337_v22 = vsel %vm317_vm14, %v306_v21, 0 }
  0x32   : > { %450 = vrot.lane.b32.xlu2 %v306_v21, %s790_s24  ;;  %346 = vmatpush.bf16.msra.mxu1 %v337_v22 }
  0x35   : > { %670 = vmatmul.msk.bf16.vlgmr.msra.gmra.mxu1 %vm313_vm15, %v307_v23 }
  0x39   : > { %402 = vrot.lane.b32.xlu1 %v306_v21, %s791_s25  ;;  %354 = vrot.lane.b32.xlu0 %v306_v21, %s792_s26 }
  0x3a   : > { %474 = vrot.lane.b32.xlu2 %v306_v21, %s793_s27 }
  0x41   : > { %426 = vrot.lane.b32.xlu0 %v306_v21, %s794_s28  ;;  %498 = vrot.lane.b32.xlu1 %v306_v21, %s795_s29 }
  0x42   : > { %523 = vperm.xlu2 %744, %v520_v33  }
  0x8c   : > { %v451_v24 = vpop.permute.xlu2 %450 }
  0x8d   : > { %v456_v36 = vsel %vm317_vm14, %v451_v24, 0 }
  0x94   : > { %v475_v25 = vpop.permute.xlu2 %474 }
  0x95   : > { %v480_v28 = vsel %vm317_vm14, %v475_v25, 0 }
  0x9c   : > { %v524_v8 = vpop.permute.xlu2 %523 }
  0xa3   : > { %v379_v26 = vpop.permute.xlu1 %378  ;;  %v312_v27 = vpop.permute.xlu0 %311 }
  0xa4   : > { %v319_v29 = vsel %vm317_vm14, %v312_v27, 0  ;;  %v384_v30 = vsel %vm317_vm14, %v379_v26, 0 }
  0xa5   : > { %328 = vmatpush.bf16.msra.mxu0 %v319_v29  ;;  %393 = vmatpush.bf16.msra.mxu3 %v384_v30 }
  0xa8   : > { %669 = vmatmul.msk.bf16.vlgmr.msra.gmra.mxu0 %vm313_vm15, %v668_v31  ;;  %674 = vmatmul.msk.bf16.vlgmr.msra.gmra.mxu3 %vm313_vm15, %v673_v32 }
  0xa9   : > { %489 = vmatpush.bf16.msrb.mxu3 %v480_v28 }
  0xab   : > { %v403_v34 = vpop.permute.xlu1 %402  ;;  %v355_v35 = vpop.permute.xlu0 %354 }
  0xac   : > { %v360_v37 = vsel %vm317_vm14, %v355_v35, 0  ;;  %v408_v38 = vsel %vm317_vm14, %v403_v34, 0 }
  0xad   : > { %369 = vmatpush.bf16.msra.mxu2 %v360_v37  ;;  %417 = vmatpush.bf16.msrb.mxu0 %v408_v38 }
  0xb0   : > { %672 = vmatmul.msk.bf16.vlgmr.msra.gmra.mxu2 %vm313_vm15, %v671_v39 }
  0xb1   : > { %465 = vmatpush.bf16.msrb.mxu2 %v456_v36 }
  0xb2   : > { %v348_v49 = vpop.f32.mrf.mxu1 }
  0xb3   : > { %v427_v40 = vpop.permute.xlu0 %426  ;;  %v499_v41 = vpop.permute.xlu1 %498 }
  0xb4   : > { %v432_v42 = vsel %vm317_vm14, %v427_v40, 0  ;;  %v504_v43 = vsel %vm317_vm14, %v499_v41, 0 }
  0xb5   : > { %441 = vmatpush.bf16.msrb.mxu1 %v432_v42  ;;  %513 = vmatpush.bf16.msra.mxu0 %v504_v43 }
  0xb8   : > { %676 = vmatmul.msk.bf16.vlgmr.msrb.gmra.mxu0 %vm313_vm15, %v675_v44  ;;  %678 = vmatmul.msk.bf16.vlgmr.msrb.gmra.mxu1 %vm313_vm15, %v677_v45 }
  0xb9   : > { %682 = vmatmul.msk.bf16.vlgmr.msrb.gmra.mxu3 %vm313_vm15, %v681_v46 }
  0xba   : > { %v350_v50 = vpop.f32.mrf.mxu1 }
  0xc0   : > { %680 = vmatmul.msk.bf16.vlgmr.msrb.gmra.mxu2 %vm313_vm15, %v679_v47 }
  0xc8   : > { %684 = vmatmul.msk.bf16.vlgmr.msra.gmra.mxu0 %vm313_vm15, %v683_v48 }
 0x125   : > { %v330_v51 = vpop.f32.mrf.mxu0 }
 0x126   : > { %v349_v56 = vadd.f32 %v348_v49, %v330_v51 }
 0x12b   : > { %v395_v52 = vpop.f32.mrf.mxu3 }
 0x12d   : > { %v332_v53 = vpop.f32.mrf.mxu0 }
 0x133   : > { %v371_v54 = vpop.f32.mrf.mxu2  ;;  %v397_v55 = vpop.f32.mrf.mxu3 }
 0x134   : > { %v375_v59 = vadd.f32 %v371_v54, %v349_v56 }
 0x135   : > { %v419_v57 = vpop.f32.mrf.mxu0  ;;  %v443_v58 = vpop.f32.mrf.mxu1 }
 0x136   : > { %v399_v60 = vadd.f32 %v395_v52, %v375_v59 }
 0x138   : > { %v423_v1 = vadd.f32 %v419_v57, %v399_v60 }
 0x13a   : > { %v447_v2 = vadd.f32 %v443_v58, %v423_v1 }
 0x13b   : > { %v373_v61 = vpop.f32.mrf.mxu2 }
 0x13c   : > { %v491_v62 = vpop.f32.mrf.mxu3 }
 0x13d   : > { %v421_v63 = vpop.f32.mrf.mxu0  ;;  %v445_v0 = vpop.f32.mrf.mxu1 }
 0x143   : > { %v467_v3 = vpop.f32.mrf.mxu2 }
 0x144   : > { %v471_v4 = vadd.f32 %v467_v3, %v447_v2  ;;  %v493_v5 = vpop.f32.mrf.mxu3 }
 0x145   : > { %v515_v6 = vpop.f32.mrf.mxu0 }
 0x146   : > { %v495_v7 = vadd.f32 %v491_v62, %v471_v4 }
 0x148   : > { %v519_v9 = vadd.f32 %v515_v6, %v495_v7 }
 0x14a   : > { %v526_v10 = vadd.f32 %v524_v8, %v519_v9 }
 0x14b   : > { %v469_v11 = vpop.f32.mrf.mxu2 }
 0x14c   : > { %vm527_vm0 = vcmp.ge.f32.partialorder %v526_v10, 0.0  ;;  %v528_v13 = vmul.f32 0.01, %v526_v10 }
 0x14d   : > { %v517_v14 = vpop.f32.mrf.mxu0 }
 0x14e   : > { %v529_v15 = vsel %vm527_vm0, %v526_v10, %v528_v13 }
 0x14f   : > { %v534_v16 = vmul.f32 %v746_v12, %v529_v15 }
 0x151   : > { %536 = vrot.lane.b32.xlu0 %v534_v16, %s796_s7 }
 0x1c3   : > { %v537_v17 = vpop.permute.xlu0 %536 }
 0x1c4   : > { %v540_v18 = vsel %vm539_vm1, 0.0, %v537_v17 }
 0x1c5   : > { %v542_v19 = vsel %vm541_vm2, %v540_v18, 0.0 }
 0x1c6   : > { %v543_v20 = vpack.c.bf16 %v542_v19, %v542_v19 }
 0x1c8   : > { %545 = vst.msk [vmem:[%s217_s13] sm:$0xf] %vm544_vm3, %v543_v20 }
 0x1c9 PF: > { %s14_s19 = sadd.s32 1, %s785_s19   ;;  %s971_s15 = smov %s777_s17 }
 0x1ca   : > { %p11_p7 = scmp.ge.s32.totalorder %s14_s19, 10   ;;  %s972_s16 = smov %s781_s18 }
 0x1cb   : > { %s973_s17 = smov %s976_s20  ;;  %s974_s18 = smov %s980_s21 }
 0x1cc   :  { %13 = sbr.rel (!%p11_p7) target bundleno = 3 (0x3), region = 79 }

// kernel: downblock_forward.3
= control target key start
LH: loop header
LB: loop body
LE: loop exit
PB: predicated region body
PF: predicated region fallthrough
CT: control target
= control target key end

     0   :  { %6 = vsyncpa [#allocation3], 0  ;;  %s4109_s0 = inlined_call_operand.hbm [shape: f32[2,4,8,8,8], index: 0, kind: input, shape index: {}]   ;;  %s4110_s1 = inlined_call_operand.vmem [shape: bf16[2,4,4,36], index: 1, kind: output, shape index: {}]  }
   0x1   :  { %8 = vsyncpa [#allocation3 + $0x1], 0  ;;  %s2672_s6 = smov 0   ;;  %s2674_s7 = smov 0  }
   0x2   :  { %s2676_s8 = smov 0   ;;  %s2678_s9 = smov 0  }
   0x3 LB: > { %s2691_s10 = sadd.s32 4294967295, %s2650_s9   ;;  %s2694_s11 = sadd.s32 1, %s2650_s9   ;;  %s2650_s9 = sphi %s2678_s9, %s4117_s9   ;;  %s2646_s8 = sphi %s2676_s8, %s4116_s8   ;;  %s2642_s7 = sphi %s2674_s7, %s4115_s7   ;;  %s2638_s6 = sphi %s2672_s6, %s4114_s6  }
   0x4   : > { %s18_s12 = ssub.s32 %s2650_s9, %s2694_s11  ;;  %s21_s13 = sadd.s32 1, %s2646_s8 }
   0x5   : > { %p19_p0 = scmp.eq.s32.totalorder %s18_s12, 0  ;;  %p28_p1 = scmp.ne.s32.totalorder %s2646_s8, %s2642_s7 }
   0x6   : > { %p29_p2 = scmp.eq.s32.totalorder %s2650_s9, 0  ;;  %p34_p3 = scmp.ne.s32.totalorder %s2642_s7, %s2638_s6 }
   0x7   : > { %s2704_s14 = scalar_select %p19_p0, %s2646_s8, %s21_s13  }
   0x8   : > { %p2706_p4 = por %p29_p2, %p28_p1  ;;  %p35_p5 = scmp.eq.s32.totalorder %s2691_s10, 0 }
   0x9   : > { %p2383_p6 = scmp.lt.s32.totalorder %s2650_s9, 2  ;;  %s84_s17 = sand.u32 1, %s2646_s8  }
   0xa   : > { %p2712_p7 = por %p35_p5, %p34_p3  ;;  %s2366_s18 = sshll.u32 %s84_s17, 8 }
   0xb   : > { %s2375_s19 = sshll.u32 %s2650_s9, 8  ;;  %s88_s23 = scalar_lea.vmem [#allocation2], %s2366_s18 }
   0xc   : > { %s93_s22 = scalar_lea.hbm %s4109_s0, %s2375_s19  ;;  %s96_s24 = sshll.u32 %s88_s23, 4  ;;  %s97_s24 = int_to_ptr.vmem [resolvable:$true] %s96_s24 }
   0xd   : > { %s94_s25 = sshll.u32 %s93_s22, 4  ;;  %p2723_p8 = pnand %p2383_p6, %p2706_p4  ;;  %s95_s25 = int_to_ptr.hbm [resolvable:$true] %s94_s25 }
   0xe   : > { %p2369_p9 = scmp.ge.s32.totalorder %s2650_s9, 1  ;;  %s85_s27 = scalar_lea.sflag [#allocation3], %s84_s17 }
   0xf   : > { %s2586_s28 = sshra.s32 %s95_s25, 4  ;;  %p2590_p11 = pneg %p2723_p8  ;;  %s2587_s28 = int_to_ptr.hbm [resolvable:$true] %s2586_s28 }
  0x10   : > { %s2588_s29 = scalar_lea.hbm %s2587_s28, 256  ;;  %s2593_s3 = scalar_lea.hbm %s4109_s0, 512 }
  0x11   : > { %p2589_p10 = scmp.ne.s32.totalorder %s2587_s28, %s2588_s29  ;;  %p2594_p0 = scmp.lt.s32.totalorder %s2587_s28, %s4109_s0 }
  0x12   : > { %p2595_p1 = scmp.lt.s32.totalorder %s2593_s3, %s2588_s29 }
  0x13   : > { %p2591_p12 = pnand %p2590_p11, %p2589_p10 }
  0x14   : > { %p2596_p2 = por %p2595_p1, %p2594_p0 }
  0x15   : > { %p2592_p13 = pneg %p2591_p12 }
  0x17   : > { %p2597_p3 = pnand %p2596_p2, %p2592_p13 }
  0x19   : > { %2600 = shalt.err (!%p2597_p3)
}
  0x1a   : > { %s2652_s6 = smov 128   ;;  %s2653_s12 = smov 8  }
  0x1b   : > { %2382 = dma.hbm_to_vmem [thread:$0]  (!%p2723_p8), %s95_s25, 4096, %s97_s24, %s85_s27, %s2652_s6, %s2652_s6, %s2653_s12  }
  0x1c   : > { %p104_p4 = scmp.lt.s32.totalorder %s2650_s9, 3 }
  0x1e   : > { %p105_p5 = pnand %p2369_p9, %p104_p4 }
  0x1f   : > { %s110_s13 = sand.u32 (!%p105_p5), 1, %s2642_s7  }
  0x20   : > { %108 = sbr.rel (%p105_p5) target bundleno = 929 (0x3a1), region = 24  ;;  %s2370_s15 = sshll.u32 (!%p105_p5), %s110_s13, 8 }
  0x21   : > { %s111_s17 = scalar_lea.sflag (!%p105_p5), [#allocation3], %s110_s13  ;;  %s2742_s18 = scalar_lea.vmem (!%p105_p5), [#allocation2], %s2370_s15 }
  0x25   : > { %2633 = dma.done.wait (%p2712_p7), %s111_s17, 4096  }
  0x26   : > { %2635 = vsyncadd (%p2712_p7), %s111_s17, 4294963200  ;;  %vm171_vm0 = vcmask 64512   ;;  %v155_v0 = vld [vmem:[%s2742_s18 + $0x80] sm:$0xff]  ;;  %v156_v1 = vld [vmem:[%s2742_s18 + $0x88] sm:$0xff]  ;;  %s2654_s9 = smov 126   ;;  %s2655_s16 = smov 124  }
  0x27   : > { %v157_v2 = vld [vmem:[%s2742_s18 + $0x90] sm:$0xff]  ;;  %v158_v3 = vld [vmem:[%s2742_s18 + $0x98] sm:$0xff]  ;;  %v196_v4 = vsel %vm171_vm0, %v155_v0, -inf  ;;  %v197_v5 = vsel %vm171_vm0, %v156_v1, -inf  ;;  %v147_v7 = vld [vmem:[%s2742_s18 + $0x40] sm:$0xff]  ;;  %s2656_s19 = smov 122  }
  0x28   : > { %v199_v6 = vsel %vm171_vm0, %v157_v2, -inf  ;;  %v148_v8 = vld [vmem:[%s2742_s18 + $0x48] sm:$0xff]  ;;  %v2757_v9 = vmax.f32 %v196_v4, %v197_v5  ;;  %v200_v10 = vsel %vm171_vm0, %v158_v3, -inf  ;;  %v149_v11 = vld [vmem:[%s2742_s18 + $0x50] sm:$0xff]  ;;  %v150_v12 = vld [vmem:[%s2742_s18 + $0x58] sm:$0xff]  ;;  %v184_v13 = vsel %vm171_vm0, %v147_v7, -inf }
  0x29   : > { %v185_v14 = vsel %vm171_vm0, %v148_v8, -inf  ;;  %v139_v15 = vld [vmem:[%s2742_s18] sm:$0xff]  ;;  %v2765_v16 = vmax.f32 %v199_v6, %v200_v10  ;;  %v187_v18 = vsel %vm171_vm0, %v149_v11, -inf  ;;  %v188_v19 = vsel %vm171_vm0, %v150_v12, -inf  ;;  %v140_v20 = vld [vmem:[%s2742_s18 + $0x8] sm:$0xff]  ;;  %v141_v21 = vld [vmem:[%s2742_s18 + $0x10] sm:$0xff] }
  0x2a   : > { %v2767_v17 = vmax.f32 %v184_v13, %v185_v14  ;;  %v142_v22 = vld [vmem:[%s2742_s18 + $0x18] sm:$0xff]  ;;  %v2774_v23 = vmax.f32 %v187_v18, %v188_v19  ;;  %v172_v24 = vsel %vm171_vm0, %v139_v15, -inf  ;;  %v173_v25 = vsel %vm171_vm0, %v140_v20, -inf  ;;  %v159_v27 = vld [vmem:[%s2742_s18 + $0xa0] sm:$0xff]  ;;  %v160_v28 = vld [vmem:[%s2742_s18 + $0xa8] sm:$0xff]  ;;  %s2659_s20 = smov 12  }
  0x2b   : > { %v175_v26 = vsel %vm171_vm0, %v141_v21, -inf  ;;  %v161_v29 = vld [vmem:[%s2742_s18 + $0xb0] sm:$0xff]  ;;  %v2784_v30 = vpack.i.bf16 %v2765_v16, %v2757_v9  ;;  %v2786_v31 = vmax.f32 %v172_v24, %v173_v25  ;;  %v176_v32 = vsel %vm171_vm0, %v142_v22, -inf  ;;  %v162_v33 = vld [vmem:[%s2742_s18 + $0xb8] sm:$0xff]  ;;  %v151_v35 = vld [vmem:[%s2742_s18 + $0x60] sm:$0xff]  ;;  %s2660_s21 = smov 6  }
  0x2c   : > { %v202_v34 = vsel %vm171_vm0, %v159_v27, -inf  ;;  %v152_v36 = vld [vmem:[%s2742_s18 + $0x68] sm:$0xff]  ;;  %v2795_v37 = vpack.i.bf16 %v2774_v23, %v2767_v17  ;;  %v2797_v38 = vmax.f32 %v175_v26, %v176_v32  ;;  %v203_v39 = vsel %vm171_vm0, %v160_v28, -inf  ;;  %v153_v41 = vld [vmem:[%s2742_s18 + $0x70] sm:$0xff]  ;;  %v154_v42 = vld [vmem:[%s2742_s18 + $0x78] sm:$0xff]  ;;  %s2661_s22 = smov 18  }
  0x2d   : > { %v205_v40 = vsel %vm171_vm0, %v161_v29, -inf  ;;  %v143_v43 = vld [vmem:[%s2742_s18 + $0x20] sm:$0xff]  ;;  %2447 = vrot.lane.b32.xlu2 %v2784_v30, %s2654_s9  ;;  %v2806_v44 = vmax.f32 %v202_v34, %v203_v39  ;;  %v206_v45 = vsel %vm171_vm0, %v162_v33, -inf  ;;  %v190_v46 = vsel %vm171_vm0, %v151_v35, -inf  ;;  %v144_v48 = vld [vmem:[%s2742_s18 + $0x28] sm:$0xff]  ;;  %v145_v49 = vld [vmem:[%s2742_s18 + $0x30] sm:$0xff] }
  0x2e   : > { %v191_v47 = vsel %vm171_vm0, %v152_v36, -inf  ;;  %v146_v50 = vld [vmem:[%s2742_s18 + $0x38] sm:$0xff]  ;;  %2437 = vrot.lane.b32.xlu1 %v2795_v37, %s2654_s9  ;;  %v2426_v51 = vpack.i.bf16 %v2797_v38, %v2786_v31  ;;  %v2818_v52 = vmax.f32 %v205_v40, %v206_v45  ;;  %v193_v54 = vsel %vm171_vm0, %v153_v41, -inf  ;;  %v167_v59 = vld [vmem:[%s2742_s18 + $0xe0] sm:$0xff]  ;;  %v168_v63 = vld [vmem:[%s2742_s18 + $0xe8] sm:$0xff]  ;;  %p134_p6 = scmp.lt.s32.totalorder %s2691_s10, 1 }
  0x2f   : > { %v2820_v53 = vmax.f32 %v190_v46, %v191_v47  ;;  %v194_v55 = vsel %vm171_vm0, %v154_v42, -inf  ;;  %v178_v56 = vsel %vm171_vm0, %v143_v43, -inf  ;;  %v179_v57 = vsel %vm171_vm0, %v144_v48, -inf  ;;  %v169_v0 = vld [vmem:[%s2742_s18 + $0xf0] sm:$0xff]  ;;  %v170_v1 = vld [vmem:[%s2742_s18 + $0xf8] sm:$0xff]  ;;  %v163_v4 = vld [vmem:[%s2742_s18 + $0xc0] sm:$0xff] }
  0x30   : > { %v181_v58 = vsel %vm171_vm0, %v145_v49, -inf  ;;  %2427 = vrot.lane.b32.xlu0 %v2426_v51, %s2654_s9  ;;  %v2829_v60 = vmax.f32 %v193_v54, %v194_v55  ;;  %v2831_v61 = vmax.f32 %v178_v56, %v179_v57  ;;  %v182_v62 = vsel %vm171_vm0, %v146_v50, -inf  ;;  %v164_v6 = vld [vmem:[%s2742_s18 + $0xc8] sm:$0xff]  ;;  %v165_v7 = vld [vmem:[%s2742_s18 + $0xd0] sm:$0xff]  ;;  %v166_v8 = vld [vmem:[%s2742_s18 + $0xd8] sm:$0xff]  ;;  %s4119_s10 = smov (!%p134_p6, %s2691_s10), 1 }
  0x31   : > { %v2451_v2 = vpack.i.bf16 %v2818_v52, %v2806_v44  ;;  %v2839_v3 = vmax.f32 %v181_v58, %v182_v62  ;;  %v214_v10 = vsel %vm171_vm0, %v167_v59, -inf  ;;  %v215_v11 = vsel %vm171_vm0, %v168_v63, -inf  ;;  %s2376_s23 = sshll.u32 %s4119_s10, 3 }
  0x32   : > { %v2441_v5 = vpack.i.bf16 %v2829_v60, %v2820_v53  ;;  %v217_v12 = vsel %vm171_vm0, %v169_v0, -inf  ;;  %v218_v13 = vsel %vm171_vm0, %v170_v1, -inf  ;;  %v208_v15 = vsel %vm171_vm0, %v163_v4, -inf  ;;  %s138_s26 = scalar_lea.vmem %s4110_s1, %s2376_s23 }
  0x33   : > { %v2431_v14 = vpack.i.bf16 %v2839_v3, %v2831_v61  ;;  %v209_v18 = vsel %vm171_vm0, %v164_v6, -inf  ;;  %v211_v19 = vsel %vm171_vm0, %v165_v7, -inf  ;;  %v212_v20 = vsel %vm171_vm0, %v166_v8, -inf }
  0x34   : > { %v2859_v21 = vmax.f32 %v214_v10, %v215_v11  ;;  %v2861_v22 = vmax.f32 %v217_v12, %v218_v13  ;;  %v2864_v24 = vmax.f32 %v208_v15, %v209_v18  ;;  %v2866_v25 = vmax.f32 %v211_v19, %v212_v20 }
  0x35   : > { %2452 = vrot.lane.b32.xlu2 %v2451_v2, %s2654_s9  ;;  %v383_v40 = vrot.slane %v2786_v31, 4  ;;  %v2657_v42 = vmov 1983009808   ;;  %vm381_vm1 = vcmask 1047556   ;;  %v2658_v0 = vmov 1934713408  }
  0x36   : > { %2442 = vrot.lane.b32.xlu1 %v2441_v5, %s2654_s9  ;;  %v2461_v26 = vpack.i.bf16 %v2861_v22, %v2859_v21  ;;  %v2456_v27 = vpack.i.bf16 %v2866_v25, %v2864_v24  ;;  %v386_v43 = vunpack.c.l.s4 %v2657_v42  ;;  %v410_v1 = vunpack.c.l.s4 %v2658_v0 }
  0x37   : > { %vm1277_vm2 = vcmask 11264   ;;  %vm1662_vm3 = vcmask 1043456   ;;  %vm1986_vm4 = vcmask 1041409   ;;  %vm1988_vm5 = vcmask 1042434  }
  0x38   : > { %2432 = vrot.lane.b32.xlu0 %v2431_v14, %s2654_s9  ;;  %v2896_v50 = vunpack.c.0.s8 %v386_v43  ;;  %v2919_v19 = vunpack.c.0.s8 %v410_v1  ;;  %vm1990_vm6 = vcmask 1043459   ;;  %vm2053_vm7 = vcmask 7168  }
  0x39   : > { %vm2070_vm8 = vcmask 39936   ;;  %vm2252_vm9 = vcmask 97280   ;;  %vm2247_vm10 = vcmask 48128   ;;  %vm2257_vm11 = vcmask 146432  }
  0x3a   : > { %vm2282_vm12 = vcmask 244736   ;;  %vm2291_vm13 = vcmask 287744  }
  0x3d   : > { %2467 = vrot.lane.b32.xlu2 %v2426_v51, %s2655_s16 }
  0x3e   : > { %2462 = vrot.lane.b32.xlu1 %v2461_v26, %s2654_s9 }
  0x40   : > { %2457 = vrot.lane.b32.xlu0 %v2456_v27, %s2654_s9 }
  0x45   : > { %2482 = vrot.lane.b32.xlu2 %v2441_v5, %s2655_s16 }
  0x46   : > { %2477 = vrot.lane.b32.xlu1 %v2795_v37, %s2655_s16 }
  0x48   : > { %2472 = vrot.lane.b32.xlu0 %v2431_v14, %s2655_s16 }
  0x4d   : > { %2497 = vrot.lane.b32.xlu2 %v2456_v27, %s2655_s16 }
  0x4e   : > { %2492 = vrot.lane.b32.xlu1 %v2451_v2, %s2655_s16 }
  0x50   : > { %2487 = vrot.lane.b32.xlu0 %v2784_v30, %s2655_s16 }
  0x55   : > { %2512 = vrot.lane.b32.xlu2 %v2431_v14, %s2656_s19 }
  0x56   : > { %2507 = vrot.lane.b32.xlu1 %v2426_v51, %s2656_s19 }
  0x58   : > { %2502 = vrot.lane.b32.xlu0 %v2461_v26, %s2655_s16 }
  0x5d   : > { %2527 = vrot.lane.b32.xlu2 %v2784_v30, %s2656_s19  ;;  %v607_v30 = vrot.slane %v2797_v38, 4 }
  0x5e   : > { %2522 = vrot.lane.b32.xlu1 %v2441_v5, %s2656_s19 }
  0x60   : > { %2517 = vrot.lane.b32.xlu0 %v2795_v37, %s2656_s19 }
  0x65   : > { %2542 = vrot.lane.b32.xlu2 %v2461_v26, %s2656_s19 }
  0x66   : > { %2537 = vrot.lane.b32.xlu1 %v2456_v27, %s2656_s19 }
  0x68   : > { %2532 = vrot.lane.b32.xlu0 %v2451_v2, %s2656_s19 }
  0x87   : > { %v2880_v29 = vpop.permute.xlu2 %2447 }
  0x8f   : > { %v2886_v34 = vpop.permute.xlu2 %2452 }
  0x97   : > { %v2468_v36 = vpop.permute.xlu2 %2467 }
  0x98   : > { %v2470_v39 = vunpack.i.h.bf16 %v2468_v36  ;;  %v2469_v37 = vunpack.i.l.bf16 %v2468_v36 }
  0x9a   : > { %v608_v46 = vsel %vm381_vm1, %v2470_v39, %v607_v30  ;;  %v384_v47 = vsel %vm381_vm1, %v2469_v37, %v383_v40  ;;  %v380_v55 = vrot.slane %v2469_v37, 4  ;;  %v605_v36 = vrot.slane %v2470_v39, 4 }
  0x9b   : > { %v2901_v54 = vperm.slane %v608_v46, %v2896_v50  ;;  %v2904_v56 = vperm.slane %v384_v47, %v2896_v50 }
  0x9c   : > { %v382_v5 = vsel %vm381_vm1, %v380_v55, %v2786_v31  ;;  %v606_v47 = vsel %vm381_vm1, %v605_v36, %v2797_v38 }
  0x9d   : > { %v643_v2 = vrot.slane %v2901_v54, 4  ;;  %v419_v4 = vrot.slane %v2904_v56, 4  ;;  %v388_v31 = vperm.slane %v382_v5, %v2896_v50 }
  0x9f   : > { %v2898_v51 = vpop.permute.xlu2 %2482  ;;  %v407_v43 = vrot.slane %v388_v31, 4 }
  0xa0   : > { %v2878_v28 = vpop.permute.xlu1 %2437 }
  0xa2   : > { %v2428_v45 = vpop.permute.xlu0 %2427 }
  0xa3   : > { %v2430_v48 = vunpack.i.h.bf16 %v2428_v45  ;;  %v2429_v49 = vunpack.i.l.bf16 %v2428_v45 }
  0xa5   : > { %v619_v57 = vrot.slane %v2430_v48, 4  ;;  %v395_v58 = vrot.slane %v2429_v49, 4 }
  0xa7   : > { %v2922_v20 = vpop.permute.xlu2 %2497 }
  0xa8   : > { %v2882_v32 = vpop.permute.xlu1 %2442 }
  0xaa   : > { %v2910_v6 = vpop.permute.xlu0 %2432 }
  0xb0   : > { %v2884_v33 = vpop.permute.xlu1 %2462 }
  0xb8   : > { %v2888_v35 = vpop.permute.xlu1 %2477 }
  0xc0   : > { %v2892_v41 = vpop.permute.xlu1 %2492 }
  0xc8   : > { %v2508_v59 = vpop.permute.xlu1 %2507 }
  0xc9   : > { %v2510_v62 = vunpack.i.h.bf16 %v2508_v59  ;;  %v2509_v63 = vunpack.i.l.bf16 %v2508_v59  ;;  %v2942_v59 = vpop.permute.xlu2 %2512 }
  0xca   : > { %v2514_v0 = vunpack.i.l.bf16 %v2942_v59 }
  0xcb   : > { %v617_v7 = vrot.slane %v2510_v62, 4  ;;  %v393_v8 = vrot.slane %v2509_v63, 4  ;;  %v396_v10 = vsel %vm381_vm1, %v2509_v63, %v395_v58  ;;  %v620_v11 = vsel %vm381_vm1, %v2510_v62, %v619_v57 }
  0xcc   : > { %v404_v12 = vperm.slane %v396_v10, %v2896_v50  ;;  %v628_v13 = vperm.slane %v620_v11, %v2896_v50  ;;  %v612_v58 = vperm.slane %v606_v47, %v2896_v50  ;;  %v841_v5 = vrot.slane %v2514_v0, 4 }
  0xcd   : > { %v394_v14 = vsel %vm381_vm1, %v393_v8, %v2429_v49  ;;  %v618_v18 = vsel %vm381_vm1, %v617_v7, %v2430_v48  ;;  %v2936_v48 = vpop.permute.xlu0 %2457 }
  0xce   : > { %v400_v15 = vperm.slane %v394_v14, %v2896_v50  ;;  %v644_v26 = vsel %vm381_vm1, %v628_v13, %v643_v2  ;;  %v420_v27 = vsel %vm381_vm1, %v404_v12, %v419_v4  ;;  %v624_v40 = vperm.slane %v618_v18, %v2896_v50 }
  0xcf   : > { %v652_v30 = vperm.slane %v644_v26, %v2919_v19  ;;  %v2928_v37 = vperm.slane %v420_v27, %v2919_v19  ;;  %v2434_v4 = vunpack.i.l.bf16 %v2910_v6  ;;  %v417_v10 = vrot.slane %v404_v12, 4 }
  0xd0   : > { %v405_v42 = vrot.slane %v400_v15, 4  ;;  %v629_v39 = vrot.slane %v624_v40, 4  ;;  %v408_v55 = vsel %vm381_vm1, %v400_v15, %v407_v43  ;;  %v641_v15 = vrot.slane %v628_v13, 4 }
  0xd1   : > { %v1320_v45 = vsel %vm1277_vm2, %v652_v30, -inf  ;;  %v1296_v46 = vsel %vm1277_vm2, %v2928_v37, -inf  ;;  %v416_v38 = vperm.slane %v408_v55, %v2919_v19  ;;  %v418_v18 = vsel %vm381_vm1, %v417_v10, %v2904_v56 }
  0xd2   : > { %1321 = vmax.xlane.f32.xlu1 %v1320_v45  ;;  %1297 = vmax.xlane.f32.xlu2 %v1296_v46  ;;  %v406_v49 = vsel %vm381_vm1, %v405_v42, %v388_v31  ;;  %v630_v63 = vsel %vm381_vm1, %v629_v39, %v612_v58  ;;  %v631_v31 = vrot.slane %v612_v58, 4  ;;  %v842_v26 = vsel %vm381_vm1, %v841_v5, %v2434_v4 }
  0xd3   : > { %v412_v57 = vperm.slane %v406_v49, %v2919_v19  ;;  %v2949_v1 = vperm.slane %v630_v63, %v2919_v19  ;;  %v1284_v2 = vsel %vm1277_vm2, %v416_v38, -inf  ;;  %v424_v27 = vperm.slane %v418_v18, %v2919_v19 }
  0xd4   : > { %v642_v36 = vsel %vm381_vm1, %v641_v15, %v2901_v54  ;;  %v848_v13 = vperm.slane %v842_v26, %v2896_v50  ;;  %v632_v46 = vsel %vm381_vm1, %v624_v40, %v631_v31  ;;  %v659_v54 = vrot.slane %v652_v30, 4 }
  0xd5   : > { %v1278_v62 = vsel %vm1277_vm2, %v412_v57, -inf  ;;  %v1302_v7 = vsel %vm1277_vm2, %v2949_v1, -inf  ;;  %v2955_v8 = vpop.permute.xlu0 %2472  ;;  %v429_v14 = vrot.slane %v412_v57, 4  ;;  %v2966_v43 = vperm.slane %v642_v36, %v2919_v19 }
  0xd6   : > { %1279 = vmax.xlane.f32.xlu0 %v1278_v62  ;;  %v2474_v11 = vunpack.i.l.bf16 %v2955_v8  ;;  %v1290_v45 = vsel %vm1277_vm2, %v424_v27, -inf  ;;  %v433_v39 = vrot.slane %v424_v27, 4  ;;  %v640_v49 = vperm.slane %v632_v46, %v2919_v19 }
  0xd7   : > { %v430_v42 = vsel %vm381_vm1, 0.0, %v429_v14  ;;  %v1314_v56 = vsel %vm1277_vm2, %v2966_v43, -inf  ;;  %v853_v57 = vrot.slane %v848_v13, 4  ;;  %v660_v58 = vsel %vm381_vm1, 0.0, %v659_v54 }
  0xd8   : > { %v829_v12 = vrot.slane %v2474_v11, 4  ;;  %v1281_v47 = vsel %vm1277_vm2, %v430_v42, -inf  ;;  %v434_v62 = vsel %vm381_vm1, 0.0, %v433_v39  ;;  %v1308_v40 = vsel %vm1277_vm2, %v640_v49, -inf }
  0xd9   : > { %v1293_v5 = vsel %vm1277_vm2, %v434_v62, -inf  ;;  %v655_v10 = vrot.slane %v640_v49, 4  ;;  %v843_v14 = vrot.slane %v2434_v4, 4  ;;  %v831_v18 = vrot.slane %v2831_v61, 4 }
  0xda   : > { %1285 = vmax.xlane.f32.xlu2 %v1284_v2  ;;  %1303 = vmax.xlane.f32.xlu1 %v1302_v7  ;;  %v830_v55 = vsel %vm381_vm1, %v829_v12, %v2831_v61  ;;  %v1323_v2 = vsel %vm1277_vm2, %v660_v58, -inf  ;;  %v431_v7 = vrot.slane %v416_v38, 4  ;;  %v435_v4 = vrot.slane %v2928_v37, 4 }
  0xdb   : > { %v836_v63 = vperm.slane %v830_v55, %v2896_v50  ;;  %v656_v26 = vsel %vm381_vm1, 0.0, %v655_v10  ;;  %v844_v27 = vsel %vm381_vm1, %v2514_v0, %v843_v14  ;;  %v832_v42 = vsel %vm381_vm1, %v2474_v11, %v831_v18 }
  0xdc   : > { %v432_v31 = vsel %vm381_vm1, 0.0, %v431_v7  ;;  %v1311_v61 = vsel %vm1277_vm2, %v656_v26, -inf  ;;  %v840_v46 = vperm.slane %v832_v42, %v2896_v50  ;;  %v436_v11 = vsel %vm381_vm1, 0.0, %v435_v4 }
  0xdd   : > { %v854_v30 = vsel %vm381_vm1, %v853_v57, %v836_v63  ;;  %v2991_v12 = vpop.permute.xlu0 %2487  ;;  %v1287_v38 = vsel %vm1277_vm2, %v432_v31, -inf  ;;  %v855_v54 = vrot.slane %v836_v63, 4  ;;  %v2515_v39 = vunpack.i.h.bf16 %v2942_v59 }
  0xde   : > { %1291 = vmax.xlane.f32.xlu0 %v1290_v45  ;;  %v860_v15 = vperm.slane %v854_v30, %v2919_v19  ;;  %v653_v45 = vrot.slane %v2949_v1, 4  ;;  %v2475_v55 = vunpack.i.h.bf16 %v2955_v8  ;;  %v1299_v1 = vsel %vm1277_vm2, %v436_v11, -inf }
  0xdf   : > { %v867_v57 = vrot.slane %v840_v46, 4  ;;  %v2435_v58 = vunpack.i.h.bf16 %v2910_v6  ;;  %v856_v59 = vsel %vm381_vm1, %v848_v13, %v855_v54 }
  0xe0   : > { %v1326_v36 = vsel %vm1277_vm2, %v860_v15, -inf  ;;  %v877_v0 = vrot.slane %v860_v15, 4  ;;  %v864_v14 = vperm.slane %v856_v59, %v2919_v19 }
  0xe1   : > { %v1067_v6 = vrot.slane %v2435_v58, 4 }
  0xe2   : > { %1315 = vmax.xlane.f32.xlu2 %v1314_v56  ;;  %1282 = vmax.xlane.f32.xlu1 %v1281_v47  ;;  %v852_v56 = vperm.slane %v844_v27, %v2896_v50  ;;  %v654_v47 = vsel %vm381_vm1, 0.0, %v653_v45  ;;  %v878_v37 = vsel %vm381_vm1, 0.0, %v877_v0  ;;  %v1332_v27 = vsel %vm1277_vm2, %v864_v14, -inf }
  0xe3   : > { %v1305_v62 = vsel %vm1277_vm2, %v654_v47, -inf  ;;  %v1329_v63 = vsel %vm1277_vm2, %v878_v37, -inf  ;;  %v1068_v26 = vsel %vm381_vm1, %v2515_v39, %v1067_v6 }
  0xe4   : > { %v865_v49 = vrot.slane %v852_v56, 4  ;;  %v868_v7 = vsel %vm381_vm1, %v852_v56, %v867_v57  ;;  %v1076_v0 = vperm.slane %v1068_v26, %v2896_v50 }
  0xe5   : > { %v3010_v30 = vpop.permute.xlu0 %2502  ;;  %v876_v13 = vperm.slane %v868_v7, %v2919_v19  ;;  %v2439_v7 = vunpack.i.l.bf16 %v2878_v28 }
  0xe6   : > { %1309 = vmax.xlane.f32.xlu0 %v1308_v40  ;;  %v657_v40 = vrot.slane %v2966_v43, 4  ;;  %v866_v8 = vsel %vm381_vm1, %v865_v49, %v840_v46 }
  0xe7   : > { %v872_v43 = vperm.slane %v866_v8, %v2919_v19  ;;  %v883_v45 = vrot.slane %v876_v13, 4 }
  0xe8   : > { %v658_v10 = vsel %vm381_vm1, 0.0, %v657_v40 }
  0xe9   : > { %v1317_v18 = vsel %vm1277_vm2, %v658_v10, -inf  ;;  %v881_v4 = vrot.slane %v872_v43, 4  ;;  %v884_v37 = vsel %vm381_vm1, 0.0, %v883_v45 }
  0xea   : > { %1324 = vmax.xlane.f32.xlu2 %v1323_v2  ;;  %1294 = vmax.xlane.f32.xlu1 %v1293_v5  ;;  %v1065_v2 = vrot.slane %v2515_v39, 4  ;;  %v1053_v5 = vrot.slane %v2475_v55, 4  ;;  %v1347_v40 = vsel %vm1277_vm2, %v884_v37, -inf }
  0xeb   : > { %v882_v47 = vsel %vm381_vm1, 0.0, %v881_v4 }
  0xec   : > { %v1066_v15 = vsel %vm381_vm1, %v1065_v2, %v2435_v58  ;;  %v1054_v31 = vsel %vm381_vm1, %v1053_v5, %v2839_v3  ;;  %v1341_v58 = vsel %vm1277_vm2, %v882_v47, -inf }
  0xed   : > { %v1072_v42 = vperm.slane %v1066_v15, %v2896_v50  ;;  %v1060_v56 = vperm.slane %v1054_v31, %v2896_v50  ;;  %v3029_v46 = vpop.permute.xlu0 %2517  ;;  %v1344_v15 = vsel %vm1277_vm2, %v876_v13, -inf }
  0xee   : > { %1327 = vmax.xlane.f32.xlu0 %v1326_v36  ;;  %v879_v36 = vrot.slane %v864_v14, 4 }
  0xef   : > { %v1077_v54 = vrot.slane %v1072_v42, 4  ;;  %v1079_v49 = vrot.slane %v1060_v56, 4 }
  0xf0   : > { %v880_v11 = vsel %vm381_vm1, 0.0, %v879_v36 }
  0xf1   : > { %v1335_v57 = vsel %vm1277_vm2, %v880_v11, -inf  ;;  %v1080_v59 = vsel %vm381_vm1, %v1072_v42, %v1079_v49 }
  0xf2   : > { %1288 = vmax.xlane.f32.xlu2 %v1287_v38  ;;  %1312 = vmax.xlane.f32.xlu1 %v1311_v61  ;;  %v1338_v38 = vsel %vm1277_vm2, %v872_v43, -inf  ;;  %v1055_v61 = vrot.slane %v2839_v3, 4  ;;  %v2519_v3 = vunpack.i.l.bf16 %v3029_v46  ;;  %v1088_v6 = vperm.slane %v1080_v59, %v2919_v19 }
  0xf4   : > { %v1056_v39 = vsel %vm381_vm1, %v2475_v55, %v1055_v61  ;;  %v2479_v55 = vunpack.i.l.bf16 %v2888_v35  ;;  %v449_v2 = vrot.slane %v2519_v3, 4  ;;  %v1356_v26 = vsel %vm1277_vm2, %v1088_v6, -inf }
  0xf6   : > { %1300 = vmax.xlane.f32.xlu0 %v1299_v1  ;;  %v1089_v1 = vrot.slane %v1076_v0, 4  ;;  %v437_v10 = vrot.slane %v2479_v55, 4  ;;  %v450_v43 = vsel %vm381_vm1, %v449_v2, %v2439_v7  ;;  %v2440_v2 = vunpack.i.h.bf16 %v2878_v28 }
  0xf7   : > { %v456_v36 = vperm.slane %v450_v43, %v2896_v50 }
  0xf9   : > { %v461_v11 = vrot.slane %v456_v36, 4 }
  0xfa   : > { %1306 = vmax.xlane.f32.xlu2 %v1305_v62  ;;  %1330 = vmax.xlane.f32.xlu1 %v1329_v63  ;;  %v1064_v62 = vperm.slane %v1056_v39, %v2896_v50  ;;  %v1078_v63 = vsel %vm381_vm1, %v1077_v54, %v1060_v56  ;;  %v2520_v54 = vunpack.i.h.bf16 %v3029_v46  ;;  %v439_v46 = vrot.slane %v2767_v17, 4 }
  0xfb   : > { %v1084_v5 = vperm.slane %v1078_v63, %v2919_v19 }
  0xfc   : > { %v1090_v8 = vsel %vm381_vm1, %v1089_v1, %v1064_v62  ;;  %v1091_v13 = vrot.slane %v1064_v62, 4  ;;  %v451_v62 = vrot.slane %v2439_v7, 4 }
  0xfd   : > { %v1096_v14 = vperm.slane %v1090_v8, %v2919_v19  ;;  %v1101_v31 = vrot.slane %v1084_v5, 4  ;;  %v2480_v8 = vunpack.i.h.bf16 %v2888_v35 }
  0xfe   : > { %1318 = vmax.xlane.f32.xlu0 %v1317_v18  ;;  %v1350_v18 = vsel %vm1277_vm2, %v1084_v5, -inf  ;;  %v1092_v49 = vsel %vm381_vm1, %v1076_v0, %v1091_v13  ;;  %v452_v0 = vsel %vm381_vm1, %v2519_v3, %v451_v62 }
  0xff   : > { %v1105_v42 = vrot.slane %v1096_v14, 4  ;;  %v1102_v4 = vsel %vm381_vm1, 0.0, %v1101_v31  ;;  %v1100_v63 = vperm.slane %v1092_v49, %v2919_v19  ;;  %v675_v49 = vrot.slane %v2440_v2, 4 }
 0x100   : > { %v1353_v47 = vsel %vm1277_vm2, %v1102_v4, -inf }
 0x101   : > { %v1106_v56 = vsel %vm381_vm1, 0.0, %v1105_v42  ;;  %v1368_v7 = vsel %vm1277_vm2, %v1100_v63, -inf  ;;  %v1107_v43 = vrot.slane %v1100_v63, 4  ;;  %v676_v62 = vsel %vm381_vm1, %v2520_v54, %v675_v49 }
 0x102   : > { %1333 = vmax.xlane.f32.xlu2 %v1332_v27  ;;  %1339 = vmax.xlane.f32.xlu1 %v1338_v38  ;;  %v1103_v27 = vrot.slane %v1088_v6, 4  ;;  %v438_v38 = vsel %vm381_vm1, %v437_v10, %v2767_v17  ;;  %v1365_v37 = vsel %vm1277_vm2, %v1106_v56, -inf  ;;  %v1362_v6 = vsel %vm1277_vm2, %v1096_v14, -inf }
 0x103   : > { %v444_v45 = vperm.slane %v438_v38, %v2896_v50  ;;  %v440_v17 = vsel %vm381_vm1, %v2479_v55, %v439_v46  ;;  %v1108_v14 = vsel %vm381_vm1, 0.0, %v1107_v43 }
 0x104   : > { %v1104_v61 = vsel %vm381_vm1, 0.0, %v1103_v27  ;;  %v1371_v38 = vsel %vm1277_vm2, %v1108_v14, -inf }
 0x105   : > { %v1359_v39 = vsel %vm1277_vm2, %v1104_v61, -inf  ;;  %v463_v1 = vrot.slane %v444_v45, 4 }
 0x106   : > { %1336 = vmax.xlane.f32.xlu0 %v1335_v57  ;;  %v462_v57 = vsel %vm381_vm1, %v461_v11, %v444_v45 }
 0x107   : > { %v468_v59 = vperm.slane %v462_v57, %v2919_v19  ;;  %v663_v57 = vrot.slane %v2774_v23, 4 }
 0x109   : > { %v1374_v28 = vsel %vm1277_vm2, %v468_v59, -inf  ;;  %v485_v35 = vrot.slane %v468_v59, 4  ;;  %v3100_v59 = vpop.permute.xlu2 %2527 }
 0x10a   : > { %1342 = vmax.xlane.f32.xlu2 %v1341_v58  ;;  %1348 = vmax.xlane.f32.xlu1 %v1347_v40  ;;  %v464_v58 = vsel %vm381_vm1, %v456_v36, %v463_v1  ;;  %v673_v40 = vrot.slane %v2520_v54, 4 }
 0x10b   : > { %v472_v5 = vperm.slane %v464_v58, %v2919_v19  ;;  %v486_v27 = vsel %vm381_vm1, 0.0, %v485_v35  ;;  %v2484_v35 = vunpack.i.l.bf16 %v2898_v51 }
 0x10c   : > { %v674_v10 = vsel %vm381_vm1, %v673_v40, %v2440_v2  ;;  %v1377_v61 = vsel %vm1277_vm2, %v486_v27, -inf }
 0x10d   : > { %v487_v3 = vrot.slane %v472_v5, 4  ;;  %v680_v31 = vperm.slane %v674_v10, %v2896_v50  ;;  %v1380_v40 = vsel %vm1277_vm2, %v472_v5, -inf  ;;  %v684_v10 = vperm.slane %v676_v62, %v2896_v50 }
 0x10e   : > { %1345 = vmax.xlane.f32.xlu0 %v1344_v15  ;;  %v460_v15 = vperm.slane %v452_v0, %v2896_v50  ;;  %v3102_v0 = vpop.permute.xlu1 %2522 }
 0x10f   : > { %v488_v42 = vsel %vm381_vm1, 0.0, %v487_v3  ;;  %v685_v4 = vrot.slane %v680_v31, 4 }
 0x110   : > { %v473_v36 = vrot.slane %v460_v15, 4  ;;  %v1383_v45 = vsel %vm1277_vm2, %v488_v42, -inf }
 0x112   : > { %1351 = vmax.xlane.f32.xlu2 %v1350_v18  ;;  %1357 = vmax.xlane.f32.xlu1 %v1356_v26  ;;  %v661_v18 = vrot.slane %v2480_v8, 4  ;;  %v448_v26 = vperm.slane %v440_v17, %v2896_v50  ;;  %v2524_v17 = vunpack.i.l.bf16 %v3102_v0 }
 0x114   : > { %v662_v55 = vsel %vm381_vm1, %v661_v18, %v2774_v23  ;;  %v475_v13 = vrot.slane %v448_v26, 4  ;;  %v474_v56 = vsel %vm381_vm1, %v473_v36, %v448_v26  ;;  %v664_v23 = vsel %vm381_vm1, %v2480_v8, %v663_v57 }
 0x115   : > { %v668_v11 = vperm.slane %v662_v55, %v2896_v50  ;;  %v672_v43 = vperm.slane %v664_v23, %v2896_v50  ;;  %v2444_v36 = vunpack.i.l.bf16 %v2882_v32  ;;  %v897_v55 = vrot.slane %v2524_v17, 4 }
 0x116   : > { %1354 = vmax.xlane.f32.xlu0 %v1353_v47  ;;  %v476_v47 = vsel %vm381_vm1, %v460_v15, %v475_v13 }
 0x117   : > { %v484_v1 = vperm.slane %v476_v47, %v2919_v19  ;;  %v687_v8 = vrot.slane %v668_v11, 4  ;;  %v699_v27 = vrot.slane %v672_v43, 4 }
 0x119   : > { %v1392_v2 = vsel %vm1277_vm2, %v484_v1, -inf  ;;  %v688_v26 = vsel %vm381_vm1, %v680_v31, %v687_v8  ;;  %v700_v13 = vsel %vm381_vm1, %v684_v10, %v699_v27  ;;  %v898_v31 = vsel %vm381_vm1, %v897_v55, %v2444_v36 }
 0x11a   : > { %1360 = vmax.xlane.f32.xlu2 %v1359_v39  ;;  %1366 = vmax.xlane.f32.xlu1 %v1365_v37  ;;  %v686_v39 = vsel %vm381_vm1, %v685_v4, %v668_v11  ;;  %v480_v37 = vperm.slane %v474_v56, %v2919_v19  ;;  %v3119_v4 = vpop.permute.xlu2 %2542  ;;  %v899_v11 = vrot.slane %v2444_v36, 4  ;;  %v708_v47 = vperm.slane %v700_v13, %v2919_v19 }
 0x11b   : > { %v692_v58 = vperm.slane %v686_v39, %v2919_v19  ;;  %v904_v62 = vperm.slane %v898_v31, %v2896_v50 }
 0x11c   : > { %v1386_v63 = vsel %vm1277_vm2, %v480_v37, -inf  ;;  %v489_v46 = vrot.slane %v480_v37, 4  ;;  %v900_v49 = vsel %vm381_vm1, %v2524_v17, %v899_v11 }
 0x11d   : > { %v709_v54 = vrot.slane %v692_v58, 4  ;;  %v1398_v39 = vsel %vm1277_vm2, %v692_v58, -inf  ;;  %v715_v58 = vrot.slane %v708_v47, 4  ;;  %v3140_v23 = vperm.slane %v900_v49, %v2896_v50 }
 0x11e   : > { %1363 = vmax.xlane.f32.xlu0 %v1362_v6  ;;  %v491_v6 = vrot.slane %v484_v1, 4  ;;  %v490_v5 = vsel %vm381_vm1, 0.0, %v489_v46  ;;  %v1416_v49 = vsel %vm1277_vm2, %v708_v47, -inf }
 0x11f   : > { %v710_v15 = vsel %vm381_vm1, 0.0, %v709_v54  ;;  %v1389_v18 = vsel %vm1277_vm2, %v490_v5, -inf }
 0x120   : > { %v1401_v14 = vsel %vm1277_vm2, %v710_v15, -inf }
 0x122   : > { %1369 = vmax.xlane.f32.xlu2 %v1368_v7  ;;  %1375 = vmax.xlane.f32.xlu1 %v1374_v28  ;;  %v492_v7 = vsel %vm381_vm1, 0.0, %v491_v6  ;;  %v697_v28 = vrot.slane %v684_v10, 4 }
 0x123   : > { %v1395_v3 = vsel %vm1277_vm2, %v492_v7, -inf }
 0x124   : > { %v698_v42 = vsel %vm381_vm1, %v697_v28, %v672_v43  ;;  %v909_v43 = vrot.slane %v904_v62, 4  ;;  %v2525_v28 = vunpack.i.h.bf16 %v3102_v0 }
 0x125   : > { %v704_v56 = vperm.slane %v698_v42, %v2919_v19 }
 0x126   : > { %1372 = vmax.xlane.f32.xlu0 %v1371_v38  ;;  %v885_v38 = vrot.slane %v2484_v35, 4  ;;  %v1121_v42 = vrot.slane %v2525_v28, 4 }
 0x127   : > { %v713_v46 = vrot.slane %v704_v56, 4 }
 0x128   : > { %v886_v37 = vsel %vm381_vm1, %v885_v38, %v2820_v53 }
 0x129   : > { %v892_v6 = vperm.slane %v886_v37, %v2896_v50  ;;  %v714_v7 = vsel %vm381_vm1, 0.0, %v713_v46 }
 0x12a   : > { %1378 = vmax.xlane.f32.xlu2 %v1377_v61  ;;  %1384 = vmax.xlane.f32.xlu1 %v1383_v45  ;;  %v3121_v61 = vpop.permute.xlu1 %2537  ;;  %v696_v45 = vperm.slane %v688_v26, %v2919_v19 }
 0x12b   : > { %v911_v15 = vrot.slane %v892_v6, 4  ;;  %v910_v36 = vsel %vm381_vm1, %v909_v43, %v892_v6 }
 0x12c   : > { %v1404_v1 = vsel %vm1277_vm2, %v696_v45, -inf  ;;  %v711_v57 = vrot.slane %v696_v45, 4  ;;  %v916_v45 = vperm.slane %v910_v36, %v2919_v19 }
 0x12d   : > { %v912_v55 = vsel %vm381_vm1, %v904_v62, %v911_v15 }
 0x12e   : > { %1381 = vmax.xlane.f32.xlu0 %v1380_v40  ;;  %v3134_v40 = vpop.permute.xlu0 %2532  ;;  %v712_v5 = vsel %vm381_vm1, 0.0, %v711_v57  ;;  %v920_v31 = vperm.slane %v912_v55, %v2919_v19  ;;  %v933_v57 = vrot.slane %v916_v45, 4 }
 0x12f   : > { %v1407_v8 = vsel %vm1277_vm2, %v712_v5, -inf }
 0x130   : > { %v934_v47 = vsel %vm381_vm1, 0.0, %v933_v57 }
 0x131   : > { %v1425_v36 = vsel %vm1277_vm2, %v934_v47, -inf }
 0x132   : > { %1387 = vmax.xlane.f32.xlu2 %v1386_v63  ;;  %1393 = vmax.xlane.f32.xlu1 %v1392_v2  ;;  %v1410_v63 = vsel %vm1277_vm2, %v704_v56, -inf  ;;  %v887_v2 = vrot.slane %v2820_v53, 4  ;;  %v716_v53 = vsel %vm381_vm1, 0.0, %v715_v58  ;;  %v2445_v56 = vunpack.i.h.bf16 %v2882_v32 }
 0x133   : > { %v1428_v32 = vsel %vm1277_vm2, %v920_v31, -inf }
 0x134   : > { %v888_v17 = vsel %vm381_vm1, %v2484_v35, %v887_v2  ;;  %v1419_v35 = vsel %vm1277_vm2, %v716_v53, -inf  ;;  %v1122_v37 = vsel %vm381_vm1, %v1121_v42, %v2445_v56  ;;  %v1111_v42 = vrot.slane %v2829_v60, 4 }
 0x135   : > { %v896_v26 = vperm.slane %v888_v17, %v2896_v50  ;;  %v1128_v46 = vperm.slane %v1122_v37, %v2896_v50  ;;  %v1123_v37 = vrot.slane %v2445_v56, 4 }
 0x136   : > { %1390 = vmax.xlane.f32.xlu0 %v1389_v18  ;;  %v921_v18 = vrot.slane %v3140_v23, 4 }
 0x137   : > { %v923_v17 = vrot.slane %v896_v26, 4 }
 0x13a   : > { %1396 = vmax.xlane.f32.xlu2 %v1395_v3  ;;  %1402 = vmax.xlane.f32.xlu1 %v1401_v14  ;;  %v2485_v3 = vunpack.i.h.bf16 %v2898_v51  ;;  %v1413_v14 = vsel %vm1277_vm2, %v714_v7, -inf  ;;  %v922_v51 = vsel %vm381_vm1, %v921_v18, %v896_v26  ;;  %v2489_v26 = vunpack.i.l.bf16 %v2991_v12 }
 0x13c   : > { %v1109_v13 = vrot.slane %v2485_v3, 4  ;;  %v1112_v57 = vsel %vm381_vm1, %v2485_v3, %v1111_v42 }
 0x13e   : > { %1399 = vmax.xlane.f32.xlu0 %v1398_v39  ;;  %v928_v39 = vperm.slane %v922_v51, %v2919_v19  ;;  %v1110_v62 = vsel %vm381_vm1, %v1109_v13, %v2829_v60  ;;  %v924_v13 = vsel %vm381_vm1, %v3140_v23, %v923_v17 }
 0x13f   : > { %v1116_v6 = vperm.slane %v1110_v62, %v2896_v50  ;;  %v493_v62 = vrot.slane %v2489_v26, 4  ;;  %v932_v23 = vperm.slane %v924_v13, %v2919_v19 }
 0x140   : > { %v937_v2 = vrot.slane %v928_v39, 4  ;;  %v1434_v17 = vsel %vm1277_vm2, %v928_v39, -inf }
 0x141   : > { %v1135_v55 = vrot.slane %v1116_v6, 4 }
 0x142   : > { %1405 = vmax.xlane.f32.xlu2 %v1404_v1  ;;  %1411 = vmax.xlane.f32.xlu1 %v1410_v63  ;;  %v1422_v1 = vsel %vm1277_vm2, %v916_v45, -inf  ;;  %v935_v63 = vrot.slane %v920_v31, 4  ;;  %v938_v18 = vsel %vm381_vm1, 0.0, %v937_v2  ;;  %v2449_v31 = vunpack.i.l.bf16 %v2880_v29 }
 0x143   : > { %v1437_v51 = vsel %vm1277_vm2, %v938_v18, -inf  ;;  %v1124_v2 = vsel %vm381_vm1, %v2525_v28, %v1123_v37 }
 0x144   : > { %v936_v43 = vsel %vm381_vm1, 0.0, %v935_v63  ;;  %v1132_v18 = vperm.slane %v1124_v2, %v2896_v50 }
 0x145   : > { %v3142_v10 = vpop.xlane.xlu1 %1321  ;;  %v3144_v54 = vpop.xlane.xlu2 %1297 }
 0x146   : > { %1408 = vmax.xlane.f32.xlu0 %v1407_v8  ;;  %v1133_v8 = vrot.slane %v1128_v46, 4  ;;  %v3213_v56 = vsel %vm1662_vm3, %v3142_v10, -inf }
 0x148   : > { %v1134_v45 = vsel %vm381_vm1, %v1133_v8, %v1116_v6 }
 0x149   : > { %v1280_v27 = vpop.xlane.xlu0 %1279  ;;  %v1140_v3 = vperm.slane %v1134_v45, %v2919_v19 }
 0x14a   : > { %1414 = vmax.xlane.f32.xlu2 %v1413_v14  ;;  %1420 = vmax.xlane.f32.xlu1 %v1419_v35  ;;  %v3183_v53 = vsel %vm1662_vm3, %v1280_v27, -inf  ;;  %v2529_v14 = vunpack.i.l.bf16 %v3100_v59  ;;  %v1431_v27 = vsel %vm1277_vm2, %v936_v43, -inf }
 0x14b   : > { %v1446_v42 = vsel %vm1277_vm2, %v1140_v3, -inf }
 0x14c   : > { %v505_v60 = vrot.slane %v2529_v14, 4 }
 0x14d   : > { %v3161_v38 = vpop.xlane.xlu2 %1285  ;;  %v3166_v11 = vpop.xlane.xlu1 %1303 }
 0x14e   : > { %1417 = vmax.xlane.f32.xlu0 %v1416_v49  ;;  %v506_v10 = vsel %vm381_vm1, %v505_v60, %v2449_v31 }
 0x14f   : > { %v3238_v39 = vperm.slane %v506_v10, %v2896_v50 }
 0x151   : > { %v1292_v58 = vpop.xlane.xlu0 %1291 }
 0x152   : > { %1423 = vmax.xlane.f32.xlu2 %v1422_v1  ;;  %1429 = vmax.xlane.f32.xlu1 %v1428_v32  ;;  %v1136_v1 = vsel %vm381_vm1, %v1128_v46, %v1135_v55  ;;  %v1919_v32 = vlaneseq  ;;  %v1669_v47 = vsel %vm1662_vm3, %v1292_v58, -inf  ;;  %v1440_v58 = vsel %vm1277_vm2, %v932_v23, -inf }
 0x153   : > { %v3224_v0 = vperm.slane %v1136_v1, %v2919_v19  ;;  %v494_v55 = vsel %vm381_vm1, %v493_v62, %v2757_v9 }
 0x154   : > { %v1920_v8 = vand.u32 127, %v1919_v32  ;;  %v1145_v32 = vrot.slane %v1132_v18, 4  ;;  %v3244_v62 = vperm.slane %v494_v55, %v2896_v50 }
 0x155   : > { %v3178_v5 = vpop.xlane.xlu2 %1315  ;;  %v1283_v7 = vpop.xlane.xlu1 %1282  ;;  %v1159_v13 = vrot.slane %v3224_v0, 4 }
 0x156   : > { %v3186_v15 = vsel %vm1662_vm3, %v1283_v7, -inf  ;;  %1426 = vmax.xlane.f32.xlu0 %v1425_v36  ;;  %v939_v36 = vrot.slane %v932_v23, 4  ;;  %v3240_v37 = vadd.s32 4294967295, %v1920_v8 }
 0x157   : > { %v1665_v35 = vmax.f32 %v3183_v53, %v3186_v15  ;;  %v1160_v10 = vsel %vm381_vm1, 0.0, %v1159_v13  ;;  %v507_v15 = vrot.slane %v2449_v31, 4 }
 0x158   : > { %v940_v1 = vsel %vm381_vm1, 0.0, %v939_v36 }
 0x159   : > { %v1310_v49 = vpop.xlane.xlu0 %1309  ;;  %v1443_v8 = vsel %vm1277_vm2, %v940_v1, -inf }
 0x15a   : > { %1432 = vmax.xlane.f32.xlu2 %v1431_v27  ;;  %1438 = vmax.xlane.f32.xlu1 %v1437_v51  ;;  %v1157_v27 = vrot.slane %v1140_v3, 4  ;;  %v1120_v51 = vperm.slane %v1112_v57, %v2896_v50  ;;  %v1678_v3 = vsel %vm1662_vm3, %v1310_v49, -inf }
 0x15c   : > { %v1158_v2 = vsel %vm381_vm1, 0.0, %v1157_v27  ;;  %v1146_v27 = vsel %vm381_vm1, %v1145_v32, %v1120_v51 }
 0x15d   : > { %v1325_v63 = vpop.xlane.xlu2 %1324  ;;  %v1295_v46 = vpop.xlane.xlu1 %1294  ;;  %v1449_v49 = vsel %vm1277_vm2, %v1158_v2, -inf  ;;  %v1152_v32 = vperm.slane %v1146_v27, %v2919_v19 }
 0x15e   : > { %v3216_v6 = vsel %vm1662_vm3, %v1325_v63, -inf  ;;  %v1670_v43 = vsel %vm1662_vm3, %v1295_v46, -inf  ;;  %1435 = vmax.xlane.f32.xlu0 %v1434_v17  ;;  %v1666_v63 = vsel %vm1662_vm3, %v3161_v38, -inf  ;;  %v1147_v46 = vrot.slane %v1120_v51, 4 }
 0x15f   : > { %v1686_v7 = vmax.f32 %v3213_v56, %v3216_v6  ;;  %v1671_v28 = vmax.f32 %v1669_v47, %v1670_v43  ;;  %v1922_v38 = vperm.slane %v1665_v35, %v3240_v37  ;;  %v495_v35 = vrot.slane %v2757_v9, 4 }
 0x160   : > { %v1148_v13 = vsel %vm381_vm1, %v1132_v18, %v1147_v46 }
 0x161   : > { %v1328_v45 = vpop.xlane.xlu0 %1327  ;;  %v1924_v55 = vperm.slane %v1671_v28, %v3240_v37 }
 0x162   : > { %1441 = vmax.xlane.f32.xlu2 %v1440_v58  ;;  %1447 = vmax.xlane.f32.xlu1 %v1446_v42  ;;  %v517_v58 = vrot.slane %v3238_v39, 4  ;;  %v1455_v42 = vsel %vm1277_vm2, %v1160_v10, -inf }
 0x164   : > { %v518_v53 = vsel %vm381_vm1, %v517_v58, %v3244_v62 }
 0x165   : > { %v1289_v60 = vpop.xlane.xlu2 %1288  ;;  %v1313_v23 = vpop.xlane.xlu1 %1312  ;;  %v3281_v46 = vperm.slane %v518_v53, %v2919_v19 }
 0x166   : > { %v1667_v57 = vsel %vm1662_vm3, %v1289_v60, -inf  ;;  %v1679_v43 = vsel %vm1662_vm3, %v1313_v23, -inf  ;;  %1444 = vmax.xlane.f32.xlu0 %v1443_v8  ;;  %v1675_v23 = vsel %vm1662_vm3, %v3166_v11, -inf  ;;  %v1452_v8 = vsel %vm1277_vm2, %v3224_v0, -inf }
 0x167   : > { %v1668_v47 = vmax.f32 %v1666_v63, %v1667_v57  ;;  %v1680_v17 = vmax.f32 %v1678_v3, %v1679_v43  ;;  %v1672_v63 = vsel %vm1662_vm3, %v3144_v54, -inf  ;;  %v1156_v57 = vperm.slane %v1148_v13, %v2919_v19 }
 0x168   : > { %v3284_v3 = vsel %vm1662_vm3, %v1328_v45, -inf  ;;  %v496_v43 = vsel %vm381_vm1, %v2489_v26, %v495_v35  ;;  %v508_v26 = vsel %vm381_vm1, %v2529_v14, %v507_v15  ;;  %v1681_v14 = vsel %vm1662_vm3, %v3178_v5, -inf }
 0x169   : > { %v1923_v36 = vperm.slane %v1668_v47, %v3240_v37  ;;  %v1301_v1 = vpop.xlane.xlu0 %1300  ;;  %v1939_v45 = vperm.slane %v1680_v17, %v3240_v37  ;;  %v541_v17 = vrot.slane %v3281_v46, 4  ;;  %v504_v13 = vperm.slane %v496_v43, %v2896_v50 }
 0x16a   : > { %1450 = vmax.xlane.f32.xlu2 %v1449_v49  ;;  %1456 = vmax.xlane.f32.xlu1 %v1455_v42  ;;  %v1673_v51 = vsel %vm1662_vm3, %v1301_v1, -inf  ;;  %v1163_v42 = vrot.slane %v1156_v57, 4 }
 0x16b   : > { %v1987_v60 = vsel %vm1986_vm4, %v1923_v36, %v1922_v38  ;;  %v1674_v2 = vmax.f32 %v1672_v63, %v1673_v51  ;;  %v1458_v38 = vsel %vm1277_vm2, %v1152_v32, -inf  ;;  %v1161_v36 = vrot.slane %v1152_v32, 4 }
 0x16c   : > { %v1989_v28 = vsel %vm1988_vm5, %v1924_v55, %v1987_v60  ;;  %v1464_v55 = vsel %vm1277_vm2, %v1156_v57, -inf  ;;  %v516_v60 = vperm.slane %v508_v26, %v2896_v50  ;;  %v1164_v63 = vsel %vm381_vm1, 0.0, %v1163_v42 }
 0x16d   : > { %v1307_v18 = vpop.xlane.xlu2 %1306  ;;  %v1331_v9 = vpop.xlane.xlu1 %1330  ;;  %v1925_v11 = vperm.slane %v1674_v2, %v3240_v37  ;;  %v1162_v35 = vsel %vm381_vm1, 0.0, %v1161_v36  ;;  %v519_v51 = vrot.slane %v3244_v62, 4  ;;  %v2490_v32 = vunpack.i.h.bf16 %v2991_v12 }
 0x16e   : > { %v1676_v31 = vsel %vm1662_vm3, %v1307_v18, -inf  ;;  %v3287_v47 = vsel %vm1662_vm3, %v1331_v9, -inf  ;;  %1453 = vmax.xlane.f32.xlu0 %v1452_v8  ;;  %v542_v18 = vsel %vm381_vm1, 0.0, %v541_v17  ;;  %v531_v5 = vrot.slane %v504_v13, 4 }
 0x16f   : > { %v1677_v54 = vmax.f32 %v1675_v23, %v1676_v31  ;;  %v1689_v10 = vmax.f32 %v3284_v3, %v3287_v47  ;;  %v3304_v49 = vsel %vm1990_vm6, %v1925_v11, %v1989_v28  ;;  %v1461_v23 = vsel %vm1277_vm2, %v1162_v35, -inf }
 0x170   : > { %v2530_v2 = vunpack.i.h.bf16 %v3100_v59  ;;  %v1941_v31 = vperm.slane %v1686_v7, %v3240_v37  ;;  %v1467_v9 = vsel %vm1277_vm2, %v1164_v63, -inf  ;;  %v529_v62 = vrot.slane %v516_v60, 4 }
 0x171   : > { %v1938_v58 = vperm.slane %v1677_v54, %v3240_v37  ;;  %v1319_v27 = vpop.xlane.xlu0 %1318  ;;  %v1473_v12 = vsel %vm1277_vm2, %v542_v18, -inf  ;;  %v520_v54 = vsel %vm381_vm1, %v3238_v39, %v519_v51  ;;  %v2450_v47 = vunpack.i.h.bf16 %v2880_v29 }
 0x172   : > { %1459 = vmax.xlane.f32.xlu2 %v1458_v38  ;;  %1465 = vmax.xlane.f32.xlu1 %v1464_v55  ;;  %v1682_v53 = vsel %vm1662_vm3, %v1319_v27, -inf  ;;  %v530_v56 = vsel %vm381_vm1, %v529_v62, %v504_v13  ;;  %v717_v6 = vrot.slane %v2490_v32, 4  ;;  %v532_v43 = vsel %vm381_vm1, %v516_v60, %v531_v5 }
 0x173   : > { %v2001_v0 = vsel %vm1986_vm4, %v1939_v45, %v1938_v58  ;;  %v1683_v1 = vmax.f32 %v1681_v14, %v1682_v53  ;;  %v729_v11 = vrot.slane %v2530_v2, 4  ;;  %v528_v39 = vperm.slane %v520_v54, %v2919_v19 }
 0x174   : > { %v536_v55 = vperm.slane %v530_v56, %v2919_v19  ;;  %v731_v42 = vrot.slane %v2450_v47, 4  ;;  %v3345_v27 = vperm.slane %v532_v43, %v2919_v19  ;;  %v1954_v13 = vperm.slane %v1689_v10, %v3240_v37 }
 0x175   : > { %v1334_v15 = vpop.xlane.xlu2 %1333  ;;  %v1340_v28 = vpop.xlane.xlu1 %1339  ;;  %v1940_v57 = vperm.slane %v1683_v1, %v3240_v37  ;;  %v1470_v14 = vsel %vm1277_vm2, %v3281_v46, -inf  ;;  %v718_v53 = vsel %vm381_vm1, %v717_v6, %v2765_v16  ;;  %v1476_v1 = vsel %vm1277_vm2, %v528_v39, -inf }
 0x176   : > { %1462 = vmax.xlane.f32.xlu0 %v1461_v23  ;;  %v1690_v8 = vsel %vm1662_vm3, %v1334_v15, -inf  ;;  %v1693_v29 = vsel %vm1662_vm3, %v1340_v28, -inf  ;;  %v730_v15 = vsel %vm381_vm1, %v729_v11, %v2450_v47  ;;  %v543_v28 = vrot.slane %v528_v39, 4 }
 0x177   : > { %v2002_v3 = vsel %vm1988_vm5, %v1940_v57, %v2001_v0  ;;  %v719_v0 = vrot.slane %v2765_v16, 4  ;;  %v1482_v10 = vsel %vm1277_vm2, %v536_v55, -inf  ;;  %v545_v51 = vrot.slane %v536_v55, 4 }
 0x178   : > { %v3333_v59 = vsel %vm1990_vm6, %v1941_v31, %v2002_v3  ;;  %v732_v18 = vsel %vm381_vm1, %v2530_v2, %v731_v42  ;;  %v547_v16 = vrot.slane %v3345_v27, 4  ;;  %v724_v57 = vperm.slane %v718_v53, %v2896_v50 }
 0x179   : > { %v1337_v7 = vpop.xlane.xlu0 %1336  ;;  %v736_v23 = vperm.slane %v730_v15, %v2896_v50  ;;  %v720_v5 = vsel %vm381_vm1, %v2490_v32, %v719_v0  ;;  %v3368_v2 = vperm.slane %v732_v18, %v2896_v50  ;;  %v546_v56 = vsel %vm381_vm1, 0.0, %v545_v51 }
 0x17a   : > { %1468 = vmax.xlane.f32.xlu2 %v1467_v9  ;;  %1474 = vmax.xlane.f32.xlu1 %v1473_v12  ;;  %v1691_v45 = vsel %vm1662_vm3, %v1337_v7, -inf  ;;  %v544_v12 = vsel %vm381_vm1, 0.0, %v543_v28  ;;  %v3372_v6 = vperm.slane %v720_v5, %v2896_v50  ;;  %v548_v32 = vsel %vm381_vm1, 0.0, %v547_v16 }
 0x17b   : > { %v1692_v38 = vmax.f32 %v1690_v8, %v1691_v45  ;;  %v743_v7 = vrot.slane %v724_v57, 4  ;;  %v2534_v43 = vunpack.i.l.bf16 %v3134_v40  ;;  %v1479_v8 = vsel %vm1277_vm2, %v544_v12, -inf }
 0x17c   : > { %v741_v45 = vrot.slane %v736_v23, 4  ;;  %v753_v39 = vrot.slane %v3368_v2, 4 }
 0x17d   : > { %v1343_v58 = vpop.xlane.xlu2 %1342  ;;  %v1349_v26 = vpop.xlane.xlu1 %1348  ;;  %v1955_v60 = vperm.slane %v1692_v38, %v3240_v37  ;;  %v1491_v38 = vsel %vm1277_vm2, %v548_v32, -inf  ;;  %v744_v55 = vsel %vm381_vm1, %v736_v23, %v743_v7  ;;  %v953_v42 = vrot.slane %v2534_v43, 4 }
 0x17e   : > { %v1694_v36 = vsel %vm1662_vm3, %v1343_v58, -inf  ;;  %1471 = vmax.xlane.f32.xlu0 %v1470_v14  ;;  %v1697_v9 = vsel %vm1662_vm3, %v1349_v26, -inf  ;;  %v1485_v58 = vsel %vm1277_vm2, %v546_v56, -inf  ;;  %v2494_v26 = vunpack.i.l.bf16 %v2892_v41 }
 0x17f   : > { %v1695_v17 = vmax.f32 %v1693_v29, %v1694_v36  ;;  %v2013_v63 = vsel %vm1986_vm4, %v1955_v60, %v1954_v13  ;;  %v742_v36 = vsel %vm381_vm1, %v741_v45, %v724_v57  ;;  %v2454_v13 = vunpack.i.l.bf16 %v2886_v34 }
 0x180   : > { %v748_v15 = vperm.slane %v742_v36, %v2919_v19  ;;  %v941_v51 = vrot.slane %v2494_v26, 4  ;;  %v1488_v57 = vsel %vm1277_vm2, %v3345_v27, -inf }
 0x181   : > { %v1956_v35 = vperm.slane %v1695_v17, %v3240_v37  ;;  %v1346_v31 = vpop.xlane.xlu0 %1345  ;;  %v754_v17 = vsel %vm381_vm1, %v753_v39, %v3372_v6  ;;  %v954_v16 = vsel %vm381_vm1, %v953_v42, %v2454_v13 }
 0x182   : > { %1477 = vmax.xlane.f32.xlu2 %v1476_v1  ;;  %1483 = vmax.xlane.f32.xlu1 %v1482_v10  ;;  %v1696_v62 = vsel %vm1662_vm3, %v1346_v31, -inf  ;;  %v752_v10 = vperm.slane %v744_v55, %v2919_v19  ;;  %v1494_v31 = vsel %vm1277_vm2, %v748_v15, -inf  ;;  %v942_v12 = vsel %vm381_vm1, %v941_v51, %v2806_v44 }
 0x183   : > { %v2014_v46 = vsel %vm1988_vm5, %v1956_v35, %v2013_v63  ;;  %v1698_v54 = vmax.f32 %v1696_v62, %v1697_v9  ;;  %v765_v9 = vrot.slane %v748_v15, 4  ;;  %v948_v36 = vperm.slane %v942_v12, %v2896_v50 }
 0x184   : > { %v1500_v62 = vsel %vm1277_vm2, %v752_v10, -inf }
 0x185   : > { %v1352_v3 = vpop.xlane.xlu2 %1351  ;;  %v1358_v47 = vpop.xlane.xlu1 %1357  ;;  %v1957_v11 = vperm.slane %v1698_v54, %v3240_v37  ;;  %v960_v54 = vperm.slane %v954_v16, %v2896_v50 }
 0x186   : > { %1480 = vmax.xlane.f32.xlu0 %v1479_v8  ;;  %v1699_v60 = vsel %vm1662_vm3, %v1352_v3, -inf  ;;  %v1702_v35 = vsel %vm1662_vm3, %v1358_v47, -inf  ;;  %v767_v3 = vrot.slane %v752_v10, 4  ;;  %v766_v8 = vsel %vm381_vm1, 0.0, %v765_v9 }
 0x187   : > { %v3381_v29 = vsel %vm1990_vm6, %v1957_v11, %v2014_v46  ;;  %v760_v46 = vperm.slane %v754_v17, %v2919_v19  ;;  %v965_v42 = vrot.slane %v960_v54, 4  ;;  %v1497_v17 = vsel %vm1277_vm2, %v766_v8, -inf }
 0x188   : > { %v768_v39 = vsel %vm381_vm1, 0.0, %v767_v3  ;;  %v943_v10 = vrot.slane %v2806_v44, 4  ;;  %v2495_v3 = vunpack.i.h.bf16 %v2892_v41 }
 0x189   : > { %v1355_v0 = vpop.xlane.xlu0 %1354  ;;  %v769_v27 = vrot.slane %v760_v46, 4 }
 0x18a   : > { %1486 = vmax.xlane.f32.xlu2 %v1485_v58  ;;  %1492 = vmax.xlane.f32.xlu1 %v1491_v38  ;;  %v1700_v14 = vsel %vm1662_vm3, %v1355_v0, -inf  ;;  %v755_v38 = vrot.slane %v3372_v6, 4 }
 0x18b   : > { %v1701_v1 = vmax.f32 %v1699_v60, %v1700_v14  ;;  %v770_v55 = vsel %vm381_vm1, 0.0, %v769_v27  ;;  %v2535_v60 = vunpack.i.h.bf16 %v3134_v40  ;;  %v1503_v14 = vsel %vm1277_vm2, %v768_v39, -inf }
 0x18c   : > { %v1509_v15 = vsel %vm1277_vm2, %v770_v55, -inf  ;;  %v756_v6 = vsel %vm381_vm1, %v3368_v2, %v755_v38 }
 0x18d   : > { %v1361_v53 = vpop.xlane.xlu2 %1360  ;;  %v1367_v63 = vpop.xlane.xlu1 %1366  ;;  %v1970_v23 = vperm.slane %v1701_v1, %v3240_v37  ;;  %v966_v1 = vsel %vm381_vm1, %v965_v42, %v948_v36  ;;  %v1177_v16 = vrot.slane %v2535_v60, 4 }
 0x18e   : > { %v1703_v28 = vsel %vm1662_vm3, %v1361_v53, -inf  ;;  %1489 = vmax.xlane.f32.xlu0 %v1488_v57  ;;  %v1706_v32 = vsel %vm1662_vm3, %v1367_v63, -inf  ;;  %v955_v63 = vrot.slane %v2454_v13, 4  ;;  %v972_v44 = vperm.slane %v966_v1, %v2919_v19 }
 0x18f   : > { %v1704_v18 = vmax.f32 %v1702_v35, %v1703_v28  ;;  %v967_v35 = vrot.slane %v948_v36, 4  ;;  %v2455_v28 = vunpack.i.h.bf16 %v2886_v34 }
 0x190   : > { %v956_v12 = vsel %vm381_vm1, %v2534_v43, %v955_v63 }
 0x191   : > { %v1971_v5 = vperm.slane %v1704_v18, %v3240_v37  ;;  %v1364_v56 = vpop.xlane.xlu0 %1363  ;;  %v968_v18 = vsel %vm381_vm1, %v960_v54, %v967_v35  ;;  %v964_v43 = vperm.slane %v956_v12, %v2896_v50  ;;  %v1179_v12 = vrot.slane %v2455_v28, 4 }
 0x192   : > { %1495 = vmax.xlane.f32.xlu2 %v1494_v31  ;;  %1501 = vmax.xlane.f32.xlu1 %v1500_v62  ;;  %v1705_v7 = vsel %vm1662_vm3, %v1364_v56, -inf  ;;  %v1506_v56 = vsel %vm1277_vm2, %v760_v46, -inf  ;;  %v1518_v46 = vsel %vm1277_vm2, %v972_v44, -inf }
 0x193   : > { %v2025_v47 = vsel %vm1986_vm4, %v1971_v5, %v1970_v23  ;;  %v1707_v45 = vmax.f32 %v1705_v7, %v1706_v32  ;;  %v764_v5 = vperm.slane %v756_v6, %v2919_v19  ;;  %v944_v32 = vsel %vm381_vm1, %v2494_v26, %v943_v10 }
 0x194   : > { %v1178_v7 = vsel %vm381_vm1, %v1177_v16, %v2455_v28  ;;  %v1165_v26 = vrot.slane %v2495_v3, 4  ;;  %v952_v55 = vperm.slane %v944_v32, %v2896_v50  ;;  %v977_v35 = vrot.slane %v964_v43, 4 }
 0x195   : > { %v1370_v11 = vpop.xlane.xlu2 %1369  ;;  %v1376_v58 = vpop.xlane.xlu1 %1375  ;;  %v1972_v0 = vperm.slane %v1707_v45, %v3240_v37  ;;  %v771_v8 = vrot.slane %v764_v5, 4  ;;  %v3461_v38 = vperm.slane %v1178_v7, %v2896_v50  ;;  %v1180_v28 = vsel %vm381_vm1, %v2535_v60, %v1179_v12 }
 0x196   : > { %1498 = vmax.xlane.f32.xlu0 %v1497_v17  ;;  %v1708_v57 = vsel %vm1662_vm3, %v1370_v11, -inf  ;;  %v1711_v31 = vsel %vm1662_vm3, %v1376_v58, -inf  ;;  %v1512_v11 = vsel %vm1277_vm2, %v764_v5, -inf  ;;  %v989_v58 = vrot.slane %v972_v44, 4 }
 0x197   : > { %v2026_v53 = vsel %vm1988_vm5, %v1972_v0, %v2025_v47  ;;  %v976_v47 = vperm.slane %v968_v18, %v2919_v19  ;;  %v1166_v1 = vsel %vm381_vm1, %v1165_v26, %v2818_v52  ;;  %v1189_v16 = vrot.slane %v3461_v38, 4 }
 0x198   : > { %v990_v6 = vsel %vm381_vm1, 0.0, %v989_v58  ;;  %v1167_v58 = vrot.slane %v2818_v52, 4  ;;  %v1188_v60 = vperm.slane %v1180_v28, %v2896_v50 }
 0x199   : > { %v1373_v51 = vpop.xlane.xlu0 %1372  ;;  %v991_v39 = vrot.slane %v976_v47, 4 }
 0x19a   : > { %1504 = vmax.xlane.f32.xlu2 %v1503_v14  ;;  %1510 = vmax.xlane.f32.xlu1 %v1509_v15  ;;  %v1709_v23 = vsel %vm1662_vm3, %v1373_v51, -inf  ;;  %v772_v14 = vsel %vm381_vm1, 0.0, %v771_v8  ;;  %v1168_v40 = vsel %vm381_vm1, %v2495_v3, %v1167_v58 }
 0x19b   : > { %v1710_v9 = vmax.f32 %v1708_v57, %v1709_v23  ;;  %v992_v63 = vsel %vm381_vm1, 0.0, %v991_v39  ;;  %v1515_v18 = vsel %vm1277_vm2, %v772_v14, -inf  ;;  %v1521_v57 = vsel %vm1277_vm2, %v990_v6, -inf }
 0x19c   : > { %v979_v23 = vrot.slane %v952_v55, 4  ;;  %v1176_v41 = vperm.slane %v1168_v40, %v2896_v50 }
 0x19d   : > { %v1379_v2 = vpop.xlane.xlu2 %1378  ;;  %v1385_v62 = vpop.xlane.xlu1 %1384  ;;  %v1973_v27 = vperm.slane %v1710_v9, %v3240_v37  ;;  %v978_v9 = vsel %vm381_vm1, %v977_v35, %v952_v55 }
 0x19e   : > { %v1712_v13 = vsel %vm1662_vm3, %v1379_v2, -inf  ;;  %1507 = vmax.xlane.f32.xlu0 %v1506_v56  ;;  %v1715_v42 = vsel %vm1662_vm3, %v1385_v62, -inf  ;;  %v1172_v2 = vperm.slane %v1166_v1, %v2896_v50  ;;  %v984_v32 = vperm.slane %v978_v9, %v2919_v19 }
 0x19f   : > { %v1713_v54 = vmax.f32 %v1711_v31, %v1712_v13  ;;  %v3455_v45 = vsel %vm1990_vm6, %v1973_v27, %v2026_v53  ;;  %v1527_v31 = vsel %vm1277_vm2, %v992_v63, -inf  ;;  %v980_v13 = vsel %vm381_vm1, %v964_v43, %v979_v23 }
 0x1a0   : > { %v1190_v44 = vsel %vm381_vm1, %v1189_v16, %v1172_v2  ;;  %v988_v43 = vperm.slane %v980_v13, %v2919_v19  ;;  %v2499_v23 = vunpack.i.l.bf16 %v2922_v20  ;;  %v2540_v9 = vunpack.i.h.bf16 %v3121_v61 }
 0x1a1   : > { %v1382_v36 = vpop.xlane.xlu0 %1381  ;;  %v1926_v10 = vperm.slane %v1713_v54, %v3240_v37  ;;  %v3492_v34 = vperm.slane %v1190_v44, %v2919_v19 }
 0x1a2   : > { %1513 = vmax.xlane.f32.xlu2 %v1512_v11  ;;  %1519 = vmax.xlane.f32.xlu1 %v1518_v46  ;;  %v1714_v0 = vsel %vm1662_vm3, %v1382_v36, -inf  ;;  %v1524_v36 = vsel %vm1277_vm2, %v976_v47, -inf  ;;  %v995_v14 = vrot.slane %v988_v43, 4 }
 0x1a3   : > { %v1716_v53 = vmax.f32 %v1714_v0, %v1715_v42  ;;  %v1530_v42 = vsel %vm1277_vm2, %v984_v32, -inf  ;;  %v993_v0 = vrot.slane %v984_v32, 4  ;;  %v2459_v32 = vunpack.i.l.bf16 %v2936_v48 }
 0x1a5   : > { %v1388_v17 = vpop.xlane.xlu2 %1387  ;;  %v1394_v15 = vpop.xlane.xlu1 %1393  ;;  %v1927_v51 = vperm.slane %v1716_v53, %v3240_v37  ;;  %v1213_v53 = vrot.slane %v3492_v34, 4  ;;  %v994_v63 = vsel %vm381_vm1, 0.0, %v993_v0 }
 0x1a6   : > { %1516 = vmax.xlane.f32.xlu0 %v1515_v18  ;;  %v1717_v54 = vsel %vm1662_vm3, %v1388_v17, -inf  ;;  %v1720_v7 = vsel %vm1662_vm3, %v1394_v15, -inf  ;;  %v1536_v17 = vsel %vm1277_vm2, %v988_v43, -inf  ;;  %v2539_v18 = vunpack.i.l.bf16 %v3121_v61 }
 0x1a7   : > { %v1992_v5 = vsel %vm1986_vm4, %v1927_v51, %v1926_v10  ;;  %v996_v51 = vsel %vm381_vm1, 0.0, %v995_v14  ;;  %v1214_v16 = vsel %vm381_vm1, 0.0, %v1213_v53  ;;  %v1542_v53 = vsel %vm1277_vm2, %v3492_v34, -inf }
 0x1a8   : > { %v1539_v13 = vsel %vm1277_vm2, %v996_v51, -inf  ;;  %v1545_v44 = vsel %vm1277_vm2, %v1214_v16, -inf }
 0x1a9   : > { %v1391_v62 = vpop.xlane.xlu0 %1390 }
 0x1aa   : > { %1522 = vmax.xlane.f32.xlu2 %v1521_v57  ;;  %1528 = vmax.xlane.f32.xlu1 %v1527_v31  ;;  %v1718_v27 = vsel %vm1662_vm3, %v1391_v62, -inf  ;;  %v1201_v57 = vrot.slane %v1188_v60, 4  ;;  %v1191_v31 = vrot.slane %v1172_v2, 4  ;;  %v1203_v62 = vrot.slane %v1176_v41, 4 }
 0x1ab   : > { %v1719_v11 = vmax.f32 %v1717_v54, %v1718_v27  ;;  %v561_v54 = vrot.slane %v2539_v18, 4  ;;  %v2500_v2 = vunpack.i.h.bf16 %v2922_v20 }
 0x1ac   : > { %v1192_v12 = vsel %vm381_vm1, %v3461_v38, %v1191_v31  ;;  %v1202_v27 = vsel %vm381_vm1, %v1201_v57, %v1176_v41 }
 0x1ad   : > { %v1397_v56 = vpop.xlane.xlu2 %1396  ;;  %v1403_v46 = vpop.xlane.xlu1 %1402  ;;  %v1928_v39 = vperm.slane %v1719_v11, %v3240_v37  ;;  %v1204_v11 = vsel %vm381_vm1, %v1188_v60, %v1203_v62  ;;  %v1200_v58 = vperm.slane %v1192_v12, %v2919_v19  ;;  %v562_v0 = vsel %vm381_vm1, %v561_v54, %v2459_v32 }
 0x1ae   : > { %v1721_v8 = vsel %vm1662_vm3, %v1397_v56, -inf  ;;  %1525 = vmax.xlane.f32.xlu0 %v1524_v36  ;;  %v1724_v6 = vsel %vm1662_vm3, %v1403_v46, -inf  ;;  %v549_v56 = vrot.slane %v2499_v23, 4  ;;  %v773_v34 = vrot.slane %v2500_v2, 4 }
 0x1af   : > { %v1722_v26 = vmax.f32 %v1720_v7, %v1721_v8  ;;  %v1993_v52 = vsel %vm1988_vm5, %v1928_v39, %v1992_v5  ;;  %v1533_v5 = vsel %vm1277_vm2, %v994_v63, -inf  ;;  %v785_v8 = vrot.slane %v2540_v9, 4 }
 0x1b0   : > { %v550_v14 = vsel %vm381_vm1, %v549_v56, %v2864_v24  ;;  %v568_v63 = vperm.slane %v562_v0, %v2896_v50 }
 0x1b1   : > { %v1929_v55 = vperm.slane %v1722_v26, %v3240_v37  ;;  %v1400_v15 = vpop.xlane.xlu0 %1399  ;;  %v556_v57 = vperm.slane %v550_v14, %v2896_v50 }
 0x1b2   : > { %1531 = vmax.xlane.f32.xlu2 %v1530_v42  ;;  %1537 = vmax.xlane.f32.xlu1 %v1536_v17  ;;  %v1723_v35 = vsel %vm1662_vm3, %v1400_v15, -inf  ;;  %v2460_v42 = vunpack.i.h.bf16 %v2936_v48  ;;  %v3546_v17 = vperm.slane %v1204_v11, %v2919_v19  ;;  %v774_v11 = vsel %vm381_vm1, %v773_v34, %v2866_v25 }
 0x1b3   : > { %v3508_v47 = vsel %vm1990_vm6, %v1929_v55, %v1993_v52  ;;  %v1725_v10 = vmax.f32 %v1723_v35, %v1724_v6  ;;  %v1208_v55 = vperm.slane %v1202_v27, %v2919_v19  ;;  %v1548_v35 = vsel %vm1277_vm2, %v1200_v58, -inf }
 0x1b4   : > { %v786_v15 = vsel %vm381_vm1, %v785_v8, %v2460_v42  ;;  %v1219_v16 = vrot.slane %v3546_v17, 4 }
 0x1b5   : > { %v1406_v1 = vpop.xlane.xlu2 %1405  ;;  %v1412_v3 = vpop.xlane.xlu1 %1411  ;;  %v1942_v40 = vperm.slane %v1725_v10, %v3240_v37  ;;  %v1554_v10 = vsel %vm1277_vm2, %v1208_v55, -inf }
 0x1b6   : > { %1534 = vmax.xlane.f32.xlu0 %v1533_v5  ;;  %v1726_v38 = vsel %vm1662_vm3, %v1406_v1, -inf  ;;  %v1729_v26 = vsel %vm1662_vm3, %v1412_v3, -inf  ;;  %v1215_v1 = vrot.slane %v1200_v58, 4  ;;  %v1217_v3 = vrot.slane %v1208_v55, 4 }
 0x1b7   : > { %v3568_v5 = vperm.slane %v786_v15, %v2896_v50  ;;  %v1220_v8 = vsel %vm381_vm1, 0.0, %v1219_v16 }
 0x1b8   : > { %v1216_v12 = vsel %vm381_vm1, 0.0, %v1215_v1  ;;  %v1218_v56 = vsel %vm381_vm1, 0.0, %v1217_v3  ;;  %v1563_v0 = vsel %vm1277_vm2, %v1220_v8, -inf }
 0x1b9   : > { %v1409_v7 = vpop.xlane.xlu0 %1408  ;;  %v1551_v58 = vsel %vm1277_vm2, %v1216_v12, -inf }
 0x1ba   : > { %1540 = vmax.xlane.f32.xlu2 %v1539_v13  ;;  %1546 = vmax.xlane.f32.xlu1 %v1545_v44  ;;  %v1727_v46 = vsel %vm1662_vm3, %v1409_v7, -inf  ;;  %v573_v7 = vrot.slane %v568_v63, 4 }
 0x1bb   : > { %v1728_v28 = vmax.f32 %v1726_v38, %v1727_v46  ;;  %v575_v38 = vrot.slane %v556_v57, 4  ;;  %v2504_v46 = vunpack.i.l.bf16 %v3010_v30 }
 0x1bd   : > { %v1415_v43 = vpop.xlane.xlu2 %1414  ;;  %v1421_v36 = vpop.xlane.xlu1 %1420  ;;  %v1943_v60 = vperm.slane %v1728_v28, %v3240_v37  ;;  %v2544_v28 = vunpack.i.l.bf16 %v3119_v4  ;;  %v576_v14 = vsel %vm381_vm1, %v568_v63, %v575_v38 }
 0x1be   : > { %v1730_v39 = vsel %vm1662_vm3, %v1415_v43, -inf  ;;  %1543 = vmax.xlane.f32.xlu0 %v1542_v53  ;;  %v1733_v13 = vsel %vm1662_vm3, %v1421_v36, -inf  ;;  %v780_v36 = vperm.slane %v774_v11, %v2896_v50 }
 0x1bf   : > { %v1731_v52 = vmax.f32 %v1729_v26, %v1730_v39  ;;  %v2004_v41 = vsel %vm1986_vm4, %v1943_v60, %v1942_v40  ;;  %v797_v26 = vrot.slane %v3568_v5, 4  ;;  %v1557_v39 = vsel %vm1277_vm2, %v1218_v56, -inf }
 0x1c0   : > { %v997_v40 = vrot.slane %v2504_v46, 4  ;;  %v1009_v15 = vrot.slane %v2544_v28, 4 }
 0x1c1   : > { %v1944_v6 = vperm.slane %v1731_v52, %v3240_v37  ;;  %v1418_v31 = vpop.xlane.xlu0 %1417  ;;  %v574_v52 = vsel %vm381_vm1, %v573_v7, %v556_v57  ;;  %v798_v53 = vsel %vm381_vm1, %v797_v26, %v780_v36 }
 0x1c2   : > { %1549 = vmax.xlane.f32.xlu2 %v1548_v35  ;;  %1555 = vmax.xlane.f32.xlu1 %v1554_v10  ;;  %v1732_v62 = vsel %vm1662_vm3, %v1418_v31, -inf  ;;  %v3602_v57 = vperm.slane %v798_v53, %v2919_v19  ;;  %v2464_v31 = vunpack.i.l.bf16 %v2884_v33  ;;  %v799_v53 = vrot.slane %v780_v36, 4 }
 0x1c3   : > { %v2005_v51 = vsel %vm1988_vm5, %v1944_v6, %v2004_v41  ;;  %v1734_v54 = vmax.f32 %v1732_v62, %v1733_v13  ;;  %v580_v41 = vperm.slane %v574_v52, %v2919_v19  ;;  %v998_v13 = vsel %vm381_vm1, %v997_v40, %v2859_v21 }
 0x1c4   : > { %v1560_v62 = vsel %vm1277_vm2, %v3546_v17, -inf  ;;  %v1010_v56 = vsel %vm381_vm1, %v1009_v15, %v2464_v31  ;;  %v821_v17 = vrot.slane %v3602_v57, 4 }
 0x1c5   : > { %v1424_v44 = vpop.xlane.xlu2 %1423  ;;  %v1430_v27 = vpop.xlane.xlu1 %1429  ;;  %v1945_v43 = vperm.slane %v1734_v54, %v3240_v37  ;;  %v1566_v54 = vsel %vm1277_vm2, %v580_v41, -inf }
 0x1c6   : > { %1552 = vmax.xlane.f32.xlu0 %v1551_v58  ;;  %v1735_v6 = vsel %vm1662_vm3, %v1424_v44, -inf  ;;  %v1738_v10 = vsel %vm1662_vm3, %v1430_v27, -inf  ;;  %v597_v27 = vrot.slane %v580_v41, 4  ;;  %v1016_v58 = vperm.slane %v1010_v56, %v2896_v50 }
 0x1c7   : > { %v3585_v55 = vsel %vm1990_vm6, %v1945_v43, %v2005_v51  ;;  %v584_v51 = vperm.slane %v576_v14, %v2919_v19  ;;  %v1004_v43 = vperm.slane %v998_v13, %v2896_v50  ;;  %v822_v15 = vsel %vm381_vm1, 0.0, %v821_v17 }
 0x1c8   : > { %v598_v52 = vsel %vm381_vm1, 0.0, %v597_v27  ;;  %v1593_v36 = vsel %vm1277_vm2, %v822_v15, -inf  ;;  %v563_v13 = vrot.slane %v2459_v32, 4 }
 0x1c9   : > { %v1427_v60 = vpop.xlane.xlu0 %1426  ;;  %v1572_v7 = vsel %vm1277_vm2, %v584_v51, -inf  ;;  %v599_v11 = vrot.slane %v584_v51, 4  ;;  %v1023_v41 = vrot.slane %v1004_v43, 4  ;;  %v800_v51 = vsel %vm381_vm1, %v3568_v5, %v799_v53 }
 0x1ca   : > { %1558 = vmax.xlane.f32.xlu2 %v1557_v39  ;;  %1564 = vmax.xlane.f32.xlu1 %v1563_v0  ;;  %v1736_v35 = vsel %vm1662_vm3, %v1427_v60, -inf }
 0x1cb   : > { %v1737_v3 = vmax.f32 %v1735_v6, %v1736_v35  ;;  %v600_v60 = vsel %vm381_vm1, 0.0, %v599_v11  ;;  %v2505_v6 = vunpack.i.h.bf16 %v3010_v30 }
 0x1cd   : > { %v1433_v1 = vpop.xlane.xlu2 %1432  ;;  %v1439_v34 = vpop.xlane.xlu1 %1438  ;;  %v1958_v44 = vperm.slane %v1737_v3, %v3240_v37  ;;  %v1575_v3 = vsel %vm1277_vm2, %v600_v60, -inf }
 0x1ce   : > { %v1739_v63 = vsel %vm1662_vm3, %v1433_v1, -inf  ;;  %1561 = vmax.xlane.f32.xlu0 %v1560_v62  ;;  %v1742_v26 = vsel %vm1662_vm3, %v1439_v34, -inf  ;;  %v1569_v1 = vsel %vm1277_vm2, %v598_v52, -inf  ;;  %v1221_v62 = vrot.slane %v2505_v6, 4 }
 0x1cf   : > { %v1740_v16 = vmax.f32 %v1738_v10, %v1739_v63  ;;  %v2545_v10 = vunpack.i.h.bf16 %v3119_v4  ;;  %v1021_v63 = vrot.slane %v1016_v58, 4  ;;  %v564_v52 = vsel %vm381_vm1, %v2539_v18, %v563_v13 }
 0x1d1   : > { %v1959_v12 = vperm.slane %v1740_v16, %v3240_v37  ;;  %v1436_v38 = vpop.xlane.xlu0 %1435  ;;  %v1022_v16 = vsel %vm381_vm1, %v1021_v63, %v1004_v43  ;;  %v551_v43 = vrot.slane %v2864_v24, 4 }
 0x1d2   : > { %1567 = vmax.xlane.f32.xlu2 %v1566_v54  ;;  %1573 = vmax.xlane.f32.xlu1 %v1572_v7  ;;  %v1741_v39 = vsel %vm1662_vm3, %v1436_v38, -inf  ;;  %v1233_v54 = vrot.slane %v2545_v10, 4  ;;  %v808_v7 = vperm.slane %v800_v51, %v2919_v19  ;;  %v1028_v38 = vperm.slane %v1022_v16, %v2919_v19 }
 0x1d3   : > { %v2016_v8 = vsel %vm1986_vm4, %v1959_v12, %v1958_v44  ;;  %v1743_v14 = vmax.f32 %v1741_v39, %v1742_v26  ;;  %v1024_v12 = vsel %vm381_vm1, %v1016_v58, %v1023_v41  ;;  %v2465_v58 = vunpack.i.h.bf16 %v2884_v33 }
 0x1d4   : > { %v3651_v39 = vperm.slane %v1024_v12, %v2919_v19  ;;  %v1596_v60 = vsel %vm1277_vm2, %v808_v7, -inf  ;;  %v823_v53 = vrot.slane %v808_v7, 4  ;;  %v1045_v18 = vrot.slane %v1028_v38, 4 }
 0x1d5   : > { %v1442_v0 = vpop.xlane.xlu2 %1441  ;;  %v1448_v40 = vpop.xlane.xlu1 %1447  ;;  %v1960_v35 = vperm.slane %v1743_v14, %v3240_v37  ;;  %v1234_v24 = vsel %vm381_vm1, %v1233_v54, %v2465_v58 }
 0x1d6   : > { %1570 = vmax.xlane.f32.xlu0 %v1569_v1  ;;  %v1744_v27 = vsel %vm1662_vm3, %v1442_v0, -inf  ;;  %v1747_v11 = vsel %vm1662_vm3, %v1448_v40, -inf  ;;  %v1222_v0 = vsel %vm381_vm1, %v1221_v62, %v2861_v22  ;;  %v1590_v40 = vsel %vm1277_vm2, %v3602_v57, -inf }
 0x1d7   : > { %v2017_v34 = vsel %vm1988_vm5, %v1960_v35, %v2016_v8  ;;  %v1614_v35 = vsel %vm1277_vm2, %v1028_v38, -inf  ;;  %v3670_v1 = vperm.slane %v564_v52, %v2896_v50  ;;  %v1047_v57 = vrot.slane %v3651_v39, 4 }
 0x1d8   : > { %v1228_v41 = vperm.slane %v1222_v0, %v2896_v50  ;;  %v1240_v63 = vperm.slane %v1234_v24, %v2896_v50  ;;  %v824_v13 = vsel %vm381_vm1, 0.0, %v823_v53  ;;  %v775_v62 = vrot.slane %v2866_v25, 4 }
 0x1d9   : > { %v1445_v44 = vpop.xlane.xlu0 %1444  ;;  %v1046_v54 = vsel %vm381_vm1, 0.0, %v1045_v18  ;;  %v787_v0 = vrot.slane %v2460_v42, 4  ;;  %v999_v24 = vrot.slane %v2859_v21, 4 }
 0x1da   : > { %1576 = vmax.xlane.f32.xlu2 %v1575_v3  ;;  %1594 = vmax.xlane.f32.xlu1 %v1593_v36  ;;  %v1745_v56 = vsel %vm1662_vm3, %v1445_v44, -inf  ;;  %v552_v3 = vsel %vm381_vm1, %v2499_v23, %v551_v43  ;;  %v585_v23 = vrot.slane %v3670_v1, 4  ;;  %v1617_v25 = vsel %vm1277_vm2, %v1046_v54, -inf }
 0x1db   : > { %v1746_v8 = vmax.f32 %v1744_v27, %v1745_v56  ;;  %v3684_v27 = vperm.slane %v552_v3, %v2896_v50  ;;  %v1048_v56 = vsel %vm381_vm1, 0.0, %v1047_v57  ;;  %v776_v52 = vsel %vm381_vm1, %v2500_v2, %v775_v62 }
 0x1dc   : > { %v1623_v38 = vsel %vm1277_vm2, %v1048_v56, -inf  ;;  %v788_v21 = vsel %vm381_vm1, %v2540_v9, %v787_v0 }
 0x1dd   : > { %v1451_v5 = vpop.xlane.xlu2 %1450  ;;  %v1457_v17 = vpop.xlane.xlu1 %1456  ;;  %v1961_v14 = vperm.slane %v1746_v8, %v3240_v37  ;;  %v1599_v8 = vsel %vm1277_vm2, %v824_v13, -inf  ;;  %v3728_v33 = vperm.slane %v788_v21, %v2896_v50 }
 0x1de   : > { %v1748_v32 = vsel %vm1662_vm3, %v1451_v5, -inf  ;;  %1591 = vmax.xlane.f32.xlu0 %v1590_v40  ;;  %v1751_v36 = vsel %vm1662_vm3, %v1457_v17, -inf  ;;  %v1247_v5 = vrot.slane %v1228_v41, 4  ;;  %v586_v40 = vsel %vm381_vm1, %v585_v23, %v3684_v27 }
 0x1df   : > { %v1749_v26 = vmax.f32 %v1747_v11, %v1748_v32  ;;  %v3666_v15 = vsel %vm1990_vm6, %v1961_v14, %v2017_v34  ;;  %v1245_v32 = vrot.slane %v1240_v63, 4  ;;  %v1000_v23 = vsel %vm381_vm1, %v2504_v46, %v999_v24 }
 0x1e0   : > { %v809_v46 = vrot.slane %v3728_v33, 4  ;;  %v3759_v30 = vperm.slane %v1000_v23, %v2896_v50 }
 0x1e1   : > { %v1454_v34 = vpop.xlane.xlu0 %1453  ;;  %v1974_v7 = vperm.slane %v1749_v26, %v3240_v37  ;;  %v1246_v43 = vsel %vm381_vm1, %v1245_v32, %v1228_v41  ;;  %v1248_v26 = vsel %vm381_vm1, %v1240_v63, %v1247_v5  ;;  %v1011_v41 = vrot.slane %v2464_v31, 4 }
 0x1e2   : > { %1597 = vmax.xlane.f32.xlu2 %v1596_v60  ;;  %1615 = vmax.xlane.f32.xlu1 %v1614_v35  ;;  %v1750_v51 = vsel %vm1662_vm3, %v1454_v34, -inf  ;;  %v1252_v48 = vperm.slane %v1246_v43, %v2919_v19  ;;  %v1256_v2 = vperm.slane %v1248_v26, %v2919_v19  ;;  %v592_v63 = vperm.slane %v586_v40, %v2919_v19 }
 0x1e3   : > { %v1752_v44 = vmax.f32 %v1750_v51, %v1751_v36  ;;  %v1235_v34 = vrot.slane %v2465_v58, 4  ;;  %v1223_v36 = vrot.slane %v2861_v22, 4  ;;  %v1012_v31 = vsel %vm381_vm1, %v2544_v28, %v1011_v41 }
 0x1e4   : > { %v1638_v9 = vsel %vm1277_vm2, %v1252_v48, -inf  ;;  %v1269_v13 = vrot.slane %v1252_v48, 4  ;;  %v1644_v58 = vsel %vm1277_vm2, %v1256_v2, -inf  ;;  %v1271_v62 = vrot.slane %v1256_v2, 4 }
 0x1e5   : > { %v1460_v16 = vpop.xlane.xlu2 %1459  ;;  %v1466_v12 = vpop.xlane.xlu1 %1465  ;;  %v1975_v11 = vperm.slane %v1752_v44, %v3240_v37  ;;  %v601_v44 = vrot.slane %v592_v63, 4  ;;  %v3742_v54 = vperm.slane %v1012_v31, %v2896_v50  ;;  %v1224_v4 = vsel %vm381_vm1, %v2505_v6, %v1223_v36 }
 0x1e6   : > { %1600 = vmax.xlane.f32.xlu0 %v1599_v8  ;;  %v1753_v60 = vsel %vm1662_vm3, %v1460_v16, -inf  ;;  %v1756_v42 = vsel %vm1662_vm3, %v1466_v12, -inf  ;;  %v1620_v16 = vsel %vm1277_vm2, %v3651_v39, -inf  ;;  %v1236_v39 = vsel %vm381_vm1, %v2545_v10, %v1235_v34 }
 0x1e7   : > { %v2028_v17 = vsel %vm1986_vm4, %v1975_v11, %v1974_v7  ;;  %v3739_v12 = vperm.slane %v776_v52, %v2896_v50  ;;  %v1270_v11 = vsel %vm381_vm1, 0.0, %v1269_v13  ;;  %v3754_v8 = vperm.slane %v1236_v39, %v2896_v50 }
 0x1e8   : > { %v602_v6 = vsel %vm381_vm1, 0.0, %v601_v44  ;;  %v1641_v43 = vsel %vm1277_vm2, %v1270_v11, -inf  ;;  %v1033_v26 = vrot.slane %v3742_v54, 4 }
 0x1e9   : > { %v1463_v14 = vpop.xlane.xlu0 %1462  ;;  %v1257_v52 = vrot.slane %v3754_v8, 4  ;;  %v810_v40 = vsel %vm381_vm1, %v809_v46, %v3739_v12 }
 0x1ea   : > { %1618 = vmax.xlane.f32.xlu2 %v1617_v25  ;;  %1624 = vmax.xlane.f32.xlu1 %v1623_v38  ;;  %v1754_v53 = vsel %vm1662_vm3, %v1463_v14, -inf  ;;  %v3763_v38 = vperm.slane %v1224_v4, %v2896_v50  ;;  %v1581_v14 = vsel %vm1277_vm2, %v602_v6, -inf  ;;  %v1034_v24 = vsel %vm381_vm1, %v1033_v26, %v3759_v30 }
 0x1eb   : > { %v1755_v18 = vmax.f32 %v1753_v60, %v1754_v53  ;;  %v1040_v21 = vperm.slane %v1034_v24, %v2919_v19 }
 0x1ec   : > { %v1258_v53 = vsel %vm381_vm1, %v1257_v52, %v3763_v38 }
 0x1ed   : > { %v1469_v35 = vpop.xlane.xlu2 %1468  ;;  %v1475_v57 = vpop.xlane.xlu1 %1474  ;;  %v1976_v51 = vperm.slane %v1755_v18, %v3240_v37  ;;  %v816_v18 = vperm.slane %v810_v40, %v2919_v19  ;;  %v1264_v34 = vperm.slane %v1258_v53, %v2919_v19 }
 0x1ee   : > { %v1757_v20 = vsel %vm1662_vm3, %v1469_v35, -inf  ;;  %1621 = vmax.xlane.f32.xlu0 %v1620_v16  ;;  %v1760_v10 = vsel %vm1662_vm3, %v1475_v57, -inf  ;;  %v1578_v16 = vsel %vm1277_vm2, %v592_v63, -inf }
 0x1ef   : > { %v1758_v3 = vmax.f32 %v1756_v42, %v1757_v20  ;;  %v2029_v22 = vsel %vm1988_vm5, %v1976_v51, %v2028_v17  ;;  %v1272_v17 = vsel %vm381_vm1, 0.0, %v1271_v62  ;;  %v1273_v39 = vrot.slane %v1264_v34, 4 }
 0x1f0   : > { %v1647_v0 = vsel %vm1277_vm2, %v1272_v17, -inf  ;;  %v1035_v17 = vrot.slane %v3759_v30, 4  ;;  %v2054_v30 = vsel %vm2053_vm7, 0.0, %v3304_v49 }
 0x1f1   : > { %v1977_v61 = vperm.slane %v1758_v3, %v3240_v37  ;;  %v1472_v56 = vpop.xlane.xlu0 %1471  ;;  %v2071_v49 = vsel %vm2070_vm8, %v2054_v30, 0.0 }
 0x1f2   : > { %1639 = vmax.xlane.f32.xlu2 %v1638_v9  ;;  %1645 = vmax.xlane.f32.xlu1 %v1644_v58  ;;  %v1759_v5 = vsel %vm1662_vm3, %v1472_v56, -inf  ;;  %v825_v9 = vrot.slane %v816_v18, 4  ;;  %v1049_v58 = vrot.slane %v1040_v21, 4  ;;  %v1036_v24 = vsel %vm381_vm1, %v3742_v54, %v1035_v17 }
 0x1f3   : > { %v3736_v28 = vsel %vm1990_vm6, %v1977_v61, %v2029_v22  ;;  %v1761_v32 = vmax.f32 %v1759_v5, %v1760_v10  ;;  %v1602_v61 = vsel %vm1277_vm2, %v816_v18, -inf  ;;  %v1626_v22 = vsel %vm1277_vm2, %v1040_v21, -inf }
 0x1f4   : > { %v826_v4 = vsel %vm381_vm1, 0.0, %v825_v9  ;;  %v587_v10 = vrot.slane %v3684_v27, 4  ;;  %v1050_v11 = vsel %vm381_vm1, 0.0, %v1049_v58  ;;  %v1650_v21 = vsel %vm1277_vm2, %v1264_v34, -inf }
 0x1f5   : > { %v1478_v7 = vpop.xlane.xlu2 %1477  ;;  %v1484_v25 = vpop.xlane.xlu1 %1483  ;;  %v1930_v36 = vperm.slane %v1761_v32, %v3240_v37  ;;  %v811_v32 = vrot.slane %v3739_v12, 4  ;;  %v1605_v6 = vsel %vm1277_vm2, %v826_v4, -inf }
 0x1f6   : > { %1642 = vmax.xlane.f32.xlu0 %v1641_v43  ;;  %v1762_v35 = vsel %vm1662_vm3, %v1478_v7, -inf  ;;  %v1765_v20 = vsel %vm1662_vm3, %v1484_v25, -inf  ;;  %v1274_v25 = vsel %vm381_vm1, 0.0, %v1273_v39  ;;  %v1629_v43 = vsel %vm1277_vm2, %v1050_v11, -inf }
 0x1f7   : > { %v588_v27 = vsel %vm381_vm1, %v3670_v1, %v587_v10  ;;  %v1653_v12 = vsel %vm1277_vm2, %v1274_v25, -inf  ;;  %v812_v26 = vsel %vm381_vm1, %v3728_v33, %v811_v32 }
 0x1f8   : > { %v596_v1 = vperm.slane %v588_v27, %v2919_v19 }
 0x1f9   : > { %v1481_v60 = vpop.xlane.xlu0 %1480 }
 0x1fa   : > { %1648 = vmax.xlane.f32.xlu2 %v1647_v0  ;;  %1582 = vmax.xlane.f32.xlu1 %v1581_v14  ;;  %v1763_v48 = vsel %vm1662_vm3, %v1481_v60, -inf }
 0x1fb   : > { %v1764_v57 = vmax.f32 %v1762_v35, %v1763_v48  ;;  %v820_v48 = vperm.slane %v812_v26, %v2919_v19 }
 0x1fd   : > { %v1487_v42 = vpop.xlane.xlu2 %1486  ;;  %v1493_v41 = vpop.xlane.xlu1 %1492  ;;  %v1931_v51 = vperm.slane %v1764_v57, %v3240_v37 }
 0x1fe   : > { %v1766_v2 = vsel %vm1662_vm3, %v1487_v42, -inf  ;;  %1579 = vmax.xlane.f32.xlu0 %v1578_v16  ;;  %v1769_v23 = vsel %vm1662_vm3, %v1493_v41, -inf  ;;  %v1044_v41 = vperm.slane %v1036_v24, %v2919_v19  ;;  %v603_v16 = vrot.slane %v596_v1, 4 }
 0x1ff   : > { %v1767_v3 = vmax.f32 %v1765_v20, %v1766_v2  ;;  %v1995_v13 = vsel %vm1986_vm4, %v1931_v51, %v1930_v36  ;;  %v1584_v51 = vsel %vm1277_vm2, %v596_v1, -inf  ;;  %v2058_v24 = vsel %vm2053_vm7, 0.0, %v3333_v59 }
 0x200   : > { %v604_v39 = vsel %vm381_vm1, 0.0, %v603_v16 }
 0x201   : > { %v1932_v31 = vperm.slane %v1767_v3, %v3240_v37  ;;  %v1490_v44 = vpop.xlane.xlu0 %1489 }
 0x202   : > { %1603 = vmax.xlane.f32.xlu2 %v1602_v61  ;;  %1627 = vmax.xlane.f32.xlu1 %v1626_v22  ;;  %v1768_v63 = vsel %vm1662_vm3, %v1490_v44, -inf  ;;  %v1608_v61 = vsel %vm1277_vm2, %v820_v48, -inf }
 0x203   : > { %v1996_v62 = vsel %vm1988_vm5, %v1932_v31, %v1995_v13  ;;  %v1770_v5 = vmax.f32 %v1768_v63, %v1769_v23  ;;  %v827_v31 = vrot.slane %v820_v48, 4  ;;  %v1051_v13 = vrot.slane %v1044_v41, 4 }
 0x205   : > { %v1496_v56 = vpop.xlane.xlu2 %1495  ;;  %v1502_v7 = vpop.xlane.xlu1 %1501  ;;  %v1933_v46 = vperm.slane %v1770_v5, %v3240_v37  ;;  %v828_v63 = vsel %vm381_vm1, 0.0, %v827_v31  ;;  %v1052_v4 = vsel %vm381_vm1, 0.0, %v1051_v13  ;;  %v1587_v5 = vsel %vm1277_vm2, %v604_v39, -inf }
 0x206   : > { %1606 = vmax.xlane.f32.xlu0 %v1605_v6  ;;  %v1771_v53 = vsel %vm1662_vm3, %v1496_v56, -inf  ;;  %v1774_v42 = vsel %vm1662_vm3, %v1502_v7, -inf  ;;  %v1259_v56 = vrot.slane %v3763_v38, 4  ;;  %v1611_v7 = vsel %vm1277_vm2, %v828_v63, -inf }
 0x207   : > { %v1997_v0 = vsel %vm1990_vm6, %v1933_v46, %v1996_v62  ;;  %v1635_v32 = vsel %vm1277_vm2, %v1052_v4, -inf  ;;  %v2062_v63 = vsel %vm2053_vm7, 0.0, %v3381_v29 }
 0x208   : > { %v2056_v52 = vsel %vm2053_vm7, 0.0, %v1997_v0  ;;  %v1260_v25 = vsel %vm381_vm1, %v3754_v8, %v1259_v56  ;;  %v1632_v8 = vsel %vm1277_vm2, %v1044_v41, -inf }
 0x209   : > { %v2073_v14 = vsel %vm2070_vm8, %v2056_v52, 0.0  ;;  %v1499_v40 = vpop.xlane.xlu0 %1498 }
 0x20a   : > { %1630 = vmax.xlane.f32.xlu2 %v1629_v43  ;;  %1654 = vmax.xlane.f32.xlu1 %v1653_v12  ;;  %v2087_v60 = vrot.slane %v2073_v14, 4  ;;  %v1772_v33 = vsel %vm1662_vm3, %v1499_v40, -inf  ;;  %v1268_v43 = vperm.slane %v1260_v25, %v2919_v19 }
 0x20b   : > { %v1773_v18 = vmax.f32 %v1771_v53, %v1772_v33 }
 0x20c   : > { %v3822_v2 = vsel %vm381_vm1, %v2087_v60, %v2071_v49  ;;  %v1656_v14 = vsel %vm1277_vm2, %v1268_v43, -inf  ;;  %v1275_v40 = vrot.slane %v1268_v43, 4 }
 0x20d   : > { %v1505_v35 = vpop.xlane.xlu2 %1504  ;;  %v1511_v57 = vpop.xlane.xlu1 %1510  ;;  %v1946_v3 = vperm.slane %v1773_v18, %v3240_v37 }
 0x20e   : > { %v1775_v20 = vsel %vm1662_vm3, %v1505_v35, -inf  ;;  %1651 = vmax.xlane.f32.xlu0 %v1650_v21  ;;  %v1778_v58 = vsel %vm1662_vm3, %v1511_v57, -inf  ;;  %v1276_v18 = vsel %vm381_vm1, 0.0, %v1275_v40 }
 0x20f   : > { %v1776_v54 = vmax.f32 %v1774_v42, %v1775_v20  ;;  %v2075_v20 = vsel %vm2070_vm8, %v2058_v24, 0.0 }
 0x211   : > { %v1947_v36 = vperm.slane %v1776_v54, %v3240_v37  ;;  %v1508_v22 = vpop.xlane.xlu0 %1507 }
 0x212   : > { %1585 = vmax.xlane.f32.xlu2 %v1584_v51  ;;  %1609 = vmax.xlane.f32.xlu1 %v1608_v61  ;;  %v1777_v34 = vsel %vm1662_vm3, %v1508_v22, -inf }
 0x213   : > { %v2007_v9 = vsel %vm1986_vm4, %v1947_v36, %v1946_v3  ;;  %v1779_v44 = vmax.f32 %v1777_v34, %v1778_v58  ;;  %v1659_v3 = vsel %vm1277_vm2, %v1276_v18, -inf }
 0x215   : > { %v1514_v62 = vpop.xlane.xlu2 %1513  ;;  %v1520_v23 = vpop.xlane.xlu1 %1519  ;;  %v1948_v10 = vperm.slane %v1779_v44, %v3240_v37 }
 0x216   : > { %1588 = vmax.xlane.f32.xlu0 %v1587_v5  ;;  %v1780_v38 = vsel %vm1662_vm3, %v1514_v62, -inf  ;;  %v1783_v27 = vsel %vm1662_vm3, %v1520_v23, -inf }
 0x217   : > { %v2008_v11 = vsel %vm1988_vm5, %v1948_v10, %v2007_v9 }
 0x219   : > { %v1517_v17 = vpop.xlane.xlu0 %1516 }
 0x21a   : > { %1612 = vmax.xlane.f32.xlu2 %v1611_v7  ;;  %1636 = vmax.xlane.f32.xlu1 %v1635_v32  ;;  %v1781_v46 = vsel %vm1662_vm3, %v1517_v17, -inf }
 0x21b   : > { %v1782_v0 = vmax.f32 %v1780_v38, %v1781_v46  ;;  %v2079_v38 = vsel %vm2070_vm8, %v2062_v63, 0.0 }
 0x21d   : > { %v1523_v6 = vpop.xlane.xlu2 %1522  ;;  %v1529_v26 = vpop.xlane.xlu1 %1528  ;;  %v1949_v52 = vperm.slane %v1782_v0, %v3240_v37 }
 0x21e   : > { %v1784_v12 = vsel %vm1662_vm3, %v1523_v6, -inf  ;;  %1633 = vmax.xlane.f32.xlu0 %v1632_v8  ;;  %v1787_v48 = vsel %vm1662_vm3, %v1529_v26, -inf }
 0x21f   : > { %v1785_v30 = vmax.f32 %v1783_v27, %v1784_v12  ;;  %v2009_v1 = vsel %vm1990_vm6, %v1949_v52, %v2008_v11 }
 0x220   : > { %v2060_v60 = vsel %vm2053_vm7, 0.0, %v2009_v1 }
 0x221   : > { %v2077_v53 = vsel %vm2070_vm8, %v2060_v60, 0.0  ;;  %v1526_v33 = vpop.xlane.xlu0 %1525  ;;  %v1962_v59 = vperm.slane %v1785_v30, %v3240_v37 }
 0x222   : > { %1657 = vmax.xlane.f32.xlu2 %v1656_v14  ;;  %v2115_v35 = vrot.slane %v2077_v53, 4  ;;  %v1786_v49 = vsel %vm1662_vm3, %v1526_v33, -inf }
 0x223   : > { %v1788_v57 = vmax.f32 %v1786_v49, %v1787_v48 }
 0x224   : > { %v3862_v41 = vsel %vm381_vm1, %v2115_v35, %v2075_v20  ;;  %v2066_v20 = vsel %vm2053_vm7, 0.0, %v3455_v45 }
 0x225   : > { %v1532_v42 = vpop.xlane.xlu2 %1531  ;;  %v1538_v54 = vpop.xlane.xlu1 %1537  ;;  %v1963_v21 = vperm.slane %v1788_v57, %v3240_v37 }
 0x226   : > { %1660 = vmax.xlane.f32.xlu0 %v1659_v3  ;;  %v1789_v16 = vsel %vm1662_vm3, %v1532_v42, -inf  ;;  %v1792_v9 = vsel %vm1662_vm3, %v1538_v54, -inf }
 0x227   : > { %v2019_v36 = vsel %vm1986_vm4, %v1963_v21, %v1962_v59 }
 0x229   : > { %v1535_v51 = vpop.xlane.xlu0 %1534 }
 0x22a   : > { %v1790_v31 = vsel %vm1662_vm3, %v1535_v51, -inf }
 0x22b   : > { %v1791_v13 = vmax.f32 %v1789_v16, %v1790_v31 }
 0x22d   : > { %v1541_v61 = vpop.xlane.xlu2 %1540  ;;  %v1547_v58 = vpop.xlane.xlu1 %1546  ;;  %v1964_v62 = vperm.slane %v1791_v13, %v3240_v37 }
 0x22e   : > { %v1793_v22 = vsel %vm1662_vm3, %v1541_v61, -inf  ;;  %v1796_v5 = vsel %vm1662_vm3, %v1547_v58, -inf }
 0x22f   : > { %v1794_v34 = vmax.f32 %v1792_v9, %v1793_v22  ;;  %v2020_v44 = vsel %vm1988_vm5, %v1964_v62, %v2019_v36  ;;  %v2083_v36 = vsel %vm2070_vm8, %v2066_v20, 0.0 }
 0x231   : > { %v1965_v39 = vperm.slane %v1794_v34, %v3240_v37  ;;  %v1544_v4 = vpop.xlane.xlu0 %1543 }
 0x232   : > { %v1795_v7 = vsel %vm1662_vm3, %v1544_v4, -inf }
 0x233   : > { %v2021_v23 = vsel %vm1990_vm6, %v1965_v39, %v2020_v44  ;;  %v1797_v25 = vmax.f32 %v1795_v7, %v1796_v5 }
 0x234   : > { %v2064_v56 = vsel %vm2053_vm7, 0.0, %v2021_v23 }
 0x235   : > { %v2081_v10 = vsel %vm2070_vm8, %v2064_v56, 0.0  ;;  %v1550_v11 = vpop.xlane.xlu2 %1549  ;;  %v1556_v17 = vpop.xlane.xlu1 %1555  ;;  %v1978_v8 = vperm.slane %v1797_v25, %v3240_v37  ;;  %v2055_v25 = vsel %vm2053_vm7, 0.0, %v3508_v47 }
 0x236   : > { %v2143_v32 = vrot.slane %v2081_v10, 4  ;;  %v1798_v29 = vsel %vm1662_vm3, %v1550_v11, -inf  ;;  %v1801_v0 = vsel %vm1662_vm3, %v1556_v17, -inf }
 0x238   : > { %v3884_v46 = vsel %vm381_vm1, %v2143_v32, %v2079_v38 }
 0x239   : > { %v1553_v6 = vpop.xlane.xlu0 %1552 }
 0x23a   : > { %v1799_v43 = vsel %vm1662_vm3, %v1553_v6, -inf }
 0x23b   : > { %v1800_v12 = vmax.f32 %v1798_v29, %v1799_v43 }
 0x23d   : > { %v1559_v27 = vpop.xlane.xlu2 %1558  ;;  %v1565_v30 = vpop.xlane.xlu1 %1564  ;;  %v1979_v14 = vperm.slane %v1800_v12, %v3240_v37  ;;  %v3924_v12 = vsel %vm2070_vm8, %v2055_v25, 0.0 }
 0x23e   : > { %v1802_v26 = vsel %vm1662_vm3, %v1559_v27, -inf  ;;  %v1805_v53 = vsel %vm1662_vm3, %v1565_v30, -inf }
 0x23f   : > { %v1803_v52 = vmax.f32 %v1801_v0, %v1802_v26  ;;  %v2031_v1 = vsel %vm1986_vm4, %v1979_v14, %v1978_v8  ;;  %v2059_v26 = vsel %vm2053_vm7, 0.0, %v3585_v55 }
 0x240   : > { %v3936_v55 = vsel %vm2070_vm8, %v2059_v26, 0.0 }
 0x241   : > { %v1980_v40 = vperm.slane %v1803_v52, %v3240_v37  ;;  %v1562_v60 = vpop.xlane.xlu0 %1561 }
 0x242   : > { %v1804_v33 = vsel %vm1662_vm3, %v1562_v60, -inf }
 0x243   : > { %v2032_v24 = vsel %vm1988_vm5, %v1980_v40, %v2031_v1  ;;  %v1806_v48 = vmax.f32 %v1804_v33, %v1805_v53 }
 0x245   : > { %v1568_v35 = vpop.xlane.xlu2 %1567  ;;  %v1574_v49 = vpop.xlane.xlu1 %1573  ;;  %v1981_v42 = vperm.slane %v1806_v48, %v3240_v37 }
 0x246   : > { %v1810_v32 = vsel %vm1662_vm3, %v1574_v49, -inf  ;;  %v1807_v29 = vsel %vm1662_vm3, %v1568_v35, -inf }
 0x247   : > { %v2033_v18 = vsel %vm1990_vm6, %v1981_v42, %v2032_v24  ;;  %v2063_v42 = vsel %vm2053_vm7, 0.0, %v3666_v15 }
 0x248   : > { %v2068_v57 = vsel %vm2053_vm7, 0.0, %v2033_v18 }
 0x249   : > { %v2085_v54 = vsel %vm2070_vm8, %v2068_v57, 0.0  ;;  %v1571_v59 = vpop.xlane.xlu0 %1570 }
 0x24a   : > { %v2171_v21 = vrot.slane %v2085_v54, 4  ;;  %v1808_v17 = vsel %vm1662_vm3, %v1571_v59, -inf  ;;  %v3946_v54 = vperm.slane %v3822_v2, %v2896_v50  ;;  %v3950_v59 = vperm.slane %v3862_v41, %v2896_v50 }
 0x24b   : > { %v1809_v30 = vmax.f32 %v1807_v29, %v1808_v17 }
 0x24c   : > { %v3905_v16 = vsel %vm381_vm1, %v2171_v21, %v2083_v36 }
 0x24d   : > { %v1577_v3 = vpop.xlane.xlu2 %1576  ;;  %v1595_v51 = vpop.xlane.xlu1 %1594  ;;  %v1934_v18 = vperm.slane %v1809_v30, %v3240_v37 }
 0x24e   : > { %v1811_v11 = vsel %vm1662_vm3, %v1577_v3, -inf  ;;  %v1820_v8 = vsel %vm1662_vm3, %v1595_v51, -inf }
 0x24f   : > { %v1812_v38 = vmax.f32 %v1810_v32, %v1811_v11 }
 0x251   : > { %v1592_v31 = vpop.xlane.xlu0 %1591  ;;  %v1935_v52 = vperm.slane %v1812_v38, %v3240_v37 }
 0x252   : > { %v1819_v43 = vsel %vm1662_vm3, %v1592_v31, -inf }
 0x253   : > { %v1821_v1 = vmax.f32 %v1819_v43, %v1820_v8  ;;  %v1998_v36 = vsel %vm1986_vm4, %v1935_v52, %v1934_v18 }
 0x255   : > { %v1598_v61 = vpop.xlane.xlu2 %1597  ;;  %v1616_v9 = vpop.xlane.xlu1 %1615  ;;  %v1950_v15 = vperm.slane %v1821_v1, %v3240_v37 }
 0x256   : > { %v1822_v14 = vsel %vm1662_vm3, %v1598_v61, -inf  ;;  %v1831_v20 = vsel %vm1662_vm3, %v1616_v9, -inf }
 0x259   : > { %v1601_v13 = vpop.xlane.xlu0 %1600 }
 0x25a   : > { %v1823_v27 = vsel %vm1662_vm3, %v1601_v13, -inf }
 0x25b   : > { %v1824_v24 = vmax.f32 %v1822_v14, %v1823_v27 }
 0x25d   : > { %v1619_v22 = vpop.xlane.xlu2 %1618  ;;  %v1625_v58 = vpop.xlane.xlu1 %1624  ;;  %v1951_v51 = vperm.slane %v1824_v24, %v3240_v37 }
 0x25e   : > { %v1832_v60 = vsel %vm1662_vm3, %v1619_v22, -inf  ;;  %v1835_v3 = vsel %vm1662_vm3, %v1625_v58, -inf }
 0x25f   : > { %v1833_v21 = vmax.f32 %v1831_v20, %v1832_v60 }
 0x261   : > { %v1622_v45 = vpop.xlane.xlu0 %1621 }
 0x262   : > { %v1834_v35 = vsel %vm1662_vm3, %v1622_v45, -inf }
 0x263   : > { %v1836_v31 = vmax.f32 %v1834_v35, %v1835_v3  ;;  %v2080_v35 = vsel %vm2070_vm8, %v2063_v42, 0.0 }
 0x265   : > { %v3907_v34 = vpop.xlane.xlu2 %1639  ;;  %v3909_v62 = vpop.xlane.xlu1 %1645 }
 0x266   : > { %v1843_v29 = vsel %vm1662_vm3, %v3907_v34, -inf  ;;  %v1846_v43 = vsel %vm1662_vm3, %v3909_v62, -inf }
 0x269   : > { %v1643_v39 = vpop.xlane.xlu0 %1642 }
 0x26d   : > { %v3911_v44 = vpop.xlane.xlu2 %1648  ;;  %v1583_v23 = vpop.xlane.xlu1 %1582 }
 0x26e   : > { %v1814_v53 = vsel %vm1662_vm3, %v1583_v23, -inf  ;;  %v1847_v25 = vsel %vm1662_vm3, %v3911_v44, -inf }
 0x271   : > { %v1580_v63 = vpop.xlane.xlu0 %1579 }
 0x272   : > { %v1813_v47 = vsel %vm1662_vm3, %v1580_v63, -inf }
 0x273   : > { %v1815_v48 = vmax.f32 %v1813_v47, %v1814_v53  ;;  %v1848_v47 = vmax.f32 %v1846_v43, %v1847_v25 }
 0x275   : > { %v1604_v56 = vpop.xlane.xlu2 %1603  ;;  %v1628_v4 = vpop.xlane.xlu1 %1627  ;;  %v1936_v9 = vperm.slane %v1815_v48, %v3240_v37 }
 0x276   : > { %v1825_v49 = vsel %vm1662_vm3, %v1604_v56, -inf  ;;  %v1966_v56 = vperm.slane %v1833_v21, %v3240_v37  ;;  %v1837_v11 = vsel %vm1662_vm3, %v1628_v4, -inf  ;;  %v1967_v4 = vperm.slane %v1836_v31, %v3240_v37 }
 0x277   : > { %v1999_v27 = vsel %vm1988_vm5, %v1936_v9, %v1998_v36  ;;  %v2101_v21 = vrot.slane %v3946_v54, 4 }
 0x278   : > { %v2022_v20 = vsel %vm1986_vm4, %v1967_v4, %v1966_v56 }
 0x279   : > { %v1607_v10 = vpop.xlane.xlu0 %1606 }
 0x27a   : > { %v1826_v40 = vsel %vm1662_vm3, %v1607_v10, -inf  ;;  %v1844_v10 = vsel %vm1662_vm3, %v1643_v39, -inf }
 0x27b   : > { %v1827_v57 = vmax.f32 %v1825_v49, %v1826_v40 }
 0x27d   : > { %v1631_v5 = vpop.xlane.xlu2 %1630  ;;  %v3913_v7 = vpop.xlane.xlu1 %1654  ;;  %v1952_v45 = vperm.slane %v1827_v57, %v3240_v37 }
 0x27e   : > { %v1838_v2 = vsel %vm1662_vm3, %v1631_v5, -inf  ;;  %v2010_v5 = vsel %vm1986_vm4, %v1951_v51, %v1950_v15  ;;  %v1850_v14 = vsel %vm1662_vm3, %v3913_v7, -inf  ;;  %v2148_v7 = vperm.slane %v3884_v46, %v2896_v50 }
 0x27f   : > { %v1839_v17 = vmax.f32 %v1837_v11, %v1838_v2  ;;  %v2011_v26 = vsel %vm1988_vm5, %v1952_v45, %v2010_v5  ;;  %v1983_v51 = vperm.slane %v1848_v47, %v3240_v37 }
 0x281   : > { %v1652_v6 = vpop.xlane.xlu0 %1651  ;;  %v1968_v62 = vperm.slane %v1839_v17, %v3240_v37 }
 0x282   : > { %v1849_v52 = vsel %vm1662_vm3, %v1652_v6, -inf }
 0x283   : > { %v1851_v48 = vmax.f32 %v1849_v52, %v1850_v14  ;;  %v2023_v46 = vsel %vm1988_vm5, %v1968_v62, %v2022_v20 }
 0x285   : > { %v1586_v0 = vpop.xlane.xlu2 %1585  ;;  %v1610_v33 = vpop.xlane.xlu1 %1609  ;;  %v1984_v9 = vperm.slane %v1851_v48, %v3240_v37 }
 0x286   : > { %v1816_v13 = vsel %vm1662_vm3, %v1586_v0, -inf  ;;  %v1828_v58 = vsel %vm1662_vm3, %v1610_v33, -inf  ;;  %v1845_v0 = vmax.f32 %v1843_v29, %v1844_v10 }
 0x288   : > { %v1982_v3 = vperm.slane %v1845_v0, %v3240_v37 }
 0x289   : > { %v1589_v61 = vpop.xlane.xlu0 %1588 }
 0x28a   : > { %v1817_v41 = vsel %vm1662_vm3, %v1589_v61, -inf }
 0x28b   : > { %v1818_v23 = vmax.f32 %v1816_v13, %v1817_v41 }
 0x28d   : > { %v1613_v22 = vpop.xlane.xlu2 %1612  ;;  %v1937_v38 = vperm.slane %v1818_v23, %v3240_v37  ;;  %v1637_v30 = vpop.xlane.xlu1 %1636 }
 0x28e   : > { %v1829_v63 = vsel %vm1662_vm3, %v1613_v22, -inf  ;;  %v1841_v33 = vsel %vm1662_vm3, %v1637_v30, -inf  ;;  %v2157_v30 = vrot.slane %v2148_v7, 4 }
 0x28f   : > { %v1830_v32 = vmax.f32 %v1828_v58, %v1829_v63  ;;  %v2000_v44 = vsel %vm1990_vm6, %v1937_v38, %v1999_v27 }
 0x290   : > { %v2057_v34 = vsel %vm2053_vm7, 0.0, %v2000_v44 }
 0x291   : > { %v1953_v39 = vperm.slane %v1830_v32, %v3240_v37  ;;  %v2074_v40 = vsel %vm2070_vm8, %v2057_v34, 0.0  ;;  %v1634_v24 = vpop.xlane.xlu0 %1633 }
 0x292   : > { %v2093_v60 = vrot.slane %v2074_v40, 4  ;;  %v1840_v6 = vsel %vm1662_vm3, %v1634_v24, -inf }
 0x293   : > { %v2012_v8 = vsel %vm1990_vm6, %v1953_v39, %v2011_v26  ;;  %v1842_v18 = vmax.f32 %v1840_v6, %v1841_v33  ;;  %v2034_v39 = vsel %vm1986_vm4, %v1983_v51, %v1982_v3  ;;  %v2176_v33 = vperm.slane %v3905_v16, %v2896_v50 }
 0x294   : > { %v2061_v1 = vsel %vm2053_vm7, 0.0, %v2012_v8  ;;  %v2094_v57 = vsel %vm381_vm1, %v2093_v60, %v3924_v12  ;;  %v2129_v12 = vrot.slane %v3950_v59, 4  ;;  %v2035_v47 = vsel %vm1988_vm5, %v1984_v9, %v2034_v39 }
 0x295   : > { %v2078_v53 = vsel %vm2070_vm8, %v2061_v1, 0.0  ;;  %v1969_v42 = vperm.slane %v1842_v18, %v3240_v37  ;;  %v2098_v15 = vperm.slane %v2094_v57, %v2896_v50  ;;  %v1658_v31 = vpop.xlane.xlu2 %1657  ;;  %v2067_v1 = vsel %vm2053_vm7, 0.0, %v3736_v28 }
 0x296   : > { %v2121_v49 = vrot.slane %v2078_v53, 4  ;;  %v1852_v63 = vsel %vm1662_vm3, %v1658_v31, -inf  ;;  %v2185_v57 = vrot.slane %v2176_v33, 4 }
 0x297   : > { %v2024_v2 = vsel %vm1990_vm6, %v1969_v42, %v2023_v46  ;;  %v2099_v13 = vrot.slane %v2098_v15, 4 }
 0x298   : > { %v2122_v36 = vsel %vm381_vm1, %v2121_v49, %v3936_v55  ;;  %v2102_v55 = vsel %vm381_vm1, %v2098_v15, %v2101_v21  ;;  %v2065_v41 = vsel %vm2053_vm7, 0.0, %v2024_v2  ;;  %v2084_v49 = vsel %vm2070_vm8, %v2067_v1, 0.0 }
 0x299   : > { %v2126_v61 = vperm.slane %v2122_v36, %v2896_v50  ;;  %v2110_v22 = vperm.slane %v2102_v55, %v2919_v19  ;;  %v2082_v23 = vsel %vm2070_vm8, %v2065_v41, 0.0  ;;  %v1661_v56 = vpop.xlane.xlu0 %1660  ;;  %v2100_v11 = vsel %vm381_vm1, %v2099_v13, %v3946_v54 }
 0x29a   : > { %v2149_v32 = vrot.slane %v2082_v23, 4  ;;  %v1853_v5 = vsel %vm1662_vm3, %v1661_v56, -inf  ;;  %v4019_v25 = vperm.slane %v2100_v11, %v2919_v19 }
 0x29b   : > { %v2130_v45 = vsel %vm381_vm1, %v2126_v61, %v2129_v12  ;;  %v2127_v58 = vrot.slane %v2126_v61, 4  ;;  %v1854_v38 = vmax.f32 %v1852_v63, %v1853_v5  ;;  %v2113_v27 = vrot.slane %v2110_v22, 4 }
 0x29c   : > { %v2138_v10 = vperm.slane %v2130_v45, %v2919_v19  ;;  %v2150_v4 = vsel %vm381_vm1, %v2149_v32, %v2080_v35  ;;  %v2111_v54 = vrot.slane %v4019_v25, 4 }
 0x29d   : > { %v2128_v17 = vsel %vm381_vm1, %v2127_v58, %v3950_v59  ;;  %v1985_v26 = vperm.slane %v1854_v38, %v3240_v37  ;;  %v2154_v44 = vperm.slane %v2150_v4, %v2896_v50  ;;  %v2114_v34 = vsel %vm381_vm1, 0.0, %v2113_v27 }
 0x29e   : > { %v2556_v29 = vpack.i.bf16 %v2138_v10, %v2110_v22  ;;  %v4024_v43 = vperm.slane %v2128_v17, %v2919_v19  ;;  %v2141_v0 = vrot.slane %v2138_v10, 4  ;;  %v2112_v52 = vsel %vm381_vm1, 0.0, %v2111_v54 }
 0x29f   : > { %v2036_v62 = vsel %vm1990_vm6, %v1985_v26, %v2035_v47  ;;  %v2158_v40 = vsel %vm381_vm1, %v2154_v44, %v2157_v30  ;;  %v2155_v53 = vrot.slane %v2154_v44, 4 }
 0x2a0   : > { %2557 = vrot.lane.b32.xlu0 %v2556_v29, %s2659_s20  ;;  %v2139_v59 = vrot.slane %v4024_v43, 4  ;;  %v2142_v8 = vsel %vm381_vm1, 0.0, %v2141_v0  ;;  %v2069_v24 = vsel %vm2053_vm7, 0.0, %v2036_v62  ;;  %v2166_v28 = vperm.slane %v2158_v40, %v2919_v19 }
 0x2a1   : > { %v2566_v14 = vpack.i.bf16 %v2142_v8, %v2114_v34  ;;  %v2086_v6 = vsel %vm2070_vm8, %v2069_v24, 0.0  ;;  %v2156_v48 = vsel %vm381_vm1, %v2155_v53, %v2148_v7 }
 0x2a2   : > { %v2140_v37 = vsel %vm381_vm1, 0.0, %v2139_v59  ;;  %v2177_v35 = vrot.slane %v2086_v6, 4  ;;  %v2162_v16 = vperm.slane %v2156_v48, %v2919_v19  ;;  %v2169_v42 = vrot.slane %v2166_v28, 4 }
 0x2a3   : > { %v2546_v60 = vpack.i.bf16 %v2140_v37, %v2112_v52 }
 0x2a4   : > { %v2178_v18 = vsel %vm381_vm1, %v2177_v35, %v2084_v49  ;;  %v2167_v51 = vrot.slane %v2162_v16, 4 }
 0x2a5   : > { %2547 = vrot.lane.b32.xlu1 %v2546_v60, %s2660_s21  ;;  %v2182_v20 = vperm.slane %v2178_v18, %v2896_v50  ;;  %v2170_v50 = vsel %vm381_vm1, 0.0, %v2169_v42 }
 0x2a6   : > { %v2168_v2 = vsel %vm381_vm1, 0.0, %v2167_v51 }
 0x2a7   : > { %v2183_v21 = vrot.slane %v2182_v20, 4  ;;  %v2186_v3 = vsel %vm381_vm1, %v2182_v20, %v2185_v57 }
 0x2a8   : > { %2567 = vrot.lane.b32.xlu0 %v2566_v14, %s2661_s22  ;;  %v2194_v36 = vperm.slane %v2186_v3, %v2919_v19 }
 0x2a9   : > { %v2184_v7 = vsel %vm381_vm1, %v2183_v21, %v2176_v33 }
 0x2aa   : > { %v2561_v15 = vpack.i.bf16 %v2194_v36, %v2166_v28  ;;  %v2190_v46 = vperm.slane %v2184_v7, %v2919_v19  ;;  %v2197_v31 = vrot.slane %v2194_v36, 4 }
 0x2ac   : > { %v2195_v61 = vrot.slane %v2190_v46, 4  ;;  %v2198_v12 = vsel %vm381_vm1, 0.0, %v2197_v31 }
 0x2ad   : > { %2562 = vrot.lane.b32.xlu1 %v2561_v15, %s2659_s20  ;;  %v2571_v9 = vpack.i.bf16 %v2198_v12, %v2170_v50 }
 0x2ae   : > { %v2196_v13 = vsel %vm381_vm1, 0.0, %v2195_v61 }
 0x2af   : > { %v2551_v55 = vpack.i.bf16 %v2196_v13, %v2168_v2 }
 0x2b1   : > { %2552 = vrot.lane.b32.xlu2 %v2551_v55, %s2660_s21 }
 0x2b9   : > { %2572 = vrot.lane.b32.xlu2 %v2571_v9, %s2661_s22 }
 0x30b   : > { %v2553_v22 = vpop.permute.xlu2 %2552 }
 0x30c   : > { %v2555_v4 = vunpack.i.h.bf16 %v2553_v22  ;;  %v2554_v54 = vunpack.i.l.bf16 %v2553_v22 }
 0x30e   : > { %v2251_v59 = vsel %vm2247_vm10, %v2190_v46, %v2555_v4  ;;  %v2250_v44 = vsel %vm2247_vm10, %v2162_v16, %v2554_v54 }
 0x312   : > { %v2558_v41 = vpop.permute.xlu0 %2557 }
 0x313   : > { %v2560_v23 = vunpack.i.h.bf16 %v2558_v41  ;;  %v2559_v63 = vunpack.i.l.bf16 %v2558_v41 }
 0x317   : > { %v2548_v19 = vpop.permute.xlu1 %2547 }
 0x318   : > { %v2550_v45 = vunpack.i.h.bf16 %v2548_v19  ;;  %v2549_v58 = vunpack.i.l.bf16 %v2548_v19 }
 0x31a   : > { %v2249_v56 = vsel %vm2247_vm10, %v4024_v43, %v2550_v45  ;;  %v2248_v10 = vsel %vm2247_vm10, %v4019_v25, %v2549_v58  ;;  %v2568_v11 = vpop.permute.xlu0 %2567  ;;  %v2573_v43 = vpop.permute.xlu2 %2572 }
 0x31b   : > { %v2570_v32 = vunpack.i.h.bf16 %v2568_v11  ;;  %v2569_v5 = vunpack.i.l.bf16 %v2568_v11  ;;  %v2253_v17 = vsel %vm2252_vm9, %v2248_v10, %v2559_v63  ;;  %v2254_v38 = vsel %vm2252_vm9, %v2249_v56, %v2560_v23 }
 0x31c   : > { %v2575_v30 = vunpack.i.h.bf16 %v2573_v43  ;;  %v2574_v47 = vunpack.i.l.bf16 %v2573_v43 }
 0x31d   : > { %v2258_v29 = vsel %vm2257_vm11, %v2253_v17, %v2569_v5  ;;  %v2259_v27 = vsel %vm2257_vm11, %v2254_v38, %v2570_v32 }
 0x31e   : > { %v2576_v39 = vpack.i.bf16 %v2259_v27, %v2258_v29 }
 0x31f   : > { %v2563_v25 = vpop.permute.xlu1 %2562 }
 0x320   : > { %2577 = vrot.lane.b32.xlu1 %v2576_v39, %s2660_s21  ;;  %v2565_v0 = vunpack.i.h.bf16 %v2563_v25  ;;  %v2564_v26 = vunpack.i.l.bf16 %v2563_v25 }
 0x322   : > { %v2256_v52 = vsel %vm2252_vm9, %v2251_v59, %v2565_v0  ;;  %v2255_v34 = vsel %vm2252_vm9, %v2250_v44, %v2564_v26 }
 0x323   : > { %v2260_v8 = vsel %vm2257_vm11, %v2255_v34, %v2574_v47  ;;  %v2261_v62 = vsel %vm2257_vm11, %v2256_v52, %v2575_v30 }
 0x324   : > { %v2581_v37 = vpack.i.bf16 %v2261_v62, %v2260_v8 }
 0x326   : > { %2582 = vrot.lane.b32.xlu0 %v2581_v37, %s2660_s21 }
 0x392   : > { %v2578_v14 = vpop.permute.xlu1 %2577 }
 0x393   : > { %v2580_v40 = vunpack.i.h.bf16 %v2578_v14  ;;  %v2579_v1 = vunpack.i.l.bf16 %v2578_v14 }
 0x395   : > { %v2279_v24 = vsel %vm2247_vm10, 0.0, %v2580_v40  ;;  %v2278_v60 = vsel %vm2247_vm10, 0.0, %v2579_v1 }
 0x396   : > { %v2284_v53 = vsel %vm2282_vm12, %v2279_v24, 0.0  ;;  %v2283_v33 = vsel %vm2282_vm12, %v2278_v60, 0.0 }
 0x397   : > { %v2288_v6 = vpack.c.bf16 %v2284_v53, %v2284_v53  ;;  %v2287_v35 = vpack.c.bf16 %v2283_v33, %v2283_v33 }
 0x398   : > { %v2583_v48 = vpop.permute.xlu0 %2582 }
 0x399   : > { %2293 = vst.msk [vmem:[%s138_s26 + $0x2] sm:$0x3] %vm2291_vm13, %v2288_v6  ;;  %v2585_v49 = vunpack.i.h.bf16 %v2583_v48  ;;  %v2584_v18 = vunpack.i.l.bf16 %v2583_v48 }
 0x39a   : > { %2292 = vst.msk [vmem:[%s138_s26] sm:$0x3] %vm2291_vm13, %v2287_v35 }
 0x39b   : > { %v2281_v28 = vsel %vm2247_vm10, 0.0, %v2585_v49  ;;  %v2280_v20 = vsel %vm2247_vm10, 0.0, %v2584_v18 }
 0x39c   : > { %v2286_v57 = vsel %vm2282_vm12, %v2281_v28, 0.0  ;;  %v2285_v16 = vsel %vm2282_vm12, %v2280_v20, 0.0 }
 0x39d   : > { %v2290_v21 = vpack.c.bf16 %v2286_v57, %v2286_v57  ;;  %v2289_v3 = vpack.c.bf16 %v2285_v16, %v2285_v16 }
 0x39f   : > { %2295 = vst.msk [vmem:[%s138_s26 + $0x6] sm:$0x3] %vm2291_vm13, %v2290_v21 }
 0x3a0   : > { %2294 = vst.msk [vmem:[%s138_s26 + $0x4] sm:$0x3] %vm2291_vm13, %v2289_v3 }
 0x3a1 PF: > { %p11_p7 = scmp.ge.s32.totalorder %s2694_s11, 4   ;;  %s4114_s6 = smov %s2642_s7 }
 0x3a2   : > { %s4115_s7 = smov %s2646_s8  ;;  %s4116_s8 = smov %s2704_s14 }
 0x3a3   : > { %s4117_s9 = smov %s2694_s11  ;;  %13 = sbr.rel (!%p11_p7) target bundleno = 3 (0x3), region = 64 }
 0x3a8   :  { %2317 = vsyncpa [#allocation3], 1 }
 0x3a9   :  { %2319 = vsyncpa [#allocation3 + $0x1], 1 }

</bundles_post_ra>
